<compile_context>
chip_gen: v7x
topology: tpu7x:2x2x1
jax: 0.10.0
libtpu: 0.0.40
codegen_flags: <defaults>
</compile_context>

<pallas_src>
import numpy as np

import jax
import jax.numpy as jnp
from jax.experimental import pallas as pl
from jax.experimental.pallas import tpu as pltpu

# ---------------- configuration (small shapes consistent with the module) ----
BATCH = 2
IN_CHANNELS = 1
INPUT_HW = (16, 16)
NUM_CLASSES = 10
KERNEL_SIZE = 3
WAVERON_CHANNELS = 16       # conv_out_channels of every Waveron
REDUCTION = 16              # ChannelAttention reduction ratio (hard-coded)
BN_EPS = 1e-5
BPAD = 8                    # batch padded to 8 rows for the FC stage

_VMEM = pl.BlockSpec(memory_space=pltpu.MemorySpace.VMEM)
_HI = jax.lax.Precision.HIGHEST

# Row offsets inside the packed 64-lane constant slab (all multiples of 8).
_OFF_W1V = 0        # 36 rows: layer-1 conv taps, vstacked (block-diag over waverons)
_OFF_W2V = 40       # 576 rows: layer-2 conv taps, vstacked
_OFF_RESW = 616     # 64 rows: layer-2 residual 1x1 conv (block-diag)
_OFF_AW11 = 680     # 64 rows: layer-1 attention W1 (zero-padded to 64 cols)
_OFF_AW21 = 744     # 64 rows: layer-1 attention W2
_OFF_AW12 = 808     # 64 rows: layer-2 attention W1
_OFF_AW22 = 872     # 64 rows: layer-2 attention W2
_OFF_VEC = 936      # 8 rows: sc1, sh1, sc2, sh2, resb (one (1,64) vector each)
_CONST64_ROWS = 944

_HAAR_COEFS = 0.5 * np.array([[1., 1., 1., 1.],      # LL
                              [1., 1., -1., -1.],    # LH
                              [1., -1., 1., -1.],    # HL
                              [1., -1., -1., 1.]],   # HH
                             np.float32)
_HAAR_TAPS = ((0, 0), (0, 1), (1, 0), (1, 1))


# =============================== fused Pallas kernel ==========================
def _wavenet_kernel(x1_ref, cw_ref, hm_ref, fcp_ref, out_ref):
    f32 = jnp.float32
    C4 = 4 * WAVERON_CHANNELS

    def shift_rows(x, off):
        # shifted[r] = x[(r + off) mod R]; wrapped rows are always masked out.
        if off == 0:
            return x
        return jnp.concatenate([x[off:], x[:off]], axis=0)

    def conv_bn_relu(x, w_all, hw, sc, sh):
        # 3x3 'SAME' conv: 9 sublane shifts + iota boundary masks (VPU/XLU),
        # lane-concatenated into one (R, 9*Cin) block -> ONE large-K MXU dot.
        rows = x.shape[0]
        log2w = hw.bit_length() - 1
        ridx = jax.lax.broadcasted_iota(jnp.int32, (rows, 1), 0)
        wcol = jnp.bitwise_and(ridx, hw - 1)
        hrow = jnp.bitwise_and(jnp.right_shift(ridx, log2w), hw - 1)
        blocks = []
        for dy in range(KERNEL_SIZE):
            for dx in range(KERNEL_SIZE):
                off = (dy - 1) * hw + (dx - 1)
                blk = shift_rows(x, off)
                conds = []
                if dy == 0:
                    conds.append(hrow >= 1)
                elif dy == 2:
                    conds.append(hrow <= hw - 2)
                if dx == 0:
                    conds.append(wcol >= 1)
                elif dx == 2:
                    conds.append(wcol <= hw - 2)
                if conds:
                    m = conds[0]
                    for c_ in conds[1:]:
                        m = jnp.logical_and(m, c_)
                    blk = blk * m.astype(f32)
                blocks.append(blk)
        xb = jnp.concatenate(blocks, axis=1)                       # (R, 9*Cin)
        y = jnp.dot(xb, w_all, preferred_element_type=f32)         # (R, 64)
        # conv bias + inference BatchNorm folded into (sc, sh), then ReLU.
        return jnp.maximum(y * sc + sh, 0.0)

    def attend(act, aw1, aw2, hw):
        # ChannelAttention for all batches / packed waverons: batched MLP
        # (two dots total) + one VPU multiply to apply it.
        pooled = []
        for b in range(BATCH):
            blk = act[b * hw:(b + 1) * hw, :]
            pooled.append(jnp.mean(blk, axis=0, keepdims=True))    # AdaptiveAvgPool2d(1)
        for b in range(BATCH):
            blk = act[b * hw:(b + 1) * hw, :]
            pooled.append(jnp.max(blk, axis=0, keepdims=True))     # AdaptiveMaxPool2d(1)
        pooled = jnp.concatenate(pooled, axis=0)                   # (2B, 64)
        hid = jnp.maximum(jnp.dot(pooled, aw1, preferred_element_type=f32), 0.0)
        mlp = jnp.dot(hid, aw2, preferred_element_type=f32)        # (2B, 64)
        attn = jax.nn.sigmoid(mlp[:BATCH, :] + mlp[BATCH:, :])     # (B, 64)
        full = jnp.concatenate(
            [jnp.broadcast_to(attn[b:b + 1, :], (hw, C4)) for b in range(BATCH)],
            axis=0)
        return act * full

    # ---------------- constant views (one packed slab, aligned slices) -------
    w1v = cw_ref[_OFF_W1V:_OFF_W1V + 36, :]
    w2v = cw_ref[_OFF_W2V:_OFF_W2V + 576, :]
    resw = cw_ref[_OFF_RESW:_OFF_RESW + 64, :]
    aw11 = cw_ref[_OFF_AW11:_OFF_AW11 + 64, :]
    aw21 = cw_ref[_OFF_AW21:_OFF_AW21 + 64, :]
    aw12 = cw_ref[_OFF_AW12:_OFF_AW12 + 64, :]
    aw22 = cw_ref[_OFF_AW22:_OFF_AW22 + 64, :]
    sc1 = cw_ref[_OFF_VEC + 0:_OFF_VEC + 1, :]
    sh1 = cw_ref[_OFF_VEC + 1:_OFF_VEC + 2, :]
    sc2 = cw_ref[_OFF_VEC + 2:_OFF_VEC + 3, :]
    sh2 = cw_ref[_OFF_VEC + 3:_OFF_VEC + 4, :]
    resb = cw_ref[_OFF_VEC + 4:_OFF_VEC + 5, :]
    h1m = hm_ref[:, 0:128]                                         # (128, 128)
    h2m = hm_ref[:, 128:160]                                       # (128, 32)

    # ---------------- layer 1: 4 waverons packed on the lane axis (64 ch) ----
    x1 = x1_ref[...]                                               # (128, 4)
    act1 = conv_bn_relu(x1, w1v, 8, sc1, sh1)                      # (128, 64)
    a1 = attend(act1, aw11, aw21, 64)

    # 'sum' aggregation over the 4 source waverons: pure lane folds (VPU)
    asum = (a1[:, 0:16] + a1[:, 16:32] + a1[:, 32:48] + a1[:, 48:64])   # (128, 16)
    # layer-1 haar DWT (+ folded softmax aggregation weights), all batches
    # and all 4 output bands in ONE dot
    h1 = jnp.dot(h1m, asum, preferred_element_type=f32)            # (128, 16)
    # band -> layer-2 input-channel-slot packing: pure lane placement
    x2 = jnp.concatenate([h1[32 * t:32 * (t + 1), :] for t in range(4)],
                         axis=1)                                   # (32, 64)

    # ---------------- layer 2: 4 waverons, residual 1x1 conv active ----------
    act2 = conv_bn_relu(x2, w2v, 4, sc2, sh2)                      # (32, 64)
    a2 = attend(act2, aw12, aw22, 16)
    res = jnp.dot(x2, resw, preferred_element_type=f32) + resb
    out2 = a2 + res                                                # (32, 64)

    # layer-2 haar DWT, all batches (padded to 8 rows per band/pos) in ONE dot
    h2 = jnp.dot(h2m, out2, preferred_element_type=f32)            # (128, 64)

    # ---------------- final FC: lane-dense (8, 1024) slab, single big-K dot --
    h2flat = jnp.concatenate([h2[BPAD * s:BPAD * (s + 1), :] for s in range(16)],
                             axis=1)                               # (8, 1024)
    fcw = fcp_ref[0:1024, :]
    fcb = fcp_ref[1024:1025, :]
    out_ref[...] = jnp.dot(h2flat, fcw, preferred_element_type=f32) + fcb


# =============================== parameter packing ============================
def pack_network(params):
    """Packs PyTorch-style per-waveron params into 3 VMEM-resident constant
    arrays (done once, outside jit):
      const64 (944, 64)  - conv taps / residual / attention / BN scale-shift
      haars   (128, 160) - fused layer-1 (softmax folded) + layer-2 haar mats
      fc      (1032, 10) - FC weight permuted to the packed band layout + bias
    """
    C = WAVERON_CHANNELS
    f32 = np.float32

    def bn_fold(p):
        s = np.asarray(p['bn_gamma']) / np.sqrt(np.asarray(p['bn_var']) + BN_EPS)
        sh = (np.asarray(p['conv_b']) * s + np.asarray(p['bn_beta'])
              - np.asarray(p['bn_mean']) * s)
        return s.astype(f32), sh.astype(f32)

    const64 = np.zeros((_CONST64_ROWS, 64), f32)

    # ---- layer 1 (Cin = 1 per waveron; packed conv input width 4)
    for w in range(4):
        p = params['waverons1'][w]
        assert np.asarray(p['att_w1']).shape[0] == 1, \
            "attention packing assumes channels // reduction == 1"
        cw_ = np.asarray(p['conv_w'])                      # (16, 1, 3, 3)
        for dy in range(3):
            for dx in range(3):
                t = dy * 3 + dx
                const64[_OFF_W1V + 4 * t + w, w * C:(w + 1) * C] = cw_[:, 0, dy, dx]
        s, sh = bn_fold(p)
        const64[_OFF_VEC + 0, w * C:(w + 1) * C] = s
        const64[_OFF_VEC + 1, w * C:(w + 1) * C] = sh
        const64[_OFF_AW11 + w * C:_OFF_AW11 + (w + 1) * C, w] = np.asarray(p['att_w1'])[0, :]
        const64[_OFF_AW21 + w, w * C:(w + 1) * C] = np.asarray(p['att_w2'])[:, 0]

    # ---- layer 2 (Cin = 16 per waveron; residual 1x1 conv active)
    for w in range(4):
        p = params['waverons2'][w]
        assert np.asarray(p['att_w1']).shape[0] == 1
        cw_ = np.asarray(p['conv_w'])                      # (16, 16, 3, 3)
        for dy in range(3):
            for dx in range(3):
                t = dy * 3 + dx
                const64[_OFF_W2V + 64 * t + w * C:_OFF_W2V + 64 * t + (w + 1) * C,
                        w * C:(w + 1) * C] = cw_[:, :, dy, dx].T          # [ci, co]
        s, sh = bn_fold(p)
        const64[_OFF_VEC + 2, w * C:(w + 1) * C] = s
        const64[_OFF_VEC + 3, w * C:(w + 1) * C] = sh
        const64[_OFF_AW12 + w * C:_OFF_AW12 + (w + 1) * C, w] = np.asarray(p['att_w1'])[0, :]
        const64[_OFF_AW22 + w, w * C:(w + 1) * C] = np.asarray(p['att_w2'])[:, 0]
        const64[_OFF_RESW + w * C:_OFF_RESW + (w + 1) * C,
                w * C:(w + 1) * C] = np.asarray(p['res_w'])[:, :, 0, 0].T
        const64[_OFF_VEC + 4, w * C:(w + 1) * C] = np.asarray(p['res_b'])

    # ---- fused haar matrices (batch folded into the K axis)
    # NOTE: at much larger batch these grow O(B^2); at BATCH=2 they are 80 KB
    # and fit every generation (incl. v7x's 64 MiB VMEM) with huge margin.
    ws = np.asarray(jax.nn.softmax(params['aggregation_weights'])).astype(f32)
    H1 = np.zeros((128, 128), f32)     # rows: t*32 + b*16 + (ho*4+wo); cols: b*64 + pos
    for t in range(4):
        for b in range(BATCH):
            for ho in range(4):
                for wo in range(4):
                    r = t * 32 + b * 16 + ho * 4 + wo
                    for kk, (dh, dw) in enumerate(_HAAR_TAPS):
                        col = b * 64 + (2 * ho + dh) * 8 + (2 * wo + dw)
                        H1[r, col] = _HAAR_COEFS[t, kk] * ws[t]
    H2 = np.zeros((128, 32), f32)      # rows: (t*4 + q2)*8 + b; cols: b*16 + pos
    for t in range(4):
        for ho in range(2):
            for wo in range(2):
                s_idx = t * 4 + ho * 2 + wo
                for b in range(BATCH):
                    r = s_idx * BPAD + b
                    for kk, (dh, dw) in enumerate(_HAAR_TAPS):
                        col = b * 16 + (2 * ho + dh) * 4 + (2 * wo + dw)
                        H2[r, col] = _HAAR_COEFS[t, kk]
    haars = np.concatenate([H1, H2], axis=1)               # (128, 160)

    # ---- FC weight pre-permuted to the kernel's packed (band, slot, chan) layout
    fw = np.asarray(params['fc_w']).astype(f32)            # (10, 1024)
    fw5 = fw.reshape(NUM_CLASSES, 4, 4, C, 4)              # (n, slot, band, c, q2)
    fcw_perm = fw5.transpose(2, 4, 1, 3, 0).reshape(16 * 4 * C, NUM_CLASSES)
    fcp = np.zeros((1032, NUM_CLASSES), f32)
    fcp[:1024] = fcw_perm
    fcp[1024] = np.asarray(params['fc_b'])

    packed = dict(const64=const64, haars=haars, fc=fcp)
    return {k: jnp.asarray(v) for k, v in packed.items()}


# =============================== forward (wrapper) ============================
def _haar_ref(x):
    a = x[:, :, 0::2, 0::2]
    b = x[:, :, 0::2, 1::2]
    c = x[:, :, 1::2, 0::2]
    d = x[:, :, 1::2, 1::2]
    return ((a + b + c + d) * 0.5, (a + b - c - d) * 0.5,
            (a - b + c - d) * 0.5, (a - b - c + d) * 0.5)


def _initial_band_pack(x):
    # Initial haar DWT of the (B, 1, 16, 16) input, packed as (B*64, 4): one
    # column per initial band / layer-1 waveron.  Tiny fused XLA prologue.
    bands = _haar_ref(x)                                   # each (B, 1, 8, 8)
    return jnp.stack([b.reshape(BATCH * 64) for b in bands], axis=1)


def wavenet_forward(packed, x):
    x1 = _initial_band_pack(x).astype(jnp.float32)
    logits_pad = pl.pallas_call(
        _wavenet_kernel,
        out_shape=jax.ShapeDtypeStruct((BPAD, NUM_CLASSES), jnp.float32),
        in_specs=[_VMEM] * 4,
        out_specs=_VMEM,
    )(x1, packed['const64'], packed['haars'], packed['fc'])
    return logits_pad[:BATCH]


# =============================== parameters ===================================
def init_params(key):
    C = WAVERON_CHANNELS
    Cr = max(C // REDUCTION, 1)
    keys = jax.random.split(key, 16)

    def init_waveron(k, cin, cout, use_residual):
        ks = jax.random.split(k, 9)
        p = {
            'conv_w': 0.2 * jax.random.normal(ks[0], (cout, cin, KERNEL_SIZE, KERNEL_SIZE), jnp.float32),
            'conv_b': 0.1 * jax.random.normal(ks[1], (cout,), jnp.float32),
            'bn_gamma': 1.0 + 0.1 * jax.random.normal(ks[2], (cout,), jnp.float32),
            'bn_beta': 0.1 * jax.random.normal(ks[3], (cout,), jnp.float32),
            'bn_mean': 0.1 * jax.random.normal(ks[4], (cout,), jnp.float32),
            'bn_var': jnp.ones((cout,), jnp.float32),
            'att_w1': 0.3 * jax.random.normal(ks[5], (Cr, cout), jnp.float32),
            'att_w2': 0.3 * jax.random.normal(ks[6], (cout, Cr), jnp.float32),
        }
        if use_residual:
            p['res_w'] = 0.2 * jax.random.normal(ks[7], (cout, cin, 1, 1), jnp.float32)
            p['res_b'] = 0.1 * jax.random.normal(ks[8], (cout,), jnp.float32)
        return p

    h_final = INPUT_HW[0] // 8
    w_final = INPUT_HW[1] // 8
    total_fc_in = 16 * C * h_final * w_final

    return {
        'aggregation_weights': jnp.ones((4,), jnp.float32) / 4.0,
        'waverons1': [init_waveron(keys[i], IN_CHANNELS, C, False) for i in range(4)],
        'waverons2': [init_waveron(keys[4 + i], C, C, True) for i in range(4)],
        'fc_w': 0.05 * jax.random.normal(keys[8], (NUM_CLASSES, total_fc_in), jnp.float32),
        'fc_b': 0.05 * jax.random.normal(keys[9], (NUM_CLASSES,), jnp.float32),
    }


# =============================== pure-JAX reference ===========================
def _waveron_ref(x, p, use_residual):
    y = jax.lax.conv_general_dilated(x, p['conv_w'], (1, 1), 'SAME',
                                     dimension_numbers=('NCHW', 'OIHW', 'NCHW'),
                                     precision=_HI)
    y = y + p['conv_b'][None, :, None, None]
    s = p['bn_gamma'] / jnp.sqrt(p['bn_var'] + BN_EPS)
    y = y * s[None, :, None, None] + (p['bn_beta'] - p['bn_mean'] * s)[None, :, None, None]
    y = jnp.maximum(y, 0.0)
    avg = jnp.mean(y, axis=(2, 3))
    mx = jnp.max(y, axis=(2, 3))

    def mlp(v):
        h = jnp.maximum(jnp.dot(v, p['att_w1'].T, precision=_HI), 0.0)
        return jnp.dot(h, p['att_w2'].T, precision=_HI)

    attn = jax.nn.sigmoid(mlp(avg) + mlp(mx))
    y = y * attn[:, :, None, None]
    if use_residual:
        r = jax.lax.conv_general_dilated(x, p['res_w'], (1, 1), 'VALID',
                                         dimension_numbers=('NCHW', 'OIHW', 'NCHW'),
                                         precision=_HI)
        y = y + r + p['res_b'][None, :, None, None]
    return _haar_ref(y)


def wavenet_forward_ref(params, x):
    B = x.shape[0]
    initial_bands = list(_haar_ref(x))
    w1_by_type = [[], [], [], []]
    for i in range(4):
        outs = _waveron_ref(initial_bands[i], params['waverons1'][i], False)
        for t in range(4):
            w1_by_type[t].append(outs[t])
    ws = jax.nn.softmax(params['aggregation_weights'])
    aggregated = [ws[t] * sum(w1_by_type[t]) for t in range(4)]
    finals = []
    for i in range(4):
        finals.extend(_waveron_ref(aggregated[i], params['waverons2'][i], True))
    feats = jnp.concatenate([f.reshape(B, -1) for f in finals], axis=1)
    return jnp.dot(feats, params['fc_w'].T, precision=_HI) + params['fc_b']


# =============================== main =========================================
if __name__ == "__main__":
    key = jax.random.PRNGKey(0)
    pkey, xkey = jax.random.split(key)
    params = init_params(pkey)
    x = jax.random.normal(xkey, (BATCH, IN_CHANNELS) + INPUT_HW, jnp.float32)

    packed = pack_network(params)
    fwd = jax.jit(wavenet_forward)
    logits = fwd(packed, x)
    jax.block_until_ready(logits)

    ref = wavenet_forward_ref(params, x)
    assert logits.shape == (BATCH, NUM_CLASSES)
    err = float(jnp.max(jnp.abs(logits - ref)))
    assert err < 1e-3, f"mismatch vs pure-JAX reference: {err}"
    print("KERNEL_OK")
</pallas_src>

<mosaic_0001>
module attributes {stable_mosaic.version = 11 : i64} {
  func.func @_wavenet_kernel(%arg0: memref<128x4xf32, #tpu.memory_space<vmem>>, %arg1: memref<944x64xf32, #tpu.memory_space<vmem>>, %arg2: memref<128x160xf32, #tpu.memory_space<vmem>>, %arg3: memref<1032x10xf32, #tpu.memory_space<vmem>>, %arg4: memref<8x10xf32, #tpu.memory_space<vmem>>) attributes {dimension_semantics = [], scalar_prefetch = 0 : i64, scratch_operands = 0 : i64, tpu.core_type = #tpu.core_type<tc>} {
    %c0 = arith.constant 0 : index
    %c0_0 = arith.constant 0 : index
    %0 = vector.load %arg1[%c0, %c0_0] : memref<944x64xf32, #tpu.memory_space<vmem>>, vector<36x64xf32>
    %c40 = arith.constant 40 : index
    %c0_1 = arith.constant 0 : index
    %1 = vector.load %arg1[%c40, %c0_1] : memref<944x64xf32, #tpu.memory_space<vmem>>, vector<576x64xf32>
    %c616 = arith.constant 616 : index
    %c0_2 = arith.constant 0 : index
    %2 = vector.load %arg1[%c616, %c0_2] : memref<944x64xf32, #tpu.memory_space<vmem>>, vector<64x64xf32>
    %c680 = arith.constant 680 : index
    %c0_3 = arith.constant 0 : index
    %3 = vector.load %arg1[%c680, %c0_3] : memref<944x64xf32, #tpu.memory_space<vmem>>, vector<64x64xf32>
    %c744 = arith.constant 744 : index
    %c0_4 = arith.constant 0 : index
    %4 = vector.load %arg1[%c744, %c0_4] : memref<944x64xf32, #tpu.memory_space<vmem>>, vector<64x64xf32>
    %c808 = arith.constant 808 : index
    %c0_5 = arith.constant 0 : index
    %5 = vector.load %arg1[%c808, %c0_5] : memref<944x64xf32, #tpu.memory_space<vmem>>, vector<64x64xf32>
    %c872 = arith.constant 872 : index
    %c0_6 = arith.constant 0 : index
    %6 = vector.load %arg1[%c872, %c0_6] : memref<944x64xf32, #tpu.memory_space<vmem>>, vector<64x64xf32>
    %c936 = arith.constant 936 : index
    %c0_7 = arith.constant 0 : index
    %7 = vector.load %arg1[%c936, %c0_7] : memref<944x64xf32, #tpu.memory_space<vmem>>, vector<1x64xf32>
    %c937 = arith.constant 937 : index
    %c0_8 = arith.constant 0 : index
    %8 = vector.load %arg1[%c937, %c0_8] : memref<944x64xf32, #tpu.memory_space<vmem>>, vector<1x64xf32>
    %c938 = arith.constant 938 : index
    %c0_9 = arith.constant 0 : index
    %9 = vector.load %arg1[%c938, %c0_9] : memref<944x64xf32, #tpu.memory_space<vmem>>, vector<1x64xf32>
    %c939 = arith.constant 939 : index
    %c0_10 = arith.constant 0 : index
    %10 = vector.load %arg1[%c939, %c0_10] : memref<944x64xf32, #tpu.memory_space<vmem>>, vector<1x64xf32>
    %c940 = arith.constant 940 : index
    %c0_11 = arith.constant 0 : index
    %11 = vector.load %arg1[%c940, %c0_11] : memref<944x64xf32, #tpu.memory_space<vmem>>, vector<1x64xf32>
    %c0_12 = arith.constant 0 : index
    %c0_13 = arith.constant 0 : index
    %12 = vector.load %arg2[%c0_12, %c0_13] : memref<128x160xf32, #tpu.memory_space<vmem>>, vector<128x128xf32>
    %c0_14 = arith.constant 0 : index
    %c128 = arith.constant 128 : index
    %13 = vector.load %arg2[%c0_14, %c128] : memref<128x160xf32, #tpu.memory_space<vmem>>, vector<128x32xf32>
    %c0_15 = arith.constant 0 : index
    %c0_16 = arith.constant 0 : index
    %14 = vector.load %arg0[%c0_15, %c0_16] : memref<128x4xf32, #tpu.memory_space<vmem>>, vector<128x4xf32>
    %15 = tpu.iota {dimensions = array<i32: 0>} : vector<128x1xi32>
    %c7_i32 = arith.constant 7 : i32
    %16 = vector.broadcast %c7_i32 : i32 to vector<128x1xi32>
    %17 = arith.andi %15, %16 : vector<128x1xi32>
    %c3_i32 = arith.constant 3 : i32
    %18 = vector.broadcast %c3_i32 : i32 to vector<128x1xi32>
    %19 = arith.shrsi %15, %18 : vector<128x1xi32>
    %c7_i32_17 = arith.constant 7 : i32
    %20 = vector.broadcast %c7_i32_17 : i32 to vector<128x1xi32>
    %21 = arith.andi %19, %20 : vector<128x1xi32>
    %22 = vector.extract_strided_slice %14 {offsets = [119, 0], sizes = [9, 4], strides = [1, 1]} : vector<128x4xf32> to vector<9x4xf32>
    %23 = vector.extract_strided_slice %14 {offsets = [0, 0], sizes = [119, 4], strides = [1, 1]} : vector<128x4xf32> to vector<119x4xf32>
    %24 = tpu.concatenate %22, %23 in 0 : vector<9x4xf32>, vector<119x4xf32> -> vector<128x4xf32>
    %c1_i32 = arith.constant 1 : i32
    %25 = vector.broadcast %c1_i32 : i32 to vector<128x1xi32>
    %26 = arith.cmpi sge, %21, %25 : vector<128x1xi32>
    %c1_i32_18 = arith.constant 1 : i32
    %27 = vector.broadcast %c1_i32_18 : i32 to vector<128x1xi32>
    %28 = arith.cmpi sge, %17, %27 : vector<128x1xi32>
    %29 = arith.andi %26, %28 : vector<128x1xi1>
    %30 = arith.extui %29 : vector<128x1xi1> to vector<128x1xi32>
    %31 = arith.sitofp %30 : vector<128x1xi32> to vector<128x1xf32>
    %32 = vector.broadcast %31 : vector<128x1xf32> to vector<128x4xf32>
    %33 = arith.mulf %24, %32 : vector<128x4xf32>
    %34 = vector.extract_strided_slice %14 {offsets = [120, 0], sizes = [8, 4], strides = [1, 1]} : vector<128x4xf32> to vector<8x4xf32>
    %35 = vector.extract_strided_slice %14 {offsets = [0, 0], sizes = [120, 4], strides = [1, 1]} : vector<128x4xf32> to vector<120x4xf32>
    %36 = tpu.concatenate %34, %35 in 0 : vector<8x4xf32>, vector<120x4xf32> -> vector<128x4xf32>
    %c1_i32_19 = arith.constant 1 : i32
    %37 = vector.broadcast %c1_i32_19 : i32 to vector<128x1xi32>
    %38 = arith.cmpi sge, %21, %37 : vector<128x1xi32>
    %39 = arith.extui %38 : vector<128x1xi1> to vector<128x1xi32>
    %40 = arith.sitofp %39 : vector<128x1xi32> to vector<128x1xf32>
    %41 = vector.broadcast %40 : vector<128x1xf32> to vector<128x4xf32>
    %42 = arith.mulf %36, %41 : vector<128x4xf32>
    %43 = vector.extract_strided_slice %14 {offsets = [121, 0], sizes = [7, 4], strides = [1, 1]} : vector<128x4xf32> to vector<7x4xf32>
    %44 = vector.extract_strided_slice %14 {offsets = [0, 0], sizes = [121, 4], strides = [1, 1]} : vector<128x4xf32> to vector<121x4xf32>
    %45 = tpu.concatenate %43, %44 in 0 : vector<7x4xf32>, vector<121x4xf32> -> vector<128x4xf32>
    %c1_i32_20 = arith.constant 1 : i32
    %46 = vector.broadcast %c1_i32_20 : i32 to vector<128x1xi32>
    %47 = arith.cmpi sge, %21, %46 : vector<128x1xi32>
    %c6_i32 = arith.constant 6 : i32
    %48 = vector.broadcast %c6_i32 : i32 to vector<128x1xi32>
    %49 = arith.cmpi sle, %17, %48 : vector<128x1xi32>
    %50 = arith.andi %47, %49 : vector<128x1xi1>
    %51 = arith.extui %50 : vector<128x1xi1> to vector<128x1xi32>
    %52 = arith.sitofp %51 : vector<128x1xi32> to vector<128x1xf32>
    %53 = vector.broadcast %52 : vector<128x1xf32> to vector<128x4xf32>
    %54 = arith.mulf %45, %53 : vector<128x4xf32>
    %55 = vector.extract_strided_slice %14 {offsets = [127, 0], sizes = [1, 4], strides = [1, 1]} : vector<128x4xf32> to vector<1x4xf32>
    %56 = vector.extract_strided_slice %14 {offsets = [0, 0], sizes = [127, 4], strides = [1, 1]} : vector<128x4xf32> to vector<127x4xf32>
    %57 = tpu.concatenate %55, %56 in 0 : vector<1x4xf32>, vector<127x4xf32> -> vector<128x4xf32>
    %c1_i32_21 = arith.constant 1 : i32
    %58 = vector.broadcast %c1_i32_21 : i32 to vector<128x1xi32>
    %59 = arith.cmpi sge, %17, %58 : vector<128x1xi32>
    %60 = arith.extui %59 : vector<128x1xi1> to vector<128x1xi32>
    %61 = arith.sitofp %60 : vector<128x1xi32> to vector<128x1xf32>
    %62 = vector.broadcast %61 : vector<128x1xf32> to vector<128x4xf32>
    %63 = arith.mulf %57, %62 : vector<128x4xf32>
    %64 = vector.extract_strided_slice %14 {offsets = [1, 0], sizes = [127, 4], strides = [1, 1]} : vector<128x4xf32> to vector<127x4xf32>
    %65 = vector.extract_strided_slice %14 {offsets = [0, 0], sizes = [1, 4], strides = [1, 1]} : vector<128x4xf32> to vector<1x4xf32>
    %66 = tpu.concatenate %64, %65 in 0 : vector<127x4xf32>, vector<1x4xf32> -> vector<128x4xf32>
    %c6_i32_22 = arith.constant 6 : i32
    %67 = vector.broadcast %c6_i32_22 : i32 to vector<128x1xi32>
    %68 = arith.cmpi sle, %17, %67 : vector<128x1xi32>
    %69 = arith.extui %68 : vector<128x1xi1> to vector<128x1xi32>
    %70 = arith.sitofp %69 : vector<128x1xi32> to vector<128x1xf32>
    %71 = vector.broadcast %70 : vector<128x1xf32> to vector<128x4xf32>
    %72 = arith.mulf %66, %71 : vector<128x4xf32>
    %73 = vector.extract_strided_slice %14 {offsets = [7, 0], sizes = [121, 4], strides = [1, 1]} : vector<128x4xf32> to vector<121x4xf32>
    %74 = vector.extract_strided_slice %14 {offsets = [0, 0], sizes = [7, 4], strides = [1, 1]} : vector<128x4xf32> to vector<7x4xf32>
    %75 = tpu.concatenate %73, %74 in 0 : vector<121x4xf32>, vector<7x4xf32> -> vector<128x4xf32>
    %c6_i32_23 = arith.constant 6 : i32
    %76 = vector.broadcast %c6_i32_23 : i32 to vector<128x1xi32>
    %77 = arith.cmpi sle, %21, %76 : vector<128x1xi32>
    %c1_i32_24 = arith.constant 1 : i32
    %78 = vector.broadcast %c1_i32_24 : i32 to vector<128x1xi32>
    %79 = arith.cmpi sge, %17, %78 : vector<128x1xi32>
    %80 = arith.andi %77, %79 : vector<128x1xi1>
    %81 = arith.extui %80 : vector<128x1xi1> to vector<128x1xi32>
    %82 = arith.sitofp %81 : vector<128x1xi32> to vector<128x1xf32>
    %83 = vector.broadcast %82 : vector<128x1xf32> to vector<128x4xf32>
    %84 = arith.mulf %75, %83 : vector<128x4xf32>
    %85 = vector.extract_strided_slice %14 {offsets = [8, 0], sizes = [120, 4], strides = [1, 1]} : vector<128x4xf32> to vector<120x4xf32>
    %86 = vector.extract_strided_slice %14 {offsets = [0, 0], sizes = [8, 4], strides = [1, 1]} : vector<128x4xf32> to vector<8x4xf32>
    %87 = tpu.concatenate %85, %86 in 0 : vector<120x4xf32>, vector<8x4xf32> -> vector<128x4xf32>
    %c6_i32_25 = arith.constant 6 : i32
    %88 = vector.broadcast %c6_i32_25 : i32 to vector<128x1xi32>
    %89 = arith.cmpi sle, %21, %88 : vector<128x1xi32>
    %90 = arith.extui %89 : vector<128x1xi1> to vector<128x1xi32>
    %91 = arith.sitofp %90 : vector<128x1xi32> to vector<128x1xf32>
    %92 = vector.broadcast %91 : vector<128x1xf32> to vector<128x4xf32>
    %93 = arith.mulf %87, %92 : vector<128x4xf32>
    %94 = vector.extract_strided_slice %14 {offsets = [9, 0], sizes = [119, 4], strides = [1, 1]} : vector<128x4xf32> to vector<119x4xf32>
    %95 = vector.extract_strided_slice %14 {offsets = [0, 0], sizes = [9, 4], strides = [1, 1]} : vector<128x4xf32> to vector<9x4xf32>
    %96 = tpu.concatenate %94, %95 in 0 : vector<119x4xf32>, vector<9x4xf32> -> vector<128x4xf32>
    %c6_i32_26 = arith.constant 6 : i32
    %97 = vector.broadcast %c6_i32_26 : i32 to vector<128x1xi32>
    %98 = arith.cmpi sle, %21, %97 : vector<128x1xi32>
    %c6_i32_27 = arith.constant 6 : i32
    %99 = vector.broadcast %c6_i32_27 : i32 to vector<128x1xi32>
    %100 = arith.cmpi sle, %17, %99 : vector<128x1xi32>
    %101 = arith.andi %98, %100 : vector<128x1xi1>
    %102 = arith.extui %101 : vector<128x1xi1> to vector<128x1xi32>
    %103 = arith.sitofp %102 : vector<128x1xi32> to vector<128x1xf32>
    %104 = vector.broadcast %103 : vector<128x1xf32> to vector<128x4xf32>
    %105 = arith.mulf %96, %104 : vector<128x4xf32>
    %106 = tpu.concatenate %33, %42, %54, %63, %14, %72, %84, %93, %105 in 1 : vector<128x4xf32>, vector<128x4xf32>, vector<128x4xf32>, vector<128x4xf32>, vector<128x4xf32>, vector<128x4xf32>, vector<128x4xf32>, vector<128x4xf32>, vector<128x4xf32> -> vector<128x36xf32>
    %cst = arith.constant dense<0.000000e+00> : vector<128x64xf32>
    %107 = tpu.matmul %106, %0, %cst {dimension_numbers = #tpu.dot_dimension_numbers<[1], [0], [0], [1], [0, 0, 1, 1], [], []>} : vector<128x36xf32>, vector<36x64xf32>, vector<128x64xf32> -> vector<128x64xf32>
    %108 = vector.broadcast %7 : vector<1x64xf32> to vector<128x64xf32>
    %109 = arith.mulf %107, %108 : vector<128x64xf32>
    %110 = vector.broadcast %8 : vector<1x64xf32> to vector<128x64xf32>
    %111 = arith.addf %109, %110 : vector<128x64xf32>
    %cst_28 = arith.constant 0.000000e+00 : f32
    %112 = vector.broadcast %cst_28 : f32 to vector<128x64xf32>
    %113 = arith.maximumf %111, %112 : vector<128x64xf32>
    %114 = vector.extract_strided_slice %113 {offsets = [0, 0], sizes = [64, 64], strides = [1, 1]} : vector<128x64xf32> to vector<64x64xf32>
    %cst_29 = arith.constant dense<0.000000e+00> : vector<64xf32>
    %115 = vector.multi_reduction <add>, %114, %cst_29 [0] : vector<64x64xf32> to vector<64xf32>
    %116 = vector.shape_cast %115 : vector<64xf32> to vector<1x64xf32>
    %cst_30 = arith.constant 6.400000e+01 : f32
    %117 = vector.broadcast %cst_30 : f32 to vector<1x64xf32>
    %118 = arith.divf %116, %117 : vector<1x64xf32>
    %119 = vector.extract_strided_slice %113 {offsets = [64, 0], sizes = [64, 64], strides = [1, 1]} : vector<128x64xf32> to vector<64x64xf32>
    %cst_31 = arith.constant dense<0.000000e+00> : vector<64xf32>
    %120 = vector.multi_reduction <add>, %119, %cst_31 [0] : vector<64x64xf32> to vector<64xf32>
    %121 = vector.shape_cast %120 : vector<64xf32> to vector<1x64xf32>
    %cst_32 = arith.constant 6.400000e+01 : f32
    %122 = vector.broadcast %cst_32 : f32 to vector<1x64xf32>
    %123 = arith.divf %121, %122 : vector<1x64xf32>
    %124 = vector.extract_strided_slice %113 {offsets = [0, 0], sizes = [64, 64], strides = [1, 1]} : vector<128x64xf32> to vector<64x64xf32>
    %cst_33 = arith.constant dense<0xFF800000> : vector<64xf32>
    %125 = vector.multi_reduction <maximumf>, %124, %cst_33 [0] : vector<64x64xf32> to vector<64xf32>
    %126 = vector.shape_cast %125 : vector<64xf32> to vector<1x64xf32>
    %127 = vector.extract_strided_slice %113 {offsets = [64, 0], sizes = [64, 64], strides = [1, 1]} : vector<128x64xf32> to vector<64x64xf32>
    %cst_34 = arith.constant dense<0xFF800000> : vector<64xf32>
    %128 = vector.multi_reduction <maximumf>, %127, %cst_34 [0] : vector<64x64xf32> to vector<64xf32>
    %129 = vector.shape_cast %128 : vector<64xf32> to vector<1x64xf32>
    %130 = tpu.concatenate %118, %123, %126, %129 in 0 : vector<1x64xf32>, vector<1x64xf32>, vector<1x64xf32>, vector<1x64xf32> -> vector<4x64xf32>
    %cst_35 = arith.constant dense<0.000000e+00> : vector<4x64xf32>
    %131 = tpu.matmul %130, %3, %cst_35 {dimension_numbers = #tpu.dot_dimension_numbers<[1], [0], [0], [1], [0, 0, 1, 1], [], []>} : vector<4x64xf32>, vector<64x64xf32>, vector<4x64xf32> -> vector<4x64xf32>
    %cst_36 = arith.constant 0.000000e+00 : f32
    %132 = vector.broadcast %cst_36 : f32 to vector<4x64xf32>
    %133 = arith.maximumf %131, %132 : vector<4x64xf32>
    %cst_37 = arith.constant dense<0.000000e+00> : vector<4x64xf32>
    %134 = tpu.matmul %133, %4, %cst_37 {dimension_numbers = #tpu.dot_dimension_numbers<[1], [0], [0], [1], [0, 0, 1, 1], [], []>} : vector<4x64xf32>, vector<64x64xf32>, vector<4x64xf32> -> vector<4x64xf32>
    %135 = vector.extract_strided_slice %134 {offsets = [0, 0], sizes = [2, 64], strides = [1, 1]} : vector<4x64xf32> to vector<2x64xf32>
    %136 = vector.extract_strided_slice %134 {offsets = [2, 0], sizes = [2, 64], strides = [1, 1]} : vector<4x64xf32> to vector<2x64xf32>
    %137 = arith.addf %135, %136 : vector<2x64xf32>
    %138 = arith.negf %137 : vector<2x64xf32>
    %139 = math.exp %138 : vector<2x64xf32>
    %cst_38 = arith.constant 1.000000e+00 : f32
    %140 = vector.broadcast %cst_38 : f32 to vector<2x64xf32>
    %141 = arith.addf %140, %139 : vector<2x64xf32>
    %142 = arith.divf %140, %141 : vector<2x64xf32>
    %143 = vector.extract_strided_slice %142 {offsets = [0, 0], sizes = [1, 64], strides = [1, 1]} : vector<2x64xf32> to vector<1x64xf32>
    %144 = vector.shape_cast %143 : vector<1x64xf32> to vector<1x64xf32>
    %145 = vector.broadcast %144 : vector<1x64xf32> to vector<64x64xf32>
    %146 = vector.extract_strided_slice %142 {offsets = [1, 0], sizes = [1, 64], strides = [1, 1]} : vector<2x64xf32> to vector<1x64xf32>
    %147 = vector.shape_cast %146 : vector<1x64xf32> to vector<1x64xf32>
    %148 = vector.broadcast %147 : vector<1x64xf32> to vector<64x64xf32>
    %149 = tpu.concatenate %145, %148 in 0 : vector<64x64xf32>, vector<64x64xf32> -> vector<128x64xf32>
    %150 = arith.mulf %113, %149 : vector<128x64xf32>
    %151 = vector.extract_strided_slice %150 {offsets = [0, 0], sizes = [128, 16], strides = [1, 1]} : vector<128x64xf32> to vector<128x16xf32>
    %152 = vector.extract_strided_slice %150 {offsets = [0, 16], sizes = [128, 16], strides = [1, 1]} : vector<128x64xf32> to vector<128x16xf32>
    %153 = arith.addf %151, %152 : vector<128x16xf32>
    %154 = vector.extract_strided_slice %150 {offsets = [0, 32], sizes = [128, 16], strides = [1, 1]} : vector<128x64xf32> to vector<128x16xf32>
    %155 = arith.addf %153, %154 : vector<128x16xf32>
    %156 = vector.extract_strided_slice %150 {offsets = [0, 48], sizes = [128, 16], strides = [1, 1]} : vector<128x64xf32> to vector<128x16xf32>
    %157 = arith.addf %155, %156 : vector<128x16xf32>
    %cst_39 = arith.constant dense<0.000000e+00> : vector<128x16xf32>
    %158 = tpu.matmul %12, %157, %cst_39 {dimension_numbers = #tpu.dot_dimension_numbers<[1], [0], [0], [1], [0, 0, 1, 1], [], []>} : vector<128x128xf32>, vector<128x16xf32>, vector<128x16xf32> -> vector<128x16xf32>
    %159 = vector.extract_strided_slice %158 {offsets = [0, 0], sizes = [32, 16], strides = [1, 1]} : vector<128x16xf32> to vector<32x16xf32>
    %160 = vector.extract_strided_slice %158 {offsets = [32, 0], sizes = [32, 16], strides = [1, 1]} : vector<128x16xf32> to vector<32x16xf32>
    %161 = vector.extract_strided_slice %158 {offsets = [64, 0], sizes = [32, 16], strides = [1, 1]} : vector<128x16xf32> to vector<32x16xf32>
    %162 = vector.extract_strided_slice %158 {offsets = [96, 0], sizes = [32, 16], strides = [1, 1]} : vector<128x16xf32> to vector<32x16xf32>
    %163 = tpu.concatenate %159, %160, %161, %162 in 1 : vector<32x16xf32>, vector<32x16xf32>, vector<32x16xf32>, vector<32x16xf32> -> vector<32x64xf32>
    %164 = tpu.iota {dimensions = array<i32: 0>} : vector<32x1xi32>
    %c3_i32_40 = arith.constant 3 : i32
    %165 = vector.broadcast %c3_i32_40 : i32 to vector<32x1xi32>
    %166 = arith.andi %164, %165 : vector<32x1xi32>
    %c2_i32 = arith.constant 2 : i32
    %167 = vector.broadcast %c2_i32 : i32 to vector<32x1xi32>
    %168 = arith.shrsi %164, %167 : vector<32x1xi32>
    %c3_i32_41 = arith.constant 3 : i32
    %169 = vector.broadcast %c3_i32_41 : i32 to vector<32x1xi32>
    %170 = arith.andi %168, %169 : vector<32x1xi32>
    %171 = vector.extract_strided_slice %163 {offsets = [27, 0], sizes = [5, 64], strides = [1, 1]} : vector<32x64xf32> to vector<5x64xf32>
    %172 = vector.extract_strided_slice %163 {offsets = [0, 0], sizes = [27, 64], strides = [1, 1]} : vector<32x64xf32> to vector<27x64xf32>
    %173 = tpu.concatenate %171, %172 in 0 : vector<5x64xf32>, vector<27x64xf32> -> vector<32x64xf32>
    %c1_i32_42 = arith.constant 1 : i32
    %174 = vector.broadcast %c1_i32_42 : i32 to vector<32x1xi32>
    %175 = arith.cmpi sge, %170, %174 : vector<32x1xi32>
    %c1_i32_43 = arith.constant 1 : i32
    %176 = vector.broadcast %c1_i32_43 : i32 to vector<32x1xi32>
    %177 = arith.cmpi sge, %166, %176 : vector<32x1xi32>
    %178 = arith.andi %175, %177 : vector<32x1xi1>
    %179 = arith.extui %178 : vector<32x1xi1> to vector<32x1xi32>
    %180 = arith.sitofp %179 : vector<32x1xi32> to vector<32x1xf32>
    %181 = vector.broadcast %180 : vector<32x1xf32> to vector<32x64xf32>
    %182 = arith.mulf %173, %181 : vector<32x64xf32>
    %183 = vector.extract_strided_slice %163 {offsets = [28, 0], sizes = [4, 64], strides = [1, 1]} : vector<32x64xf32> to vector<4x64xf32>
    %184 = vector.extract_strided_slice %163 {offsets = [0, 0], sizes = [28, 64], strides = [1, 1]} : vector<32x64xf32> to vector<28x64xf32>
    %185 = tpu.concatenate %183, %184 in 0 : vector<4x64xf32>, vector<28x64xf32> -> vector<32x64xf32>
    %c1_i32_44 = arith.constant 1 : i32
    %186 = vector.broadcast %c1_i32_44 : i32 to vector<32x1xi32>
    %187 = arith.cmpi sge, %170, %186 : vector<32x1xi32>
    %188 = arith.extui %187 : vector<32x1xi1> to vector<32x1xi32>
    %189 = arith.sitofp %188 : vector<32x1xi32> to vector<32x1xf32>
    %190 = vector.broadcast %189 : vector<32x1xf32> to vector<32x64xf32>
    %191 = arith.mulf %185, %190 : vector<32x64xf32>
    %192 = vector.extract_strided_slice %163 {offsets = [29, 0], sizes = [3, 64], strides = [1, 1]} : vector<32x64xf32> to vector<3x64xf32>
    %193 = vector.extract_strided_slice %163 {offsets = [0, 0], sizes = [29, 64], strides = [1, 1]} : vector<32x64xf32> to vector<29x64xf32>
    %194 = tpu.concatenate %192, %193 in 0 : vector<3x64xf32>, vector<29x64xf32> -> vector<32x64xf32>
    %c1_i32_45 = arith.constant 1 : i32
    %195 = vector.broadcast %c1_i32_45 : i32 to vector<32x1xi32>
    %196 = arith.cmpi sge, %170, %195 : vector<32x1xi32>
    %c2_i32_46 = arith.constant 2 : i32
    %197 = vector.broadcast %c2_i32_46 : i32 to vector<32x1xi32>
    %198 = arith.cmpi sle, %166, %197 : vector<32x1xi32>
    %199 = arith.andi %196, %198 : vector<32x1xi1>
    %200 = arith.extui %199 : vector<32x1xi1> to vector<32x1xi32>
    %201 = arith.sitofp %200 : vector<32x1xi32> to vector<32x1xf32>
    %202 = vector.broadcast %201 : vector<32x1xf32> to vector<32x64xf32>
    %203 = arith.mulf %194, %202 : vector<32x64xf32>
    %204 = vector.extract_strided_slice %163 {offsets = [31, 0], sizes = [1, 64], strides = [1, 1]} : vector<32x64xf32> to vector<1x64xf32>
    %205 = vector.extract_strided_slice %163 {offsets = [0, 0], sizes = [31, 64], strides = [1, 1]} : vector<32x64xf32> to vector<31x64xf32>
    %206 = tpu.concatenate %204, %205 in 0 : vector<1x64xf32>, vector<31x64xf32> -> vector<32x64xf32>
    %c1_i32_47 = arith.constant 1 : i32
    %207 = vector.broadcast %c1_i32_47 : i32 to vector<32x1xi32>
    %208 = arith.cmpi sge, %166, %207 : vector<32x1xi32>
    %209 = arith.extui %208 : vector<32x1xi1> to vector<32x1xi32>
    %210 = arith.sitofp %209 : vector<32x1xi32> to vector<32x1xf32>
    %211 = vector.broadcast %210 : vector<32x1xf32> to vector<32x64xf32>
    %212 = arith.mulf %206, %211 : vector<32x64xf32>
    %213 = vector.extract_strided_slice %163 {offsets = [1, 0], sizes = [31, 64], strides = [1, 1]} : vector<32x64xf32> to vector<31x64xf32>
    %214 = vector.extract_strided_slice %163 {offsets = [0, 0], sizes = [1, 64], strides = [1, 1]} : vector<32x64xf32> to vector<1x64xf32>
    %215 = tpu.concatenate %213, %214 in 0 : vector<31x64xf32>, vector<1x64xf32> -> vector<32x64xf32>
    %c2_i32_48 = arith.constant 2 : i32
    %216 = vector.broadcast %c2_i32_48 : i32 to vector<32x1xi32>
    %217 = arith.cmpi sle, %166, %216 : vector<32x1xi32>
    %218 = arith.extui %217 : vector<32x1xi1> to vector<32x1xi32>
    %219 = arith.sitofp %218 : vector<32x1xi32> to vector<32x1xf32>
    %220 = vector.broadcast %219 : vector<32x1xf32> to vector<32x64xf32>
    %221 = arith.mulf %215, %220 : vector<32x64xf32>
    %222 = vector.extract_strided_slice %163 {offsets = [3, 0], sizes = [29, 64], strides = [1, 1]} : vector<32x64xf32> to vector<29x64xf32>
    %223 = vector.extract_strided_slice %163 {offsets = [0, 0], sizes = [3, 64], strides = [1, 1]} : vector<32x64xf32> to vector<3x64xf32>
    %224 = tpu.concatenate %222, %223 in 0 : vector<29x64xf32>, vector<3x64xf32> -> vector<32x64xf32>
    %c2_i32_49 = arith.constant 2 : i32
    %225 = vector.broadcast %c2_i32_49 : i32 to vector<32x1xi32>
    %226 = arith.cmpi sle, %170, %225 : vector<32x1xi32>
    %c1_i32_50 = arith.constant 1 : i32
    %227 = vector.broadcast %c1_i32_50 : i32 to vector<32x1xi32>
    %228 = arith.cmpi sge, %166, %227 : vector<32x1xi32>
    %229 = arith.andi %226, %228 : vector<32x1xi1>
    %230 = arith.extui %229 : vector<32x1xi1> to vector<32x1xi32>
    %231 = arith.sitofp %230 : vector<32x1xi32> to vector<32x1xf32>
    %232 = vector.broadcast %231 : vector<32x1xf32> to vector<32x64xf32>
    %233 = arith.mulf %224, %232 : vector<32x64xf32>
    %234 = vector.extract_strided_slice %163 {offsets = [4, 0], sizes = [28, 64], strides = [1, 1]} : vector<32x64xf32> to vector<28x64xf32>
    %235 = vector.extract_strided_slice %163 {offsets = [0, 0], sizes = [4, 64], strides = [1, 1]} : vector<32x64xf32> to vector<4x64xf32>
    %236 = tpu.concatenate %234, %235 in 0 : vector<28x64xf32>, vector<4x64xf32> -> vector<32x64xf32>
    %c2_i32_51 = arith.constant 2 : i32
    %237 = vector.broadcast %c2_i32_51 : i32 to vector<32x1xi32>
    %238 = arith.cmpi sle, %170, %237 : vector<32x1xi32>
    %239 = arith.extui %238 : vector<32x1xi1> to vector<32x1xi32>
    %240 = arith.sitofp %239 : vector<32x1xi32> to vector<32x1xf32>
    %241 = vector.broadcast %240 : vector<32x1xf32> to vector<32x64xf32>
    %242 = arith.mulf %236, %241 : vector<32x64xf32>
    %243 = vector.extract_strided_slice %163 {offsets = [5, 0], sizes = [27, 64], strides = [1, 1]} : vector<32x64xf32> to vector<27x64xf32>
    %244 = vector.extract_strided_slice %163 {offsets = [0, 0], sizes = [5, 64], strides = [1, 1]} : vector<32x64xf32> to vector<5x64xf32>
    %245 = tpu.concatenate %243, %244 in 0 : vector<27x64xf32>, vector<5x64xf32> -> vector<32x64xf32>
    %c2_i32_52 = arith.constant 2 : i32
    %246 = vector.broadcast %c2_i32_52 : i32 to vector<32x1xi32>
    %247 = arith.cmpi sle, %170, %246 : vector<32x1xi32>
    %c2_i32_53 = arith.constant 2 : i32
    %248 = vector.broadcast %c2_i32_53 : i32 to vector<32x1xi32>
    %249 = arith.cmpi sle, %166, %248 : vector<32x1xi32>
    %250 = arith.andi %247, %249 : vector<32x1xi1>
    %251 = arith.extui %250 : vector<32x1xi1> to vector<32x1xi32>
    %252 = arith.sitofp %251 : vector<32x1xi32> to vector<32x1xf32>
    %253 = vector.broadcast %252 : vector<32x1xf32> to vector<32x64xf32>
    %254 = arith.mulf %245, %253 : vector<32x64xf32>
    %255 = tpu.concatenate %182, %191, %203, %212, %163, %221, %233, %242, %254 in 1 : vector<32x64xf32>, vector<32x64xf32>, vector<32x64xf32>, vector<32x64xf32>, vector<32x64xf32>, vector<32x64xf32>, vector<32x64xf32>, vector<32x64xf32>, vector<32x64xf32> -> vector<32x576xf32>
    %cst_54 = arith.constant dense<0.000000e+00> : vector<32x64xf32>
    %256 = tpu.matmul %255, %1, %cst_54 {dimension_numbers = #tpu.dot_dimension_numbers<[1], [0], [0], [1], [0, 0, 1, 1], [], []>} : vector<32x576xf32>, vector<576x64xf32>, vector<32x64xf32> -> vector<32x64xf32>
    %257 = vector.broadcast %9 : vector<1x64xf32> to vector<32x64xf32>
    %258 = arith.mulf %256, %257 : vector<32x64xf32>
    %259 = vector.broadcast %10 : vector<1x64xf32> to vector<32x64xf32>
    %260 = arith.addf %258, %259 : vector<32x64xf32>
    %cst_55 = arith.constant 0.000000e+00 : f32
    %261 = vector.broadcast %cst_55 : f32 to vector<32x64xf32>
    %262 = arith.maximumf %260, %261 : vector<32x64xf32>
    %263 = vector.extract_strided_slice %262 {offsets = [0, 0], sizes = [16, 64], strides = [1, 1]} : vector<32x64xf32> to vector<16x64xf32>
    %cst_56 = arith.constant dense<0.000000e+00> : vector<64xf32>
    %264 = vector.multi_reduction <add>, %263, %cst_56 [0] : vector<16x64xf32> to vector<64xf32>
    %265 = vector.shape_cast %264 : vector<64xf32> to vector<1x64xf32>
    %cst_57 = arith.constant 1.600000e+01 : f32
    %266 = vector.broadcast %cst_57 : f32 to vector<1x64xf32>
    %267 = arith.divf %265, %266 : vector<1x64xf32>
    %268 = vector.extract_strided_slice %262 {offsets = [16, 0], sizes = [16, 64], strides = [1, 1]} : vector<32x64xf32> to vector<16x64xf32>
    %cst_58 = arith.constant dense<0.000000e+00> : vector<64xf32>
    %269 = vector.multi_reduction <add>, %268, %cst_58 [0] : vector<16x64xf32> to vector<64xf32>
    %270 = vector.shape_cast %269 : vector<64xf32> to vector<1x64xf32>
    %cst_59 = arith.constant 1.600000e+01 : f32
    %271 = vector.broadcast %cst_59 : f32 to vector<1x64xf32>
    %272 = arith.divf %270, %271 : vector<1x64xf32>
    %273 = vector.extract_strided_slice %262 {offsets = [0, 0], sizes = [16, 64], strides = [1, 1]} : vector<32x64xf32> to vector<16x64xf32>
    %cst_60 = arith.constant dense<0xFF800000> : vector<64xf32>
    %274 = vector.multi_reduction <maximumf>, %273, %cst_60 [0] : vector<16x64xf32> to vector<64xf32>
    %275 = vector.shape_cast %274 : vector<64xf32> to vector<1x64xf32>
    %276 = vector.extract_strided_slice %262 {offsets = [16, 0], sizes = [16, 64], strides = [1, 1]} : vector<32x64xf32> to vector<16x64xf32>
    %cst_61 = arith.constant dense<0xFF800000> : vector<64xf32>
    %277 = vector.multi_reduction <maximumf>, %276, %cst_61 [0] : vector<16x64xf32> to vector<64xf32>
    %278 = vector.shape_cast %277 : vector<64xf32> to vector<1x64xf32>
    %279 = tpu.concatenate %267, %272, %275, %278 in 0 : vector<1x64xf32>, vector<1x64xf32>, vector<1x64xf32>, vector<1x64xf32> -> vector<4x64xf32>
    %cst_62 = arith.constant dense<0.000000e+00> : vector<4x64xf32>
    %280 = tpu.matmul %279, %5, %cst_62 {dimension_numbers = #tpu.dot_dimension_numbers<[1], [0], [0], [1], [0, 0, 1, 1], [], []>} : vector<4x64xf32>, vector<64x64xf32>, vector<4x64xf32> -> vector<4x64xf32>
    %cst_63 = arith.constant 0.000000e+00 : f32
    %281 = vector.broadcast %cst_63 : f32 to vector<4x64xf32>
    %282 = arith.maximumf %280, %281 : vector<4x64xf32>
    %cst_64 = arith.constant dense<0.000000e+00> : vector<4x64xf32>
    %283 = tpu.matmul %282, %6, %cst_64 {dimension_numbers = #tpu.dot_dimension_numbers<[1], [0], [0], [1], [0, 0, 1, 1], [], []>} : vector<4x64xf32>, vector<64x64xf32>, vector<4x64xf32> -> vector<4x64xf32>
    %284 = vector.extract_strided_slice %283 {offsets = [0, 0], sizes = [2, 64], strides = [1, 1]} : vector<4x64xf32> to vector<2x64xf32>
    %285 = vector.extract_strided_slice %283 {offsets = [2, 0], sizes = [2, 64], strides = [1, 1]} : vector<4x64xf32> to vector<2x64xf32>
    %286 = arith.addf %284, %285 : vector<2x64xf32>
    %287 = arith.negf %286 : vector<2x64xf32>
    %288 = math.exp %287 : vector<2x64xf32>
    %cst_65 = arith.constant 1.000000e+00 : f32
    %289 = vector.broadcast %cst_65 : f32 to vector<2x64xf32>
    %290 = arith.addf %289, %288 : vector<2x64xf32>
    %291 = arith.divf %289, %290 : vector<2x64xf32>
    %292 = vector.extract_strided_slice %291 {offsets = [0, 0], sizes = [1, 64], strides = [1, 1]} : vector<2x64xf32> to vector<1x64xf32>
    %293 = vector.shape_cast %292 : vector<1x64xf32> to vector<1x64xf32>
    %294 = vector.broadcast %293 : vector<1x64xf32> to vector<16x64xf32>
    %295 = vector.extract_strided_slice %291 {offsets = [1, 0], sizes = [1, 64], strides = [1, 1]} : vector<2x64xf32> to vector<1x64xf32>
    %296 = vector.shape_cast %295 : vector<1x64xf32> to vector<1x64xf32>
    %297 = vector.broadcast %296 : vector<1x64xf32> to vector<16x64xf32>
    %298 = tpu.concatenate %294, %297 in 0 : vector<16x64xf32>, vector<16x64xf32> -> vector<32x64xf32>
    %299 = arith.mulf %262, %298 : vector<32x64xf32>
    %cst_66 = arith.constant dense<0.000000e+00> : vector<32x64xf32>
    %300 = tpu.matmul %163, %2, %cst_66 {dimension_numbers = #tpu.dot_dimension_numbers<[1], [0], [0], [1], [0, 0, 1, 1], [], []>} : vector<32x64xf32>, vector<64x64xf32>, vector<32x64xf32> -> vector<32x64xf32>
    %301 = vector.broadcast %11 : vector<1x64xf32> to vector<32x64xf32>
    %302 = arith.addf %300, %301 : vector<32x64xf32>
    %303 = arith.addf %299, %302 : vector<32x64xf32>
    %cst_67 = arith.constant dense<0.000000e+00> : vector<128x64xf32>
    %304 = tpu.matmul %13, %303, %cst_67 {dimension_numbers = #tpu.dot_dimension_numbers<[1], [0], [0], [1], [0, 0, 1, 1], [], []>} : vector<128x32xf32>, vector<32x64xf32>, vector<128x64xf32> -> vector<128x64xf32>
    %305 = vector.extract_strided_slice %304 {offsets = [0, 0], sizes = [8, 64], strides = [1, 1]} : vector<128x64xf32> to vector<8x64xf32>
    %306 = vector.extract_strided_slice %304 {offsets = [8, 0], sizes = [8, 64], strides = [1, 1]} : vector<128x64xf32> to vector<8x64xf32>
    %307 = vector.extract_strided_slice %304 {offsets = [16, 0], sizes = [8, 64], strides = [1, 1]} : vector<128x64xf32> to vector<8x64xf32>
    %308 = vector.extract_strided_slice %304 {offsets = [24, 0], sizes = [8, 64], strides = [1, 1]} : vector<128x64xf32> to vector<8x64xf32>
    %309 = vector.extract_strided_slice %304 {offsets = [32, 0], sizes = [8, 64], strides = [1, 1]} : vector<128x64xf32> to vector<8x64xf32>
    %310 = vector.extract_strided_slice %304 {offsets = [40, 0], sizes = [8, 64], strides = [1, 1]} : vector<128x64xf32> to vector<8x64xf32>
    %311 = vector.extract_strided_slice %304 {offsets = [48, 0], sizes = [8, 64], strides = [1, 1]} : vector<128x64xf32> to vector<8x64xf32>
    %312 = vector.extract_strided_slice %304 {offsets = [56, 0], sizes = [8, 64], strides = [1, 1]} : vector<128x64xf32> to vector<8x64xf32>
    %313 = vector.extract_strided_slice %304 {offsets = [64, 0], sizes = [8, 64], strides = [1, 1]} : vector<128x64xf32> to vector<8x64xf32>
    %314 = vector.extract_strided_slice %304 {offsets = [72, 0], sizes = [8, 64], strides = [1, 1]} : vector<128x64xf32> to vector<8x64xf32>
    %315 = vector.extract_strided_slice %304 {offsets = [80, 0], sizes = [8, 64], strides = [1, 1]} : vector<128x64xf32> to vector<8x64xf32>
    %316 = vector.extract_strided_slice %304 {offsets = [88, 0], sizes = [8, 64], strides = [1, 1]} : vector<128x64xf32> to vector<8x64xf32>
    %317 = vector.extract_strided_slice %304 {offsets = [96, 0], sizes = [8, 64], strides = [1, 1]} : vector<128x64xf32> to vector<8x64xf32>
    %318 = vector.extract_strided_slice %304 {offsets = [104, 0], sizes = [8, 64], strides = [1, 1]} : vector<128x64xf32> to vector<8x64xf32>
    %319 = vector.extract_strided_slice %304 {offsets = [112, 0], sizes = [8, 64], strides = [1, 1]} : vector<128x64xf32> to vector<8x64xf32>
    %320 = vector.extract_strided_slice %304 {offsets = [120, 0], sizes = [8, 64], strides = [1, 1]} : vector<128x64xf32> to vector<8x64xf32>
    %321 = tpu.concatenate %305, %306, %307, %308, %309, %310, %311, %312, %313, %314, %315, %316, %317, %318, %319, %320 in 1 : vector<8x64xf32>, vector<8x64xf32>, vector<8x64xf32>, vector<8x64xf32>, vector<8x64xf32>, vector<8x64xf32>, vector<8x64xf32>, vector<8x64xf32>, vector<8x64xf32>, vector<8x64xf32>, vector<8x64xf32>, vector<8x64xf32>, vector<8x64xf32>, vector<8x64xf32>, vector<8x64xf32>, vector<8x64xf32> -> vector<8x1024xf32>
    %c0_68 = arith.constant 0 : index
    %c0_69 = arith.constant 0 : index
    %322 = vector.load %arg3[%c0_68, %c0_69] : memref<1032x10xf32, #tpu.memory_space<vmem>>, vector<1024x10xf32>
    %c1024 = arith.constant 1024 : index
    %c0_70 = arith.constant 0 : index
    %323 = vector.load %arg3[%c1024, %c0_70] : memref<1032x10xf32, #tpu.memory_space<vmem>>, vector<1x10xf32>
    %cst_71 = arith.constant dense<0.000000e+00> : vector<8x10xf32>
    %324 = tpu.matmul %321, %322, %cst_71 {dimension_numbers = #tpu.dot_dimension_numbers<[1], [0], [0], [1], [0, 0, 1, 1], [], []>} : vector<8x1024xf32>, vector<1024x10xf32>, vector<8x10xf32> -> vector<8x10xf32>
    %325 = vector.broadcast %323 : vector<1x10xf32> to vector<8x10xf32>
    %326 = arith.addf %324, %325 : vector<8x10xf32>
    %c0_72 = arith.constant 0 : index
    %c0_73 = arith.constant 0 : index
    %327 = vector.load %arg4[%c0_72, %c0_73] : memref<8x10xf32, #tpu.memory_space<vmem>>, vector<8x10xf32>
    tpu.vector_store %arg4[%c0_72, %c0_73], %326 {strides = array<i32>} : memref<8x10xf32, #tpu.memory_space<vmem>>, vector<8x10xf32>,
    return
  }
}

</mosaic_0001>

<bundles_post_ra>
// kernel: wavenet_forward.1
= control target key start
LH: loop header
LB: loop body
LE: loop exit
PB: predicated region body
PF: predicated region fallthrough
CT: control target
= control target key end

     0   :  { %v187_v0 = vlaneseq  ;;  %vm8645_vm0 = vcmask 1040384   ;;  %vm8646_vm1 = vcmask 1046528   ;;  %s5217_s21 = smov 16   ;;  %v5218_v21 = vmov 0.0   ;;  %s5219_s22 = smov 12   ;;  %s8640_s0 = inlined_call_operand.vmem [shape: f32[128,4], index: 0, kind: input, shape index: {}]   ;;  %s8641_s1 = inlined_call_operand.vmem [shape: f32[944,64], index: 1, kind: input, shape index: {}]   ;;  %s8642_s2 = inlined_call_operand.vmem [shape: f32[128,160], index: 2, kind: input, shape index: {}]   ;;  %s8643_s3 = inlined_call_operand.vmem [shape: f32[1032,10], index: 3, kind: input, shape index: {}]   ;;  %s8644_s4 = inlined_call_operand.vmem [shape: f32[8,10], index: 4, kind: output, shape index: {}]  }
   0x1   :  { %v5261_v1 = vld [vmem:[%s8640_s0] sm:$0xff]  ;;  %v5266_v2 = vld [vmem:[%s8640_s0 + $0x78] sm:$0xff]  ;;  %v5271_v3 = vld [vmem:[%s8640_s0 + $0x8] sm:$0xff]  ;;  %v8703_v36 = vmov 0  ;;  %s5220_s23 = smov 4   ;;  %v8705_v48 = vmov 0 }
   0x2   :  { %1072 = vrot.lane.b32.xlu0 %v5261_v1, %s5217_s21  ;;  %v5275_v4 = vshrl.u32 %v187_v0, 7  ;;  %v8654_v5 = vrot.slane %v5266_v2, 7  ;;  %v274_v6 = vrot.slane %v5261_v1, 7  ;;  %v275_v7 = vrot.slane %v5271_v3, 7  ;;  %v5404_v49 = vld [vmem:[%s8640_s0 + $0x10] sm:$0xff]  ;;  %s5221_s26 = smov 8  }
   0x3   :  { %v8650_v8 = vrot.slane %v5266_v2, 1  ;;  %v465_v9 = vrot.slane %v5261_v1, 1  ;;  %v466_v44 = vrot.slane %v5271_v3, 1  ;;  %v468_v54 = vrot.slane %v5404_v49, 1  ;;  %v5428_v58 = vld [vmem:[%s8640_s0 + $0x18] sm:$0xff]  ;;  %s5222_s29 = smov 20  }
   0x4   :  { %v204_v10 = vand.u32 7, %v5275_v4  ;;  %v5284_v11 = vadd.s32 8, %v5275_v4  ;;  %v5287_v12 = vadd.s32 16, %v5275_v4  ;;  %v5292_v13 = vsel %vm8645_vm0, %v8654_v5, %v274_v6  ;;  %s5223_s30 = smov 24   ;;  %s5224_s5 = smov 28   ;;  %v5606_v32 = vld [vmem:[%s8640_s0 + $0x28] sm:$0xff] }
   0x5   :  { %v5297_v14 = vsel %vm8645_vm0, %v274_v6, %v275_v7  ;;  %v220_v15 = vshra.s32 %v5275_v4, 3  ;;  %v5303_v16 = vsel %vm8646_vm1, %v8650_v8, %v465_v9  ;;  %v5354_v35 = vadd.s32 24, %v5275_v4  ;;  %s5225_s8 = smov 32   ;;  %s5228_s11 = smov 112  }
   0x6   :  { %8690 = vst [vmem:[#allocation2_spill] sm:$0xff] %v5284_v11  ;;  %8691 = vst [vmem:[#allocation3_spill] sm:$0xff] %v5287_v12  ;;  %vm5305_vm2 = vcmp.ge.s32.totalorder %v204_v10, 1  ;;  %v205_v18 = vand.u32 7, %v5284_v11  ;;  %v206_v19 = vand.u32 7, %v5287_v12  ;;  %v221_v20 = vshra.s32 %v5284_v11, 3 }
   0x7   :  { %v4043_v22 = vsel %vm5305_vm2, 1.0, %v5218_v21  ;;  %v222_v23 = vshra.s32 %v5287_v12, 3  ;;  %v5316_v24 = vand.u32 7, %v220_v15  ;;  %vm5318_vm3 = vcmp.le.s32.totalorder %v204_v10, 6  ;;  %8702 = vst [vmem:[#allocation4_spill] sm:$0xff] %v5354_v35  ;;  %s5229_s12 = smov 96  }
   0x8   :  { %v624_v26 = vmul.f32 %v4043_v22, %v5292_v13  ;;  %v5323_v27 = vand.u32 7, %v221_v20  ;;  %vm5325_vm4 = vcmp.ge.s32.totalorder %v205_v18, 1  ;;  %vm5329_vm5 = vcmp.ge.s32.totalorder %v206_v19, 1  ;;  %s5230_s13 = smov 80   ;;  %s5232_s19 = smov 64  }
   0x9   :  { %v5333_v30 = vand.u32 7, %v222_v23  ;;  %v4044_v31 = vsel %vm5325_vm4, 1.0, %v5218_v21  ;;  %vm318_vm6 = vcmp.ge.s32.totalorder %v5316_v24, 1  ;;  %vm5339_vm7 = vcmp.le.s32.totalorder %v205_v18, 6 }
   0xa   :  { %1024 = vrot.lane.b32.xlu0 %v624_v26, %s5219_s22  ;;  %vm319_vm8 = vcmp.ge.s32.totalorder %v5323_v27, 1  ;;  %v625_v33 = vmul.f32 %v4044_v31, %v5297_v14  ;;  %v4011_v34 = vsel %vm318_vm6, 1.0, %v5218_v21  ;;  %vm528_vm9 = vmand %vm318_vm6, %vm5318_vm3  ;;  %v223_v41 = vshra.s32 %v5354_v35, 3 }
   0xb   :  { %vm320_vm10 = vcmp.ge.s32.totalorder %v5333_v30, 1  ;;  %vm5361_vm11 = vmand %vm319_vm8, %vm5325_vm4  ;;  %v446_v37 = vmul.f32 %v4011_v34, %v5266_v2  ;;  %v4027_v38 = vsel %vm528_vm9, 1.0, %v5218_v21  ;;  %v4012_v39 = vsel %vm319_vm8, 1.0, %v5218_v21 }
   0xc   :  { %v8704_v36 = vsel %vm5361_vm11, 4294967295, %v8703_v36  ;;  %vm352_vm12 = vmand %vm320_vm10, %vm5329_vm5  ;;  %1026 = vrot.lane.b32.xlu1 %v625_v33, %s5219_s22  ;;  %v576_v40 = vmul.f32 %v4027_v38, %v5303_v16  ;;  %v4013_v43 = vsel %vm320_vm10, 1.0, %v5218_v21  ;;  %v447_v46 = vmul.f32 %v4012_v39, %v5261_v1 }
   0xd   :  { %v3997_v42 = vsel %vm352_vm12, 1.0, %v5218_v21  ;;  %vm529_vm13 = vmand %vm319_vm8, %vm5339_vm7  ;;  %v5391_v47 = vand.u32 7, %v223_v41  ;;  %v448_v50 = vmul.f32 %v4013_v43, %v5271_v3  ;;  %v5410_v51 = vsel %vm8646_vm1, %v465_v9, %v466_v44 }
   0xe   :  { %v5387_v45 = vmul.f32 %v3997_v42, %v5297_v14  ;;  %896 = vrot.lane.b32.xlu0 %v446_v37, %s5220_s23  ;;  %vm5397_vm14 = vmand %vm318_vm6, %vm5305_vm2  ;;  %v4028_v52 = vsel %vm529_vm13, 1.0, %v5218_v21  ;;  %v207_v53 = vand.u32 7, %v5354_v35  ;;  %vm5416_vm6 = vcmp.le.s32.totalorder %v206_v19, 6 }
   0xf   :  { %v8706_v48 = vsel %vm5397_vm14, 4294967295, %v8705_v48  ;;  %vm321_vm15 = vcmp.ge.s32.totalorder %v5391_v47, 1  ;;  %v577_v57 = vmul.f32 %v4028_v52, %v5410_v51  ;;  %v4059_v59 = vsel %vm5318_vm3, 1.0, %v5218_v21  ;;  %vm530_vm8 = vmand %vm320_vm10, %vm5416_vm6 }
  0x10   :  { %960 = vrot.lane.b32.xlu1 %v576_v40, %s5221_s26  ;;  %v4014_v56 = vsel %vm321_vm15, 1.0, %v5218_v21  ;;  %vm5437_vm9 = vcmp.le.s32.totalorder %v207_v53, 6  ;;  %v8709_v60 = vmov 0  ;;  %vm5441_vm12 = vcmp.ge.s32.totalorder %v207_v53, 1 }
  0x11   :  { %v8710_v60 = vsel %vm5437_vm9, 4294967295, %v8709_v60  ;;  %v449_v62 = vmul.f32 %v4014_v56, %v5404_v49  ;;  %v5449_v63 = vsel %vm8646_vm1, %v466_v44, %v468_v54  ;;  %vm5455_vm10 = vmand %vm321_vm15, %vm5441_vm12  ;;  %v4060_v1 = vsel %vm5339_vm7, 1.0, %v5218_v21 }
  0x12   :  { %898 = vrot.lane.b32.xlu0 %v447_v46, %s5220_s23  ;;  %v470_v6 = vrot.slane %v5428_v58, 1  ;;  %vm688_vm13 = vcmp.le.s32.totalorder %v5316_v24, 6  ;;  %v5465_v9 = vadd.s32 32, %v5275_v4  ;;  %v672_v10 = vmul.f32 %v4059_v59, %v5410_v51  ;;  %vm531_vm0 = vmand %vm321_vm15, %vm5437_vm9 }
  0x13   :  { %v4029_v15 = vsel %vm530_vm8, 1.0, %v5218_v21  ;;  %vm689_vm1 = vcmp.le.s32.totalorder %v5323_v27, 6  ;;  %v673_v18 = vmul.f32 %v4060_v1, %v5449_v63  ;;  %vm704_vm11 = vmand %vm688_vm13, %vm5305_vm2  ;;  %vm8715_vm14 = vcmask 1046528  }
  0x14   :  { %900 = vrot.lane.b32.xlu1 %v448_v50, %s5220_s23  ;;  %v224_v19 = vshra.s32 %v5465_v9, 3  ;;  %v5485_v20 = vsel %vm8715_vm14, %v468_v54, %v470_v6  ;;  %v4030_v22 = vsel %vm531_vm0, 1.0, %v5218_v21  ;;  %v277_v23 = vrot.slane %v5404_v49, 7  ;;  %vm705_vm2 = vmand %vm689_vm1, %vm5325_vm4 }
  0x15   :  { %v578_v26 = vmul.f32 %v4029_v15, %v5449_v63  ;;  %v4075_v17 = vsel %vm704_vm11, 1.0, %v5218_v21  ;;  %v579_v31 = vmul.f32 %v4030_v22, %v5485_v20  ;;  %vm8716_vm0 = vcmask 1040384   ;;  %vm816_vm8 = vmand %vm688_vm13, %vm5318_vm3 }
  0x16   :  { %1074 = vrot.lane.b32.xlu0 %v5271_v3, %s5217_s21  ;;  %v5498_v33 = vand.u32 7, %v224_v19  ;;  %v5503_v34 = vsel %vm8716_vm0, %v275_v7, %v277_v23  ;;  %v4076_v37 = vsel %vm705_vm2, 1.0, %v5218_v21  ;;  %v279_v28 = vrot.slane %v5428_v58, 7  ;;  %vm8719_vm14 = vmmov %vm8716_vm0 }
  0x17   :  { %v752_v38 = vmul.f32 %v4075_v17, %v5297_v14  ;;  %v208_v39 = vand.u32 7, %v5465_v9  ;;  %v4045_v40 = vsel %vm5329_vm5, 1.0, %v5218_v21  ;;  %v753_v41 = vmul.f32 %v4076_v37, %v5503_v34 }
  0x18   :  { %962 = vrot.lane.b32.xlu1 %v577_v57, %s5221_s26  ;;  %vm322_vm4 = vcmp.ge.s32.totalorder %v5498_v33, 1  ;;  %v193_v7 = vadd.s32 40, %v5275_v4  ;;  %v5524_v14 = vsel %vm8719_vm14, %v277_v23, %v279_v28  ;;  %v4046_v43 = vsel %vm5441_vm12, 1.0, %v5218_v21 }
  0x19   :  { %vm5517_vm11 = vcmp.ge.s32.totalorder %v208_v39, 1  ;;  %v626_v46 = vmul.f32 %v4045_v40, %v5503_v34  ;;  %v4091_v50 = vsel %vm688_vm13, 1.0, %v5218_v21  ;;  %v627_v52 = vmul.f32 %v4046_v43, %v5524_v14  ;;  %vm817_vm13 = vmand %vm689_vm1, %vm5339_vm7 }
  0x1a   :  { %902 = vrot.lane.b32.xlu0 %v449_v62, %s5220_s23  ;;  %vm5533_vm15 = vmand %vm322_vm4, %vm5517_vm11  ;;  %v225_v53 = vshra.s32 %v193_v7, 3  ;;  %v4092_v54 = vsel %vm689_vm1, 1.0, %v5218_v21  ;;  %v800_v56 = vmul.f32 %v4091_v50, %v5271_v3  ;;  %v4015_v62 = vsel %vm322_vm4, 1.0, %v5218_v21 }
  0x1b   :  { %v801_v57 = vmul.f32 %v4092_v54, %v5404_v49  ;;  %v209_v1 = vand.u32 7, %v193_v7  ;;  %v4107_v3 = vsel %vm816_vm8, 1.0, %v5218_v21  ;;  %v450_v9 = vmul.f32 %v4015_v62, %v5428_v58 }
  0x1c   :  { %1136 = vrot.lane.b32.xlu1 %v672_v10, %s5222_s29  ;;  %v5555_v59 = vand.u32 7, %v225_v53  ;;  %v4061_v25 = vsel %vm5416_vm6, 1.0, %v5218_v21  ;;  %v864_v15 = vmul.f32 %v4107_v3, %v5449_v63  ;;  %vm5598_vm14 = vcmp.le.s32.totalorder %v208_v39, 6 }
  0x1d   :  { %vm5565_vm0 = vcmp.ge.s32.totalorder %v209_v1, 1  ;;  %v674_v19 = vmul.f32 %v4061_v25, %v5485_v20  ;;  %v8726_v22 = vmov 0  ;;  %v4108_v27 = vsel %vm817_vm13, 1.0, %v5218_v21  ;;  %vm532_vm7 = vmand %vm322_vm4, %vm5598_vm14 }
  0x1e   :  { %1138 = vrot.lane.b32.xlu0 %v673_v18, %s5222_s29  ;;  %vm323_vm2 = vcmp.ge.s32.totalorder %v5555_v59, 1  ;;  %v5586_v18 = vld [vmem:[%s8640_s0 + $0x20] sm:$0xff]  ;;  %v8727_v22 = vsel %vm5598_vm14, 4294967295, %v8726_v22  ;;  %vm5609_vm1 = vcmp.le.s32.totalorder %v209_v1, 6  ;;  %v5620_v17 = vadd.s32 48, %v5275_v4 }
  0x1f   :  { %vm5576_vm3 = vmand %vm323_vm2, %vm5565_vm0  ;;  %v472_v63 = vrot.slane %v5586_v18, 1  ;;  %vm8730_vm8 = vcmask 1046528   ;;  %v4062_v37 = vsel %vm5437_vm9, 1.0, %v5218_v21  ;;  %vm690_vm13 = vcmp.le.s32.totalorder %v5333_v30, 6 }
  0x20   :  { %964 = vrot.lane.b32.xlu1 %v578_v26, %s5221_s26  ;;  %v865_v39 = vmul.f32 %v4108_v27, %v5485_v20  ;;  %vm533_vm4 = vmand %vm323_vm2, %vm5609_vm1  ;;  %v226_v20 = vshra.s32 %v5620_v17, 3  ;;  %vm8731_vm14 = vcmask 1046528   ;;  %v281_v43 = vrot.slane %v5586_v18, 7 }
  0x21   :  { %vm706_vm9 = vmand %vm690_vm13, %vm5329_vm5  ;;  %v4032_v7 = vsel %vm533_vm4, 1.0, %v5218_v21  ;;  %v3998_v61 = vsel %vm5455_vm10, 1.0, %v5218_v21  ;;  %v210_v62 = vand.u32 7, %v5620_v17  ;;  %v195_v3 = vadd.s32 56, %v5275_v4  ;;  %v17_v17 = vld [vmem:[%s8641_s1] sm:$0xff] }
  0x22   :  { %966 = vrot.lane.b32.xlu0 %v579_v31, %s5221_s26  ;;  %v5625_v31 = vsel %vm8730_vm8, %v470_v6, %v472_v63  ;;  %v4031_v6 = vsel %vm532_vm7, 1.0, %v5218_v21  ;;  %vm691_vm8 = vcmp.le.s32.totalorder %v5391_v47, 6  ;;  %v4077_v29 = vsel %vm706_vm9, 1.0, %v5218_v21 }
  0x23   :  { %v675_v40 = vmul.f32 %v4062_v37, %v5625_v31  ;;  %vm707_vm5 = vmand %vm691_vm8, %vm5441_vm12  ;;  %v5678_v1 = vmul.f32 %v3998_v61, %v5503_v34  ;;  %vm5686_vm12 = vcmp.ge.s32.totalorder %v210_v62, 1  ;;  %v4048_v25 = vsel %vm5565_vm0, 1.0, %v5218_v21  ;;  %v18_v37 = vld [vmem:[%s8641_s1 + $0x8] sm:$0xff]  ;;  %v21_v61 = vld [vmem:[%s8641_s1 + $0x20] sm:$0xf] }
  0x24   :  { %1200 = vrot.lane.b32.xlu1 %v752_v38, %s5223_s30  ;;  %v474_v38 = vrot.slane %v5606_v32, 1  ;;  %v4078_v54 = vsel %vm707_vm5, 1.0, %v5218_v21  ;;  %vm8742_vm4 = vnez %v8727_v22  ;;  %vm8743_vm5 = vnez %v8710_v60 }
  0x25   :  { %v197_v24 = vadd.s32 72, %v5275_v4 }
  0x26   :  { %1202 = vrot.lane.b32.xlu0 %v753_v41, %s5223_s30  ;;  %v5651_v41 = vsel %vm8731_vm14, %v472_v63, %v474_v38  ;;  %v227_v63 = vshra.s32 %v195_v3, 3 }
  0x27   :  { %v581_v50 = vmul.f32 %v4032_v7, %v5651_v41 }
  0x28   :  { %1028 = vrot.lane.b32.xlu1 %v626_v46, %s5219_s22  ;;  %v580_v46 = vmul.f32 %v4031_v6, %v5625_v31 }
  0x2a   :  { %1030 = vrot.lane.b32.xlu0 %v627_v52, %s5219_s22  ;;  %v5664_v52 = vand.u32 7, %v226_v20  ;;  %v4811_v20 = vpack.c.bf16 %v18_v37, %v17_v17 }
  0x2c   :  { %1264 = vrot.lane.b32.xlu1 %v800_v56, %s5224_s5  ;;  %v283_v56 = vrot.slane %v5606_v32, 7  ;;  %vm324_vm9 = vcmp.ge.s32.totalorder %v5664_v52, 1  ;;  %4812 = vmatprep.subr.bf16.mxu0 %v4811_v20 }
  0x2d   :  { %vm5702_vm14 = vmand %vm324_vm9, %vm5686_vm12  ;;  %4814 = vmatpush3.bf16.msra.mxu0 %v4811_v20 }
  0x2e   :  { %1266 = vrot.lane.b32.xlu0 %v801_v57, %s5224_s5  ;;  %v754_v57 = vmul.f32 %v4077_v29, %v5524_v14 }
  0x30   :  { %1076 = vrot.lane.b32.xlu1 %v5404_v49, %s5217_s21  ;;  %v4016_v49 = vsel %vm323_vm2, 1.0, %v5218_v21  ;;  %vm8732_vm2 = vcmask 1040384  }
  0x31   :  { %v451_v26 = vmul.f32 %v4016_v49, %v5586_v18  ;;  %v282_v53 = vsel %vm8732_vm2, %v279_v28, %v281_v43  ;;  %v4047_v28 = vsel %vm5517_vm11, 1.0, %v5218_v21  ;;  %vm8735_vm10 = vmmov %vm8732_vm2  ;;  %v4093_v49 = vsel %vm690_vm13, 1.0, %v5218_v21 }
  0x32   :  { %904 = vrot.lane.b32.xlu0 %v450_v9, %s5220_s23  ;;  %v755_v9 = vmul.f32 %v4078_v54, %v282_v53  ;;  %v5693_v34 = vsel %vm8735_vm10, %v281_v43, %v283_v56  ;;  %v802_v44 = vmul.f32 %v4093_v49, %v5428_v58  ;;  %v4017_v43 = vsel %vm324_vm9, 1.0, %v5218_v21  ;;  %vm819_vm2 = vmand %vm691_vm8, %vm8743_vm5 }
  0x33   :  { %v629_v27 = vmul.f32 %v4048_v25, %v5693_v34  ;;  %v4000_v54 = vsel %vm5576_vm3, 1.0, %v5218_v21  ;;  %vm8662_vm3 = vcmask 1043456   ;;  %vm5793_vm10 = vcmp.le.s32.totalorder %v210_v62, 6 }
  0x34   :  { %1328 = vrot.lane.b32.xlu1 %v864_v15, %s5225_s8  ;;  %v4110_v47 = vsel %vm819_vm2, 1.0, %v5218_v21  ;;  %v4001_v62 = vsel %vm5702_vm14, 1.0, %v5218_v21  ;;  %vm8748_vm5 = vcmask 1046528   ;;  %vm692_vm14 = vcmp.le.s32.totalorder %v5498_v33, 6 }
  0x35   :  { %v5832_v17 = vmul.f32 %v4001_v62, %v5693_v34  ;;  %v867_v37 = vmul.f32 %v4110_v47, %v5651_v41  ;;  %vm693_vm2 = vcmp.le.s32.totalorder %v5555_v59, 6  ;;  %v5905_v47 = vld [vmem:[%s8640_s0 + $0x68] sm:$0xff] }
  0x36   :  { %1140 = vrot.lane.b32.xlu0 %v674_v19, %s5222_s29  ;;  %v628_v19 = vmul.f32 %v4047_v28, %v282_v53  ;;  %v4063_v28 = vsel %vm8742_vm4, 1.0, %v5218_v21 }
  0x37   :  { %v676_v25 = vmul.f32 %v4063_v28, %v5651_v41  ;;  %v5888_v28 = vld [vmem:[%s8640_s0 + $0x70] sm:$0xff] }
  0x38   :  { %1078 = vrot.lane.b32.xlu1 %v5428_v58, %s5217_s21  ;;  %v20_v58 = vld [vmem:[%s8641_s1 + $0x18] sm:$0xff] }
  0x3a   :  { %906 = vrot.lane.b32.xlu0 %v451_v26, %s5220_s23  ;;  %v3999_v26 = vsel %vm5533_vm15, 1.0, %v5218_v21  ;;  %vm818_vm15 = vmand %vm690_vm13, %vm5416_vm6 }
  0x3b   :  { %v5725_v6 = vmul.f32 %v3999_v26, %v5524_v14  ;;  %v19_v14 = vld [vmem:[%s8641_s1 + $0x10] sm:$0xff]  ;;  %v4109_v30 = vsel %vm818_vm15, 1.0, %v5218_v21  ;;  %vm534_vm15 = vmand %vm324_vm9, %vm5793_vm10 }
  0x3c   :  { %1330 = vrot.lane.b32.xlu1 %v865_v39, %s5225_s8  ;;  %v4094_v39 = vsel %vm691_vm8, 1.0, %v5218_v21  ;;  %v4815_v29 = vpack.c.bf16 %v20_v58, %v19_v14  ;;  %v866_v10 = vmul.f32 %v4109_v30, %v5625_v31 }
  0x3d   :  { %v803_v7 = vmul.f32 %v4094_v39, %v5586_v18 }
  0x3e   :  { %1142 = vrot.lane.b32.xlu0 %v675_v40, %s5222_s29  ;;  %v5729_v40 = vand.u32 7, %v227_v63  ;;  %4816 = vmatprep.subr.bf16.mxu0 %v4815_v29  ;;  %v4064_v63 = vsel %vm5609_vm1, 1.0, %v5218_v21 }
  0x3f   :  { %4818 = vmatpush3.bf16.msra.mxu0 %v4815_v29 }
  0x40   :  { %968 = vrot.lane.b32.xlu1 %v580_v46, %s5221_s26  ;;  %v211_v46 = vand.u32 7, %v195_v3  ;;  %vm325_vm6 = vcmp.ge.s32.totalorder %v5729_v40, 1  ;;  %v5772_v3 = vmul.f32 %v4000_v54, %v282_v53  ;;  %4577 = vmatprep.subr.msk.mxu0 %vm8662_vm3, %v21_v61 }
  0x42   :  { %970 = vrot.lane.b32.xlu0 %v581_v50, %s5221_s26  ;;  %vm5749_vm7 = vcmp.ge.s32.totalorder %v211_v46, 1  ;;  %v452_v50 = vmul.f32 %v4017_v43, %v5606_v32  ;;  %vm5805_vm8 = vcmp.le.s32.totalorder %v211_v46, 6 }
  0x43   :  { %vm5765_vm13 = vmand %vm325_vm6, %vm5749_vm7  ;;  %4578 = vmatpush3.msk.msra.mxu0 %vm8662_vm3, %v21_v61  ;;  %vm8666_vm3 = vcmask 64512  }
  0x44   :  { %1204 = vrot.lane.b32.xlu1 %v754_v57, %s5223_s30  ;;  %vm535_vm9 = vmand %vm325_vm6, %vm5805_vm8  ;;  %v4002_v43 = vsel %vm5765_vm13, 1.0, %v5218_v21  ;;  %v4049_v57 = vsel %vm5686_vm12, 1.0, %v5218_v21 }
  0x46   :  { %1206 = vrot.lane.b32.xlu0 %v755_v9, %s5223_s30  ;;  %v5780_v9 = vld [vmem:[%s8640_s0 + $0x30] sm:$0xff] }
  0x47   :  { %v476_v31 = vrot.slane %v5780_v9, 1  ;;  %v285_v39 = vrot.slane %v5780_v9, 7 }
  0x48   :  { %1032 = vrot.lane.b32.xlu1 %v628_v19, %s5219_s22  ;;  %v5801_v19 = vld [vmem:[%s8640_s0 + $0x38] sm:$0xff] }
  0x49   :  { %v5827_v15 = vsel %vm8748_vm5, %v474_v38, %v476_v31  ;;  %v478_v26 = vrot.slane %v5801_v19, 1  ;;  %v4033_v38 = vsel %vm534_vm15, 1.0, %v5218_v21  ;;  %vm708_vm5 = vmand %vm692_vm14, %vm5517_vm11  ;;  %vm8750_vm11 = vcmask 1040384  }
  0x4a   :  { %1034 = vrot.lane.b32.xlu0 %v629_v27, %s5219_s22  ;;  %v5822_v27 = vadd.s32 64, %v5275_v4  ;;  %v582_v14 = vmul.f32 %v4033_v38, %v5827_v15  ;;  %vm709_vm15 = vmand %vm693_vm2, %vm5565_vm0  ;;  %v4079_v42 = vsel %vm708_vm5, 1.0, %v5218_v21  ;;  %v286_v58 = vsel %vm8750_vm11, %v283_v56, %v285_v39 }
  0x4b   :  { %v5875_v29 = vmul.f32 %v4002_v43, %v286_v58  ;;  %v287_v54 = vrot.slane %v5801_v19, 7  ;;  %v756_v56 = vmul.f32 %v4079_v42, %v5693_v34  ;;  %v630_v62 = vmul.f32 %v4049_v57, %v286_v58 }
  0x4c   :  { %1268 = vrot.lane.b32.xlu1 %v802_v44, %s5224_s5  ;;  %v677_v44 = vmul.f32 %v4064_v63, %v5827_v15  ;;  %v228_v41 = vshra.s32 %v5822_v27, 3  ;;  %v212_v61 = vand.u32 7, %v5822_v27  ;;  %v8651_v63 = vrot.slane %v5905_v47, 7 }
  0x4d   :  { %8751 = vst [vmem:[#allocation5_spill] sm:$0xff] %v5875_v29 }
  0x4e   :  { %1270 = vrot.lane.b32.xlu0 %v803_v7, %s5224_s5  ;;  %v4034_v7 = vsel %vm535_vm9, 1.0, %v5218_v21  ;;  %v5872_v30 = vand.u32 7, %v228_v41  ;;  %vm5892_vm13 = vcmp.ge.s32.totalorder %v212_v61, 1  ;;  %vm8754_vm9 = vmmov %vm8750_vm11 }
  0x4f   :  { %v5897_v34 = vsel %vm8754_vm9, %v285_v39, %v287_v54 }
  0x50   :  { %1080 = vrot.lane.b32.xlu1 %v5586_v18, %s5217_s21  ;;  %v4018_v18 = vsel %vm325_vm6, 1.0, %v5218_v21  ;;  %vm8749_vm6 = vcmask 1046528   ;;  %vm326_vm0 = vcmp.ge.s32.totalorder %v5872_v30, 1 }
  0x51   :  { %v453_v49 = vmul.f32 %v4018_v18, %v5780_v9  ;;  %v5854_v20 = vsel %vm8749_vm6, %v476_v31, %v478_v26  ;;  %v4050_v31 = vsel %vm5749_vm7, 1.0, %v5218_v21  ;;  %vm358_vm5 = vmand %vm326_vm0, %vm5892_vm13 }
  0x52   :  { %908 = vrot.lane.b32.xlu0 %v452_v50, %s5220_s23  ;;  %v583_v46 = vmul.f32 %v4034_v7, %v5854_v20  ;;  %v4080_v50 = vsel %vm709_vm15, 1.0, %v5218_v21  ;;  %v4003_v27 = vsel %vm358_vm5, 1.0, %v5218_v21  ;;  %v631_v39 = vmul.f32 %v4050_v31, %v5897_v34  ;;  %vm8756_vm6 = vmmov %vm8754_vm9 }
  0x53   :  { %v5919_v38 = vmul.f32 %v4003_v27, %v5897_v34  ;;  %v4096_v7 = vsel %vm693_vm2, 1.0, %v5218_v21  ;;  %vm820_vm15 = vmand %vm692_vm14, %vm8742_vm4 }
  0x54   :  { %1332 = vrot.lane.b32.xlu1 %v866_v10, %s5225_s8  ;;  %v757_v10 = vmul.f32 %v4080_v50, %v286_v58  ;;  %v213_v58 = vand.u32 7, %v197_v24  ;;  %vm8759_vm4 = vmmov %vm8756_vm6 }
  0x55   :  { %8755 = vst [vmem:[#allocation6_spill] sm:$0xff] %v5919_v38 }
  0x56   :  { %1144 = vrot.lane.b32.xlu0 %v676_v25, %s5222_s29  ;;  %v229_v25 = vshra.s32 %v197_v24, 3  ;;  %vm5950_vm9 = vcmp.ge.s32.totalorder %v213_v58, 1  ;;  %v4111_v24 = vsel %vm820_vm15, 1.0, %v5218_v21  ;;  %vm8765_vm15 = vcmask 1046528  }
  0x58   :  { %1082 = vrot.lane.b32.xlu1 %v5606_v32, %s5217_s21 }
  0x5a   :  { %910 = vrot.lane.b32.xlu0 %v453_v49, %s5220_s23  ;;  %v8653_v49 = vrot.slane %v5888_v28, 7 }
  0x5c   :  { %1334 = vrot.lane.b32.xlu1 %v867_v37, %s5225_s8  ;;  %v4095_v37 = vsel %vm692_vm14, 1.0, %v5218_v21  ;;  %v5930_v41 = vsel %vm8756_vm6, %v8651_v63, %v8653_v49  ;;  %vm821_vm14 = vmand %vm693_vm2, %vm5609_vm1  ;;  %vm5990_vm6 = vcmp.le.s32.totalorder %v212_v61, 6  ;;  %vm6001_vm1 = vcmp.le.s32.totalorder %v213_v58, 6 }
  0x5d   :  { %v804_v42 = vmul.f32 %v4095_v37, %v5606_v32  ;;  %v4019_v32 = vsel %vm326_vm0, 1.0, %v5218_v21  ;;  %v4112_v59 = vsel %vm821_vm14, 1.0, %v5218_v21  ;;  %vm536_vm2 = vmand %vm326_vm0, %vm5990_vm6  ;;  %v6014_v37 = vadd.s32 80, %v5275_v4 }
  0x5e   :  { %1146 = vrot.lane.b32.xlu0 %v677_v44, %s5222_s29  ;;  %v5923_v44 = vand.u32 7, %v229_v25  ;;  %v454_v57 = vmul.f32 %v4019_v32, %v5801_v19  ;;  %v869_v58 = vmul.f32 %v4112_v59, %v5854_v20 }
  0x60   :  { %972 = vrot.lane.b32.xlu1 %v582_v14, %s5221_s26  ;;  %v5938_v14 = vld [vmem:[%s8640_s0 + $0x40] sm:$0xff]  ;;  %vm327_vm11 = vcmp.ge.s32.totalorder %v5923_v44, 1 }
  0x61   :  { %v289_v43 = vrot.slane %v5938_v14, 7  ;;  %vm359_vm5 = vmand %vm327_vm11, %vm5950_vm9  ;;  %v4020_v31 = vsel %vm327_vm11, 1.0, %v5218_v21 }
  0x62   :  { %974 = vrot.lane.b32.xlu0 %v583_v46, %s5221_s26  ;;  %v805_v46 = vmul.f32 %v4096_v7, %v5780_v9  ;;  %v4004_v22 = vsel %vm359_vm5, 1.0, %v5218_v21  ;;  %v455_v61 = vmul.f32 %v4020_v31, %v5938_v14  ;;  %v4066_v7 = vsel %vm5805_vm8, 1.0, %v5218_v21  ;;  %vm537_vm0 = vmand %vm327_vm11, %vm6001_vm1 }
  0x63   :  { %v5965_v33 = vsel %vm8759_vm4, %v287_v54, %v289_v43  ;;  %v868_v54 = vmul.f32 %v4111_v24, %v5827_v15  ;;  %vm694_vm5 = vcmp.le.s32.totalorder %v5664_v52, 6  ;;  %vm695_vm4 = vcmp.le.s32.totalorder %v5729_v40, 6  ;;  %v6206_v40 = vld [vmem:[%s8640_s0 + $0x58] sm:$0xff] }
  0x64   :  { %1208 = vrot.lane.b32.xlu1 %v756_v56, %s5223_s30  ;;  %v5970_v56 = vmul.f32 %v4004_v22, %v5965_v33  ;;  %vm710_vm14 = vmand %vm694_vm5, %vm5686_vm12  ;;  %v4036_v22 = vsel %vm537_vm0, 1.0, %v5218_v21  ;;  %v6064_v31 = vadd.s32 88, %v5275_v4 }
  0x65   :  { %vm711_vm12 = vmand %vm695_vm4, %vm5749_vm7  ;;  %v4081_v0 = vsel %vm710_vm14, 1.0, %v5218_v21 }
  0x66   :  { %1210 = vrot.lane.b32.xlu0 %v757_v10, %s5223_s30  ;;  %8760 = vst [vmem:[#allocation7_spill] sm:$0xff] %v5970_v56  ;;  %v4065_v10 = vsel %vm5793_vm10, 1.0, %v5218_v21  ;;  %vm822_vm14 = vmand %vm694_vm5, %vm5793_vm10  ;;  %vm8774_vm10 = vcmask 1040384   ;;  %v8665_v56 = vrot.slane %v6206_v40, 7 }
  0x67   :  { %v678_v25 = vmul.f32 %v4065_v10, %v5854_v20  ;;  %v230_v20 = vshra.s32 %v6014_v37, 3 }
  0x68   :  { %1036 = vrot.lane.b32.xlu1 %v630_v62, %s5219_s22  ;;  %v480_v62 = vrot.slane %v5938_v14, 1 }
  0x6a   :  { %1038 = vrot.lane.b32.xlu0 %v631_v39, %s5219_s22  ;;  %v6019_v39 = vsel %vm8765_vm15, %v478_v26, %v480_v62  ;;  %v4035_v26 = vsel %vm536_vm2, 1.0, %v5218_v21  ;;  %vm8768_vm2 = vcmask 1040384  }
  0x6c   :  { %1272 = vrot.lane.b32.xlu1 %v804_v42, %s5224_s5 }
  0x6e   :  { %1274 = vrot.lane.b32.xlu0 %v805_v46, %s5224_s5  ;;  %v679_v46 = vmul.f32 %v4066_v7, %v6019_v39  ;;  %v214_v7 = vand.u32 7, %v6014_v37  ;;  %v4052_v37 = vsel %vm5950_vm9, 1.0, %v5218_v21 }
  0x70   :  { %1084 = vrot.lane.b32.xlu1 %v5780_v9, %s5217_s21  ;;  %v5998_v9 = vld [vmem:[%s8640_s0 + $0x48] sm:$0xff]  ;;  %vm6082_vm11 = vcmp.ge.s32.totalorder %v214_v7, 1 }
  0x71   :  { %v8652_v42 = vrot.slane %v5998_v9, 1  ;;  %v291_v55 = vrot.slane %v5998_v9, 7 }
  0x72   :  { %912 = vrot.lane.b32.xlu0 %v454_v57, %s5220_s23  ;;  %v584_v57 = vmul.f32 %v4035_v26, %v6019_v39 }
  0x73   :  { %v6045_v32 = vsel %vm8765_vm15, %v480_v62, %v8652_v42  ;;  %v4082_v62 = vsel %vm711_vm12, 1.0, %v5218_v21  ;;  %v4098_v42 = vsel %vm695_vm4, 1.0, %v5218_v21 }
  0x74   :  { %1336 = vrot.lane.b32.xlu1 %v868_v54, %s5225_s8  ;;  %v6006_v15 = vpop.permute.xlu0 %1072  ;;  %v585_v54 = vmul.f32 %v4036_v22, %v6045_v32  ;;  %v807_v49 = vmul.f32 %v4098_v42, %v5938_v14  ;;  %v4113_v42 = vsel %vm822_vm14, 1.0, %v5218_v21  ;;  %vm823_vm14 = vmand %vm695_vm4, %vm5805_vm8  ;;  %vm8667_vm4 = vcmask 31744  }
  0x75   :  { %v6457_v22 = vadd.s32 112, %v5275_v4 }
  0x76   :  { %1148 = vrot.lane.b32.xlu0 %v678_v25, %s5222_s29  ;;  %v6061_v25 = vand.u32 7, %v230_v20  ;;  %v231_v20 = vshra.s32 %v6064_v31, 3 }
  0x78   :  { %1086 = vrot.lane.b32.xlu1 %v5801_v19, %s5217_s21  ;;  %vm328_vm7 = vcmp.ge.s32.totalorder %v6061_v25, 1  ;;  %v6113_v63 = vand.u32 7, %v231_v20 }
  0x79   :  { %vm6098_vm0 = vmand %vm328_vm7, %vm6082_vm11 }
  0x7a   :  { %914 = vrot.lane.b32.xlu0 %v455_v61, %s5220_s23  ;;  %v758_v61 = vmul.f32 %v4081_v0, %v5897_v34  ;;  %v6089_v34 = vsel %vm8768_vm2, %v289_v43, %v291_v55  ;;  %v4097_v43 = vsel %vm694_vm5, 1.0, %v5218_v21  ;;  %vm329_vm15 = vcmp.ge.s32.totalorder %v6113_v63, 1 }
  0x7b   :  { %v633_v8 = vmul.f32 %v4052_v37, %v6089_v34  ;;  %vm8776_vm5 = vnez %v8706_v48 }
  0x7c   :  { %v6048_v24 = vpop.permute.xlu0 %1024  ;;  %1338 = vrot.lane.b32.xlu1 %v869_v58, %s5225_s8  ;;  %v4051_v58 = vsel %vm5892_vm13, 1.0, %v5218_v21 }
  0x7e   :  { %1150 = vrot.lane.b32.xlu0 %v679_v46, %s5222_s29  ;;  %v6058_v10 = vpop.permute.xlu1 %1026  ;;  %v759_v46 = vmul.f32 %v4082_v62, %v5965_v33 }
  0x80   :  { %v6068_v59 = vpop.permute.xlu0 %896  ;;  %976 = vrot.lane.b32.xlu1 %v584_v57, %s5221_s26  ;;  %v8769_v57 = vmov 0 }
  0x81   :  { %v8770_v57 = vsel %vm6098_vm0, 4294967295, %v8769_v57 }
  0x82   :  { %978 = vrot.lane.b32.xlu0 %v585_v54, %s5221_s26  ;;  %v6077_v26 = vpop.permute.xlu1 %960  ;;  %8771 = vst [vmem:[#allocation8_spill] sm:$0xff] %v8770_v57  ;;  %v632_v54 = vmul.f32 %v4051_v58, %v5965_v33  ;;  %v6121_v33 = vld [vmem:[%s8640_s0 + $0x50] sm:$0xff]  ;;  %v806_v58 = vmul.f32 %v4097_v43, %v5801_v19  ;;  %v4021_v19 = vsel %vm328_vm7, 1.0, %v5218_v21 }
  0x83   :  { %v8657_v20 = vrot.slane %v6121_v33, 7  ;;  %v456_v5 = vmul.f32 %v4021_v19, %v5998_v9  ;;  %v484_v48 = vrot.slane %v6121_v33, 1 }
  0x84   :  { %v6102_v0 = vpop.permute.xlu0 %898  ;;  %1212 = vrot.lane.b32.xlu1 %v758_v61, %s5223_s30 }
  0x85   :  { %v6155_v52 = vsel %vm8774_vm10, %v291_v55, %v8657_v20  ;;  %v870_v55 = vmul.f32 %v4113_v42, %v6019_v39  ;;  %v8777_v20 = vrot.slane %v5266_v2, 7 }
  0x86   :  { %1214 = vrot.lane.b32.xlu0 %v759_v46, %s5223_s30  ;;  %v6110_v62 = vpop.permute.xlu1 %900  ;;  %v215_v46 = vand.u32 7, %v6064_v31 }
  0x88   :  { %v6123_v61 = vpop.permute.xlu0 %1074  ;;  %1040 = vrot.lane.b32.xlu1 %v632_v54, %s5219_s22  ;;  %vm6138_vm12 = vcmp.ge.s32.totalorder %v215_v46, 1  ;;  %vm6209_vm8 = vcmp.le.s32.totalorder %v215_v46, 6 }
  0x89   :  { %vm361_vm2 = vmand %vm329_vm15, %vm6138_vm12 }
  0x8a   :  { %1042 = vrot.lane.b32.xlu0 %v633_v8, %s5219_s22  ;;  %v6130_v37 = vpop.permute.xlu1 %962  ;;  %v4006_v53 = vsel %vm361_vm2, 1.0, %v5218_v21  ;;  %vm8779_vm2 = vmmov %vm8774_vm10  ;;  %vm6196_vm10 = vcmp.le.s32.totalorder %v214_v7, 6 }
  0x8b   :  { %v6160_v31 = vmul.f32 %v4006_v53, %v6155_v52  ;;  %v3995_v53 = vsel %vm8776_vm5, 1.0, %v5218_v21  ;;  %vm538_vm5 = vmand %vm328_vm7, %vm6196_vm10 }
  0x8c   :  { %v6149_v8 = vpop.permute.xlu0 %902  ;;  %1276 = vrot.lane.b32.xlu1 %v806_v58, %s5224_s5  ;;  %v4067_v58 = vsel %vm5990_vm6, 1.0, %v5218_v21  ;;  %vm539_vm7 = vmand %vm329_vm15, %vm6209_vm8 }
  0x8d   :  { %8775 = vst [vmem:[#allocation9_spill] sm:$0xff] %v6160_v31  ;;  %v680_v19 = vmul.f32 %v4067_v58, %v6045_v32 }
  0x8e   :  { %1278 = vrot.lane.b32.xlu0 %v807_v49, %s5224_s5  ;;  %v6163_v43 = vpop.permute.xlu1 %1136 }
  0x90   :  { %v6169_v12 = vpop.permute.xlu0 %1138  ;;  %1088 = vrot.lane.b32.xlu1 %v5938_v14, %s5217_s21  ;;  %v8778_v14 = vrot.slane %v5888_v28, 7 }
  0x92   :  { %916 = vrot.lane.b32.xlu0 %v456_v5, %s5220_s23  ;;  %v6178_v49 = vpop.permute.xlu1 %964  ;;  %v6190_v39 = vsel %vm8779_vm2, %v8778_v14, %v8777_v20  ;;  %v4022_v5 = vsel %vm329_vm15, 1.0, %v5218_v21  ;;  %v4114_v20 = vsel %vm823_vm14, 1.0, %v5218_v21  ;;  %vm8785_vm14 = vcmask 1046528  }
  0x93   :  { %v398_v7 = vmul.f32 %v3995_v53, %v6190_v39  ;;  %v457_v35 = vmul.f32 %v4022_v5, %v6121_v33  ;;  %v4068_v53 = vsel %vm6001_vm1, 1.0, %v5218_v21  ;;  %vm696_vm2 = vcmp.le.s32.totalorder %v5872_v30, 6 }
  0x94   :  { %v6200_v60 = vpop.permute.xlu0 %966  ;;  %1340 = vrot.lane.b32.xlu1 %v870_v55, %s5225_s8  ;;  %v8784_v55 = vrot.slane %v5998_v9, 1  ;;  %v871_v5 = vmul.f32 %v4114_v20, %v6045_v32  ;;  %vm712_vm0 = vmand %vm696_vm2, %vm5892_vm13  ;;  %vm8786_vm15 = vnez %v8704_v36  ;;  %v8787_v20 = vrot.slane %v6206_v40, 1 }
  0x95   :  { %v1377_v11 = vsel %vm8667_vm4, %v398_v7, %v6068_v59  ;;  %v3996_v32 = vsel %vm8786_vm15, 1.0, %v5218_v21  ;;  %v6269_v36 = vadd.s32 96, %v5275_v4  ;;  %vm8664_vm15 = vcmask 97280  }
  0x96   :  { %1152 = vrot.lane.b32.xlu0 %v680_v19, %s5222_s29  ;;  %v1201_v14 = vpop.permute.xlu1 %1200  ;;  %v6223_v46 = vsel %vm8785_vm14, %v8784_v55, %v484_v48  ;;  %v4037_v55 = vsel %vm538_vm5, 1.0, %v5218_v21  ;;  %vm697_vm14 = vcmp.le.s32.totalorder %v5923_v44, 6  ;;  %vm8788_vm5 = vcmask 1046528  }
  0x97   :  { %v681_v57 = vmul.f32 %v4068_v53, %v6223_v46  ;;  %v6257_v59 = vsel %vm8788_vm5, %v484_v48, %v8787_v20  ;;  %v586_v18 = vmul.f32 %v4037_v55, %v6223_v46  ;;  %vm713_vm13 = vmand %vm697_vm14, %vm5950_vm9  ;;  %v1394_v48 = vsel %vm8666_vm3, %v1377_v11, %v6077_v26 }
  0x98   :  { %v6230_v19 = vpop.permute.xlu0 %1202  ;;  %1090 = vrot.lane.b32.xlu1 %v5998_v9, %s5217_s21  ;;  %v4083_v53 = vsel %vm712_vm0, 1.0, %v5218_v21  ;;  %v399_v20 = vmul.f32 %v3996_v32, %v5292_v13  ;;  %v4084_v50 = vsel %vm713_vm13, 1.0, %v5218_v21  ;;  %v1411_v38 = vsel %vm8664_vm15, %v1394_v48, %v6048_v24 }
  0x99   :  { %vm8684_vm9 = vcmask 130048   ;;  %v760_v11 = vmul.f32 %v4083_v53, %v6089_v34  ;;  %v232_v26 = vshra.s32 %v6269_v36, 3  ;;  %vm1444_vm0 = vcmask 162816  }
  0x9a   :  { %918 = vrot.lane.b32.xlu0 %v457_v35, %s5220_s23  ;;  %v6244_v31 = vpop.permute.xlu1 %1028  ;;  %v4038_v35 = vsel %vm539_vm7, 1.0, %v5218_v21  ;;  %v1378_v32 = vsel %vm8667_vm4, %v399_v20, %v6102_v0  ;;  %vm8676_vm7 = vcmask 195584   ;;  %vm8671_vm5 = vcmask 228352  }
  0x9b   :  { %v587_v55 = vmul.f32 %v4038_v35, %v6257_v59  ;;  %v761_v35 = vmul.f32 %v4084_v50, %v6155_v52  ;;  %vm8670_vm13 = vcmask 261120   ;;  %v8789_v48 = vrot.slane %v6121_v33, 7 }
  0x9c   :  { %v6260_v7 = vpop.permute.xlu0 %1030  ;;  %1342 = vrot.lane.b32.xlu1 %v871_v5, %s5225_s8  ;;  %vm8790_vm15 = vcmask 1040384   ;;  %v4054_v0 = vsel %vm6138_vm12, 1.0, %v5218_v21  ;;  %v6314_v50 = vadd.s32 104, %v5275_v4 }
  0x9d   :  { %v6300_v53 = vsel %vm8790_vm15, %v8789_v48, %v8665_v56  ;;  %v1395_v48 = vsel %vm8666_vm3, %v1378_v32, %v6130_v37  ;;  %vm8668_vm15 = vcmask 293888   ;;  %v4100_v37 = vsel %vm697_vm14, 1.0, %v5218_v21 }
  0x9e   :  { %1154 = vrot.lane.b32.xlu0 %v681_v57, %s5222_s29  ;;  %v1265_v5 = vpop.permute.xlu1 %1264  ;;  %v4053_v57 = vsel %vm6082_vm11, 1.0, %v5218_v21  ;;  %vm8791_vm3 = vcmask 97280  }
  0xa0   :  { %v1267_v29 = vpop.permute.xlu0 %1266  ;;  %980 = vrot.lane.b32.xlu1 %v586_v18, %s5221_s26  ;;  %v1428_v18 = vsel %vm8684_vm9, %v1411_v38, %v6006_v15  ;;  %v634_v38 = vmul.f32 %v4053_v57, %v6155_v52  ;;  %v6311_v15 = vand.u32 7, %v232_v26 }
  0xa1   :  { %v1445_v20 = vsel %vm1444_vm0, %v1428_v18, %v6163_v43  ;;  %v4099_v43 = vsel %vm696_vm2, 1.0, %v5218_v21 }
  0xa2   :  { %982 = vrot.lane.b32.xlu0 %v587_v55, %s5221_s26  ;;  %v6290_v24 = vpop.permute.xlu1 %1076  ;;  %v1462_v56 = vsel %vm8676_vm7, %v1445_v20, %v1201_v14  ;;  %v1412_v14 = vsel %vm8791_vm3, %v1395_v48, %v6058_v10  ;;  %vm8669_vm4 = vcmp.ge.s32.totalorder %v6311_v15, 1  ;;  %vm824_vm3 = vmand %vm696_vm2, %vm5990_vm6 }
  0xa3   :  { %v1479_v18 = vsel %vm8671_vm5, %v1462_v56, %v1265_v5  ;;  %v808_v56 = vmul.f32 %v4099_v43, %v5998_v9  ;;  %v233_v5 = vshra.s32 %v6314_v50, 3  ;;  %v1429_v10 = vsel %vm8684_vm9, %v1412_v14, %v6123_v61  ;;  %vm825_vm2 = vmand %vm697_vm14, %vm6001_vm1 }
  0xa4   :  { %v6307_v55 = vpop.permute.xlu0 %904  ;;  %1216 = vrot.lane.b32.xlu1 %v760_v11, %s5223_s30  ;;  %v635_v11 = vmul.f32 %v4054_v0, %v6300_v53  ;;  %v4023_v9 = vsel %vm8669_vm4, 1.0, %v5218_v21  ;;  %v1446_v0 = vsel %vm1444_vm0, %v1429_v10, %v6169_v12  ;;  %v4115_v27 = vsel %vm824_vm3, 1.0, %v5218_v21 }
  0xa5   :  { %v1463_v30 = vsel %vm8676_vm7, %v1446_v0, %v6230_v19  ;;  %v458_v43 = vmul.f32 %v4023_v9, %v6206_v40  ;;  %v6378_v19 = vld [vmem:[%s8640_s0 + $0x60] sm:$0xff]  ;;  %vm8797_vm14 = vcmask 1046528   ;;  %v4070_v9 = vsel %vm6209_vm8, 1.0, %v5218_v21 }
  0xa6   :  { %1218 = vrot.lane.b32.xlu0 %v761_v35, %s5223_s30  ;;  %v1329_v52 = vpop.permute.xlu1 %1328  ;;  %v809_v35 = vmul.f32 %v4100_v37, %v6121_v33  ;;  %v1480_v61 = vsel %vm8671_vm5, %v1463_v30, %v1267_v29  ;;  %v872_v29 = vmul.f32 %v4115_v27, %v6223_v46  ;;  %v488_v46 = vrot.slane %v6378_v19, 1 }
  0xa7   :  { %v1496_v26 = vsel %vm8670_vm13, %v1479_v18, %v1329_v52  ;;  %v4069_v18 = vsel %vm6196_vm10, 1.0, %v5218_v21  ;;  %v216_v52 = vand.u32 7, %v6269_v36  ;;  %v8672_v0 = vrot.slane %v5905_v47, 1 }
  0xa8   :  { %v6331_v57 = vpop.permute.xlu0 %1140  ;;  %1044 = vrot.lane.b32.xlu1 %v634_v38, %s5219_s22  ;;  %4579 = vmatprep.mubr.msk.f32.mxu0 %vm8668_vm15, %v1496_v26  ;;  %v6356_v38 = vand.u32 7, %v233_v5  ;;  %v217_v26 = vand.u32 7, %v6314_v50  ;;  %v682_v37 = vmul.f32 %v4069_v18, %v6257_v59  ;;  %vm8798_vm5 = vcmask 1046528  }
  0xa9   :  { %vm6394_vm3 = vcmp.le.s32.totalorder %v216_v52, 6  ;;  %v297_v18 = vrot.slane %v6378_v19, 7 }
  0xaa   :  { %1046 = vrot.lane.b32.xlu0 %v635_v11, %s5219_s22  ;;  %v6339_v32 = vpop.permute.xlu1 %1078  ;;  %vm8673_vm6 = vcmp.ge.s32.totalorder %v6356_v38, 1  ;;  %vm540_vm1 = vmand %vm8669_vm4, %vm6394_vm3  ;;  %vm699_vm4 = vcmp.le.s32.totalorder %v6113_v63, 6 }
  0xac   :  { %v6353_v20 = vpop.permute.xlu0 %906  ;;  %1280 = vrot.lane.b32.xlu1 %v808_v56, %s5224_s5  ;;  %v4116_v56 = vsel %vm825_vm2, 1.0, %v5218_v21  ;;  %vm698_vm2 = vcmp.le.s32.totalorder %v6061_v25, 6 }
  0xad   :  { %v873_v27 = vmul.f32 %v4116_v56, %v6257_v59  ;;  %v6444_v59 = vsel %vm8798_vm5, %v488_v46, %v8672_v0  ;;  %vm6462_vm5 = vcmp.ge.s32.totalorder %v216_v52, 1 }
  0xae   :  { %1282 = vrot.lane.b32.xlu0 %v809_v35, %s5224_s5  ;;  %v1331_v48 = vpop.permute.xlu1 %1330  ;;  %v8796_v35 = vrot.slane %v6206_v40, 1  ;;  %v4055_v0 = vsel %vm6462_vm5, 1.0, %v5218_v21 }
  0xaf   :  { %v1497_v12 = vsel %vm8670_vm13, %v1480_v61, %v1331_v48  ;;  %v4039_v61 = vsel %vm540_vm1, 1.0, %v5218_v21  ;;  %vm714_vm13 = vmand %vm698_vm2, %vm6082_vm11  ;;  %vm8802_vm1 = vcmask 1040384  }
  0xb0   :  { %v6369_v11 = vpop.permute.xlu0 %1142  ;;  %1092 = vrot.lane.b32.xlu1 %v6121_v33, %s5217_s21  ;;  %4580 = vmatmul.mubr.msk.f32.vlgmr.msra.gmra.mrb[0].mxu0 %vm8668_vm15, %v1497_v12  ;;  %v4024_v33 = vsel %vm8673_vm6, 1.0, %v5218_v21  ;;  %vm6402_vm15 = vcmp.le.s32.totalorder %v217_v26, 6  ;;  %v6415_v10 = vsel %vm8797_vm14, %v8796_v35, %v488_v46  ;;  %vm715_vm11 = vmand %vm699_vm4, %vm6138_vm12  ;;  %v8801_v35 = vrot.slane %v6206_v40, 7 }
  0xb1   :  { %v459_v5 = vmul.f32 %v4024_v33, %v6378_v19  ;;  %vm541_vm14 = vmand %vm8673_vm6, %vm6402_vm15  ;;  %v4085_v33 = vsel %vm714_vm13, 1.0, %v5218_v21  ;;  %vm8803_vm12 = vcmask 31744   ;;  %vm6477_vm13 = vcmp.ge.s32.totalorder %v217_v26, 1 }
  0xb2   :  { %920 = vrot.lane.b32.xlu0 %v458_v43, %s5220_s23  ;;  %v6383_v36 = vpop.permute.xlu1 %968  ;;  %v683_v43 = vmul.f32 %v4070_v9, %v6415_v10  ;;  %v4040_v12 = vsel %vm541_vm14, 1.0, %v5218_v21  ;;  %v6469_v54 = vsel %vm8802_vm1, %v8801_v35, %v297_v18  ;;  %v4086_v9 = vsel %vm715_vm11, 1.0, %v5218_v21 }
  0xb3   :  { %v589_v56 = vmul.f32 %v4040_v12, %v6444_v59  ;;  %v234_v12 = vshra.s32 %v6457_v22, 3  ;;  %vm8806_vm14 = vcmask 64512   ;;  %vm8807_vm11 = vcmask 97280  }
  0xb4   :  { %v6398_v50 = vpop.permute.xlu0 %970  ;;  %1344 = vrot.lane.b32.xlu1 %v872_v29, %s5225_s8  ;;  %v763_v26 = vmul.f32 %v4086_v9, %v6469_v54  ;;  %v636_v9 = vmul.f32 %v4055_v0, %v6469_v54  ;;  %vm8814_vm6 = vcmask 97280  }
  0xb6   :  { %1156 = vrot.lane.b32.xlu0 %v682_v37, %s5222_s29  ;;  %v1205_v44 = vpop.permute.xlu1 %1204  ;;  %v588_v37 = vmul.f32 %v4039_v61, %v6415_v10 }
  0xb8   :  { %v6422_v30 = vpop.permute.xlu0 %1206  ;;  %1094 = vrot.lane.b32.xlu1 %v6206_v40, %s5217_s21 }
  0xba   :  { %922 = vrot.lane.b32.xlu0 %v459_v5, %s5220_s23  ;;  %v6434_v48 = vpop.permute.xlu1 %1032 }
  0xbc   :  { %v6448_v29 = vpop.permute.xlu0 %1034  ;;  %1346 = vrot.lane.b32.xlu1 %v873_v27, %s5225_s8  ;;  %v1379_v27 = vsel %vm8803_vm12, %v5387_v45, %v6110_v62  ;;  %vm8809_vm12 = vcmask 228352  }
  0xbd   :  { %v1396_v35 = vsel %vm8806_vm14, %v1379_v27, %v6178_v49  ;;  %v4056_v27 = vsel %vm6477_vm13, 1.0, %v5218_v21  ;;  %vm8810_vm14 = vcmask 261120  }
  0xbe   :  { %1158 = vrot.lane.b32.xlu0 %v683_v43, %s5222_s29  ;;  %v1269_v46 = vpop.permute.xlu1 %1268  ;;  %v762_v43 = vmul.f32 %v4085_v33, %v6300_v53  ;;  %v1413_v45 = vsel %vm8807_vm11, %v1396_v35, %v6244_v31  ;;  %v8808_v33 = vrot.slane %v5905_v47, 7  ;;  %v6509_v35 = vand.u32 7, %v234_v12 }
  0xbf   :  { %v4102_v12 = vsel %vm699_vm4, 1.0, %v5218_v21  ;;  %vm8811_vm11 = vcmask 31744  }
  0xc0   :  { %v1271_v61 = vpop.permute.xlu0 %1270  ;;  %984 = vrot.lane.b32.xlu1 %v588_v37, %s5221_s26  ;;  %v1430_v37 = vsel %vm8684_vm9, %v1413_v45, %v6290_v24  ;;  %v6498_v49 = vsel %vm8802_vm1, %v297_v18, %v8808_v33  ;;  %v6512_v24 = vadd.s32 120, %v5275_v4  ;;  %v4101_v45 = vsel %vm698_vm2, 1.0, %v5218_v21 }
  0xc1   :  { %v1447_v31 = vsel %vm1444_vm0, %v1430_v37, %v6331_v57  ;;  %vm8812_vm1 = vcmask 293888  }
  0xc2   :  { %986 = vrot.lane.b32.xlu0 %v589_v56, %s5221_s26  ;;  %v6490_v62 = vpop.permute.xlu1 %1080  ;;  %v1464_v18 = vsel %vm8676_vm7, %v1447_v31, %v1205_v44  ;;  %v1380_v44 = vsel %vm8811_vm11, %v5678_v1, %v6149_v8  ;;  %v811_v8 = vmul.f32 %v4102_v12, %v6378_v19  ;;  %vm826_vm11 = vmand %vm698_vm2, %vm6196_vm10  ;;  %vm8815_vm10 = vcmask 228352  }
  0xc3   :  { %v1481_v33 = vsel %vm8809_vm12, %v1464_v18, %v1269_v46  ;;  %v810_v46 = vmul.f32 %v4101_v45, %v6206_v40  ;;  %vm8674_vm12 = vcmp.ge.s32.totalorder %v6509_v35, 1  ;;  %v4117_v42 = vsel %vm826_vm11, 1.0, %v5218_v21  ;;  %vm8817_vm2 = vmmov %vm8812_vm1 }
  0xc4   :  { %v6505_v56 = vpop.permute.xlu0 %908  ;;  %1220 = vrot.lane.b32.xlu1 %v762_v43, %s5223_s30  ;;  %v637_v43 = vmul.f32 %v4056_v27, %v6498_v49 }
  0xc6   :  { %1222 = vrot.lane.b32.xlu0 %v763_v26, %s5223_s30  ;;  %v1333_v57 = vpop.permute.xlu1 %1332  ;;  %v235_v26 = vshra.s32 %v6512_v24, 3 }
  0xc7   :  { %v1498_v0 = vsel %vm8810_vm14, %v1481_v33, %v1333_v57  ;;  %vm8813_vm14 = vcmask 64512   ;;  %v4071_v57 = vsel %vm6394_vm3, 1.0, %v5218_v21 }
  0xc8   :  { %v6528_v37 = vpop.permute.xlu0 %1144  ;;  %1048 = vrot.lane.b32.xlu1 %v636_v9, %s5219_s22  ;;  %4582 = vmatprep.mubr.msk.f32.mxu0 %vm8812_vm1, %v1498_v0  ;;  %v1397_v27 = vsel %vm8813_vm14, %v1380_v44, %v6200_v60  ;;  %v4025_v60 = vsel %vm8674_vm12, 1.0, %v5218_v21  ;;  %v6557_v18 = vand.u32 7, %v235_v26  ;;  %v684_v44 = vmul.f32 %v4071_v57, %v6444_v59  ;;  %vm827_vm14 = vmand %vm699_vm4, %vm6209_vm8 }
  0xc9   :  { %v1414_v31 = vsel %vm8814_vm6, %v1397_v27, %v6260_v7  ;;  %v460_v33 = vmul.f32 %v4025_v60, %v5905_v47  ;;  %vm8816_vm6 = vcmask 261120   ;;  %vm700_vm4 = vcmp.le.s32.totalorder %v6311_v15, 6 }
  0xca   :  { %1050 = vrot.lane.b32.xlu0 %v637_v43, %s5219_s22  ;;  %v6540_v1 = vpop.permute.xlu1 %1082  ;;  %v1431_v40 = vsel %vm8684_vm9, %v1414_v31, %v6339_v32  ;;  %v218_v43 = vand.u32 7, %v6457_v22  ;;  %vm8675_vm1 = vcmp.ge.s32.totalorder %v6557_v18, 1  ;;  %v8822_v27 = vrot.slane %v5905_v47, 1 }
  0xcb   :  { %v1448_v7 = vsel %vm1444_vm0, %v1431_v40, %v6369_v11 }
  0xcc   :  { %v6554_v9 = vpop.permute.xlu0 %910  ;;  %1284 = vrot.lane.b32.xlu1 %v810_v46, %s5224_s5  ;;  %v1465_v25 = vsel %vm8676_vm7, %v1448_v7, %v6422_v30  ;;  %v874_v30 = vmul.f32 %v4117_v42, %v6415_v10  ;;  %v492_v10 = vrot.slane %v5888_v28, 1  ;;  %vm6590_vm11 = vcmp.le.s32.totalorder %v218_v43, 6 }
  0xcd   :  { %v1482_v32 = vsel %vm8815_vm10, %v1465_v25, %v1271_v61  ;;  %v219_v61 = vand.u32 7, %v6512_v24  ;;  %v4118_v46 = vsel %vm827_vm14, 1.0, %v5218_v21  ;;  %vm542_vm8 = vmand %vm8674_vm12, %vm6590_vm11  ;;  %vm701_vm14 = vcmp.le.s32.totalorder %v6356_v38, 6 }
  0xce   :  { %1286 = vrot.lane.b32.xlu0 %v811_v8, %s5224_s5  ;;  %v1335_v45 = vpop.permute.xlu1 %1334  ;;  %v4072_v8 = vsel %vm6402_vm15, 1.0, %v5218_v21  ;;  %v875_v60 = vmul.f32 %v4118_v46, %v6444_v59  ;;  %v4041_v7 = vsel %vm542_vm8, 1.0, %v5218_v21  ;;  %v8824_v59 = vrot.slane %v5266_v2, 1  ;;  %vm717_vm8 = vmand %vm701_vm14, %vm6477_vm13 }
  0xcf   :  { %v1499_v11 = vsel %vm8816_vm6, %v1482_v32, %v1335_v45  ;;  %vm6598_vm10 = vcmp.le.s32.totalorder %v219_v61, 6  ;;  %vm8823_vm6 = vcmask 1046528   ;;  %vm8825_vm12 = vcmask 1046528  }
  0xd0   :  { %v6570_v0 = vpop.permute.xlu0 %1146  ;;  %1096 = vrot.lane.b32.xlu1 %v6378_v19, %s5217_s21  ;;  %4583 = vmatmul.mubr.msk.f32.gmra.mrb[2].mxu0 %vm8817_vm2, %v1499_v11  ;;  %v4026_v19 = vsel %vm8675_vm1, 1.0, %v5218_v21  ;;  %v6612_v31 = vsel %vm8823_vm6, %v8822_v27, %v492_v10  ;;  %vm543_vm2 = vmand %vm8675_vm1, %vm6598_vm10  ;;  %v6639_v32 = vsel %vm8825_vm12, %v492_v10, %v8824_v59  ;;  %vm6653_vm12 = vcmp.ge.s32.totalorder %v218_v43, 1 }
  0xd1   :  { %v461_v26 = vmul.f32 %v4026_v19, %v5888_v28  ;;  %v685_v42 = vmul.f32 %v4072_v8, %v6612_v31  ;;  %vm716_vm6 = vmand %vm700_vm4, %vm6462_vm5  ;;  %v4042_v45 = vsel %vm543_vm2, 1.0, %v5218_v21  ;;  %v590_v11 = vmul.f32 %v4041_v7, %v6612_v31 }
  0xd2   :  { %924 = vrot.lane.b32.xlu0 %v460_v33, %s5220_s23  ;;  %v6579_v12 = vpop.permute.xlu1 %972  ;;  %v4087_v57 = vsel %vm716_vm6, 1.0, %v5218_v21  ;;  %v4088_v19 = vsel %vm717_vm8, 1.0, %v5218_v21  ;;  %vm8828_vm2 = vcmask 31744   ;;  %vm6663_vm6 = vcmp.ge.s32.totalorder %v219_v61, 1 }
  0xd3   :  { %v1381_v10 = vsel %vm8828_vm2, %v5725_v6, %v6307_v55  ;;  %vm8831_vm1 = vcmask 64512   ;;  %v4057_v8 = vsel %vm6653_vm12, 1.0, %v5218_v21  ;;  %vm8832_vm8 = vcmask 97280  }
  0xd4   :  { %v6594_v24 = vpop.permute.xlu0 %974  ;;  %1348 = vrot.lane.b32.xlu1 %v874_v30, %s5225_s8  ;;  %v591_v30 = vmul.f32 %v4042_v45, %v6639_v32  ;;  %v1398_v43 = vsel %vm8831_vm1, %v1381_v10, %v6383_v36  ;;  %v765_v55 = vmul.f32 %v4088_v19, %v5930_v41  ;;  %v4058_v36 = vsel %vm6663_vm6, 1.0, %v5218_v21 }
  0xd5   :  { %v4103_v45 = vsel %vm700_vm4, 1.0, %v5218_v21  ;;  %vm8833_vm1 = vcmask 228352   ;;  %vm8834_vm2 = vcmask 261120  }
  0xd6   :  { %1160 = vrot.lane.b32.xlu0 %v684_v44, %s5222_s29  ;;  %v1209_v63 = vpop.permute.xlu1 %1208 }
  0xd8   :  { %v6617_v40 = vpop.permute.xlu0 %1210  ;;  %1098 = vrot.lane.b32.xlu1 %v5905_v47, %s5217_s21 }
  0xda   :  { %926 = vrot.lane.b32.xlu0 %v461_v26, %s5220_s23  ;;  %v6629_v25 = vpop.permute.xlu1 %1036  ;;  %v764_v26 = vmul.f32 %v4087_v57, %v6498_v49  ;;  %v639_v57 = vmul.f32 %v4058_v36, %v6190_v39 }
  0xdc   :  { %v6642_v33 = vpop.permute.xlu0 %1038  ;;  %1350 = vrot.lane.b32.xlu1 %v875_v60, %s5225_s8  ;;  %v1415_v60 = vsel %vm8832_vm8, %v1398_v43, %v6434_v48  ;;  %v638_v48 = vmul.f32 %v4057_v8, %v5930_v41  ;;  %vm8835_vm8 = vcmask 31744  }
  0xdd   :  { %v1432_v61 = vsel %vm8684_vm9, %v1415_v60, %v6490_v62 }
  0xde   :  { %1162 = vrot.lane.b32.xlu0 %v685_v42, %s5222_s29  ;;  %v1273_v2 = vpop.permute.xlu1 %1272  ;;  %v1449_v7 = vsel %vm1444_vm0, %v1432_v61, %v6528_v37 }
  0xdf   :  { %v1466_v59 = vsel %vm8676_vm7, %v1449_v7, %v1209_v63  ;;  %v1382_v63 = vsel %vm8835_vm8, %v5772_v3, %v6353_v20  ;;  %vm8837_vm7 = vcmask 64512   ;;  %vm828_vm8 = vmand %vm700_vm4, %vm6394_vm3  ;;  %vm702_vm3 = vcmp.le.s32.totalorder %v6509_v35, 6 }
  0xe0   :  { %v1275_v46 = vpop.permute.xlu0 %1274  ;;  %988 = vrot.lane.b32.xlu1 %v590_v11, %s5221_s26  ;;  %v1483_v62 = vsel %vm8833_vm1, %v1466_v59, %v1273_v2  ;;  %vm8836_vm1 = vcmask 293888   ;;  %v812_v2 = vmul.f32 %v4103_v45, %v5905_v47  ;;  %v1399_v10 = vsel %vm8837_vm7, %v1382_v63, %v6398_v50  ;;  %vm829_vm7 = vmand %vm701_vm14, %vm6402_vm15 }
  0xe1   :  { %vm8840_vm4 = vcmask 228352   ;;  %v4120_v60 = vsel %vm829_vm7, 1.0, %v5218_v21  ;;  %vm8842_vm15 = vcmask 293888  }
  0xe2   :  { %990 = vrot.lane.b32.xlu0 %v591_v30, %s5221_s26  ;;  %v6675_v6 = vpop.permute.xlu1 %1084  ;;  %v4104_v30 = vsel %vm701_vm14, 1.0, %v5218_v21  ;;  %vm718_vm14 = vmand %vm702_vm3, %vm6653_vm12  ;;  %v877_v61 = vmul.f32 %v4120_v60, %v6639_v32 }
  0xe3   :  { %v813_v3 = vmul.f32 %v4104_v30, %v5888_v28 }
  0xe4   :  { %v6685_v42 = vpop.permute.xlu0 %912  ;;  %1224 = vrot.lane.b32.xlu1 %v764_v26, %s5223_s30 }
  0xe6   :  { %1226 = vrot.lane.b32.xlu0 %v765_v55, %s5223_s30  ;;  %v1337_v11 = vpop.permute.xlu1 %1336  ;;  %v5215_v55 = vld [vmem:[%s8640_s0 + $0x78] sm:$0xff] }
  0xe7   :  { %v1500_v37 = vsel %vm8834_vm2, %v1483_v62, %v1337_v11  ;;  %vm8838_vm2 = vcmask 97280   ;;  %v4105_v62 = vsel %vm702_vm3, 1.0, %v5218_v21 }
  0xe8   :  { %v6703_v19 = vpop.permute.xlu0 %1148  ;;  %1052 = vrot.lane.b32.xlu1 %v638_v48, %s5219_s22  ;;  %4585 = vmatprep.mubr.msk.f32.mxu0 %vm8836_vm1, %v1500_v37  ;;  %v1416_v26 = vsel %vm8838_vm2, %v1399_v10, %v6448_v29  ;;  %vm8839_vm1 = vcmask 195584   ;;  %v4119_v29 = vsel %vm828_vm8, 1.0, %v5218_v21  ;;  %vm8841_vm2 = vcmask 261120  }
  0xe9   :  { %v1433_v47 = vsel %vm8684_vm9, %v1416_v26, %v6540_v1  ;;  %vm703_vm8 = vcmp.le.s32.totalorder %v6557_v18, 6  ;;  %v4074_v48 = vsel %vm6598_vm10, 1.0, %v5218_v21  ;;  %v814_v37 = vmul.f32 %v5215_v55, %v4105_v62 }
  0xea   :  { %1054 = vrot.lane.b32.xlu0 %v639_v57, %s5219_s22  ;;  %v6713_v43 = vpop.permute.xlu1 %1086  ;;  %v1450_v20 = vsel %vm1444_vm0, %v1433_v47, %v6570_v0  ;;  %vm719_vm7 = vmand %vm703_vm8, %vm6663_vm6  ;;  %v4106_v22 = vsel %vm703_vm8, 1.0, %v5218_v21  ;;  %s5231_s22 = smov 48  }
  0xeb   :  { %v1467_v14 = vsel %vm8839_vm1, %v1450_v20, %v6617_v40  ;;  %v876_v40 = vmul.f32 %v4119_v29, %v6612_v31  ;;  %v4089_v31 = vsel %vm718_vm14, 1.0, %v5218_v21  ;;  %vm830_vm1 = vmand %vm702_vm3, %vm6590_vm11  ;;  %vm8843_vm3 = vcmask 31744  }
  0xec   :  { %v6724_v50 = vpop.permute.xlu0 %914  ;;  %1288 = vrot.lane.b32.xlu1 %v812_v2, %s5224_s5  ;;  %v1484_v1 = vsel %vm8840_vm4, %v1467_v14, %v1275_v46  ;;  %v4073_v46 = vsel %vm6590_vm11, 1.0, %v5218_v21  ;;  %v766_v45 = vmul.f32 %v4089_v31, %v6190_v39  ;;  %v4090_v39 = vsel %vm719_vm7, 1.0, %v5218_v21  ;;  %vm831_vm11 = vmand %vm703_vm8, %vm6598_vm10 }
  0xed   :  { %v686_v7 = vmul.f32 %v4073_v46, %v6639_v32  ;;  %v687_v32 = vmul.f32 %v4074_v48, %v5303_v16  ;;  %v4121_v30 = vsel %vm830_vm1, 1.0, %v5218_v21  ;;  %v767_v2 = vmul.f32 %v4090_v39, %v5292_v13  ;;  %v5216_v13 = vld [vmem:[%s8640_s0] sm:$0xff]  ;;  %vm8850_vm8 = vmmov %vm8843_vm3 }
  0xee   :  { %1290 = vrot.lane.b32.xlu0 %v813_v3, %s5224_s5  ;;  %v1339_v0 = vpop.permute.xlu1 %1338  ;;  %v878_v26 = vmul.f32 %v4121_v30, %v5303_v16  ;;  %v1383_v3 = vsel %vm8843_vm3, %v5832_v17, %v6505_v56  ;;  %v815_v20 = vmul.f32 %v5216_v13, %v4106_v22  ;;  %vm8844_vm4 = vcmask 64512  }
  0xef   :  { %v1501_v8 = vsel %vm8841_vm2, %v1484_v1, %v1339_v0  ;;  %v1400_v16 = vsel %vm8844_vm4, %v1383_v3, %v6579_v12  ;;  %v4122_v58 = vsel %vm831_vm11, 1.0, %v5218_v21  ;;  %vm8845_vm2 = vcmask 97280   ;;  %vm8852_vm1 = vmmov %vm8844_vm4 }
  0xf0   :  { %v6739_v23 = vpop.permute.xlu0 %1150  ;;  %1100 = vrot.lane.b32.xlu1 %v5888_v28, %s5217_s21  ;;  %4586 = vmatmul.mubr.msk.f32.gmra.mrb[4].mxu0 %vm8842_vm15, %v1501_v8  ;;  %v1417_v14 = vsel %vm8845_vm2, %v1400_v16, %v6629_v25  ;;  %v879_v12 = vmul.f32 %v4122_v58, %v5410_v51  ;;  %vm8846_vm10 = vcmask 195584   ;;  %vm8847_vm15 = vcmask 228352   ;;  %vm8853_vm11 = vmmov %vm8845_vm2 }
  0xf1   :  { %v1434_v17 = vsel %vm8684_vm9, %v1417_v14, %v6675_v6  ;;  %vm8848_vm14 = vcmask 261120   ;;  %vm8851_vm7 = vcmask 293888   ;;  %vm8854_vm3 = vmmov %vm8846_vm10  ;;  %v8865_v14 = vld [vmem:[#allocation7_spill] sm:$0xff] }
  0xf2   :  { %1102 = vrot.lane.b32.xlu0 %v5215_v55, %s5217_s21  ;;  %v6756_v28 = vpop.permute.xlu1 %976  ;;  %v1451_v56 = vsel %vm1444_vm0, %v1434_v17, %v6703_v19  ;;  %vm8855_vm4 = vmmov %vm8847_vm15 }
  0xf3   :  { %vm8856_vm2 = vmmov %vm8848_vm14 }
  0xf4   :  { %v6761_v36 = vpop.permute.xlu0 %978  ;;  %1352 = vrot.lane.b32.xlu1 %v876_v40, %s5225_s8  ;;  %v8849_v40 = vld [vmem:[#allocation5_spill] sm:$0xff] }
  0xf5   :  { %v1384_v6 = vsel %vm8850_vm8, %v8849_v40, %v6554_v9 }
  0xf6   :  { %1354 = vrot.lane.b32.xlu0 %v877_v61, %s5225_s8  ;;  %v1213_v59 = vpop.permute.xlu1 %1212  ;;  %v1401_v19 = vsel %vm8852_vm1, %v1384_v6, %v6594_v24 }
  0xf7   :  { %v1468_v0 = vsel %vm8846_vm10, %v1451_v56, %v1213_v59  ;;  %v1418_v51 = vsel %vm8853_vm11, %v1401_v19, %v6642_v33  ;;  %vm8857_vm10 = vmmov %vm8851_vm7 }
  0xf8   :  { %v1215_v11 = vpop.permute.xlu0 %1214  ;;  %1164 = vrot.lane.b32.xlu1 %v686_v7, %s5222_s29  ;;  %v1435_v61 = vsel %vm8684_vm9, %v1418_v51, %v6713_v43  ;;  %v8874_v51 = vld [vmem:[#allocation8_spill] sm:$0xff] }
  0xf9   :  { %v1452_v31 = vsel %vm1444_vm0, %v1435_v61, %v6739_v23  ;;  %v8858_v23 = vld [vmem:[#allocation6_spill] sm:$0xff] }
  0xfa   :  { %1228 = vrot.lane.b32.xlu0 %v766_v45, %s5223_s30  ;;  %v1041_v57 = vpop.permute.xlu1 %1040  ;;  %v1469_v9 = vsel %vm8854_vm3, %v1452_v31, %v1215_v11 }
  0xfc   :  { %v6786_v63 = vpop.permute.xlu0 %1042  ;;  %1166 = vrot.lane.b32.xlu1 %v687_v32, %s5222_s29 }
  0xfe   :  { %1292 = vrot.lane.b32.xlu0 %v814_v37, %s5224_s5  ;;  %v1277_v10 = vpop.permute.xlu1 %1276 }
  0xff   :  { %v1485_v8 = vsel %vm8847_vm15, %v1468_v0, %v1277_v10  ;;  %vm8859_vm15 = vmmov %vm8850_vm8 }
 0x100   :  { %v1279_v47 = vpop.permute.xlu0 %1278  ;;  %1230 = vrot.lane.b32.xlu1 %v767_v2, %s5223_s30  ;;  %v1385_v2 = vsel %vm8859_vm15, %v8858_v23, %v6685_v42  ;;  %vm8861_vm8 = vmmov %vm8853_vm11 }
 0x101   :  { %v1486_v48 = vsel %vm8855_vm4, %v1469_v9, %v1279_v47  ;;  %vm8864_vm11 = vmmov %vm8856_vm2 }
 0x102   :  { %1356 = vrot.lane.b32.xlu0 %v878_v26, %s5225_s8  ;;  %v1089_v29 = vpop.permute.xlu1 %1088 }
 0x104   :  { %v6816_v1 = vpop.permute.xlu0 %916  ;;  %1294 = vrot.lane.b32.xlu1 %v815_v20, %s5224_s5 }
 0x106   :  { %v1341_v25 = vpop.permute.xlu1 %1340 }
 0x107   :  { %v1502_v60 = vsel %vm8848_vm14, %v1485_v8, %v1341_v25  ;;  %vm8860_vm14 = vmmov %vm8852_vm1 }
 0x108   :  { %v1153_v46 = vpop.permute.xlu0 %1152  ;;  %1358 = vrot.lane.b32.xlu1 %v879_v12, %s5225_s8  ;;  %4588 = vmatprep.mubr.msk.f32.mxu0 %vm8851_vm7, %v1502_v60  ;;  %v1402_v22 = vsel %vm8860_vm14, %v1385_v2, %v6756_v28  ;;  %vm8862_vm7 = vmmov %vm8854_vm3 }
 0x109   :  { %v1419_v10 = vsel %vm8861_vm8, %v1402_v22, %v1041_v57  ;;  %vm8863_vm1 = vmmov %vm8855_vm4 }
 0x10a   :  { %v1091_v55 = vpop.permute.xlu1 %1090  ;;  %v1436_v3 = vsel %vm8684_vm9, %v1419_v10, %v1089_v29  ;;  %vm8866_vm3 = vmmov %vm8859_vm15 }
 0x10b   :  { %v1453_v47 = vsel %vm1444_vm0, %v1436_v3, %v1153_v46  ;;  %v1386_v28 = vsel %vm8866_vm3, %v8865_v14, %v6724_v50  ;;  %vm8867_vm4 = vmmov %vm8857_vm10 }
 0x10c   :  { %v6836_v7 = vpop.permute.xlu0 %918  ;;  %vm8870_vm15 = vmmov %vm8862_vm7 }
 0x10e   :  { %v1343_v59 = vpop.permute.xlu1 %1342 }
 0x10f   :  { %v1503_v45 = vsel %vm8856_vm2, %v1486_v48, %v1343_v59  ;;  %vm8868_vm2 = vmmov %vm8860_vm14 }
 0x110   :  { %v1155_v24 = vpop.permute.xlu0 %1154  ;;  %4589 = vmatmul.mubr.msk.f32.gmra.mrb[6].mxu0 %vm8857_vm10, %v1503_v45  ;;  %v1403_v57 = vsel %vm8868_vm2, %v1386_v28, %v6761_v36  ;;  %vm8869_vm10 = vmmov %vm8861_vm8 }
 0x111   :  { %v1420_v29 = vsel %vm8869_vm10, %v1403_v57, %v6786_v63  ;;  %vm8871_vm14 = vmmov %vm8863_vm1 }
 0x112   :  { %v981_v33 = vpop.permute.xlu1 %980  ;;  %v1437_v12 = vsel %vm8684_vm9, %v1420_v29, %v1091_v55  ;;  %vm8872_vm8 = vmmov %vm8864_vm11 }
 0x113   :  { %v1454_v0 = vsel %vm1444_vm0, %v1437_v12, %v1155_v24 }
 0x114   :  { %v983_v62 = vpop.permute.xlu0 %982 }
 0x116   :  { %v1217_v32 = vpop.permute.xlu1 %1216 }
 0x117   :  { %v1470_v20 = vsel %vm8862_vm7, %v1453_v47, %v1217_v32  ;;  %vm8873_vm7 = vmmov %vm8867_vm4 }
 0x118   :  { %v1219_v39 = vpop.permute.xlu0 %1218 }
 0x119   :  { %v1471_v25 = vsel %vm8870_vm15, %v1454_v0, %v1219_v39 }
 0x11a   :  { %v1045_v43 = vpop.permute.xlu1 %1044 }
 0x11c   :  { %v1047_v37 = vpop.permute.xlu0 %1046 }
 0x11e   :  { %v1281_v30 = vpop.permute.xlu1 %1280 }
 0x11f   :  { %v1487_v16 = vsel %vm8863_vm1, %v1470_v20, %v1281_v30  ;;  %vm8875_vm1 = vnez %v8874_v51 }
 0x120   :  { %v1283_v11 = vpop.permute.xlu0 %1282  ;;  %v4005_v55 = vsel %vm8875_vm1, 1.0, %v5218_v21 }
 0x121   :  { %v1488_v60 = vsel %vm8871_vm14, %v1471_v25, %v1283_v11  ;;  %v408_v31 = vmul.f32 %v4005_v55, %v6089_v34 }
 0x122   :  { %v1093_v26 = vpop.permute.xlu1 %1092 }
 0x124   :  { %v6850_v13 = vpop.permute.xlu0 %920 }
 0x126   :  { %v1345_v58 = vpop.permute.xlu1 %1344 }
 0x127   :  { %v1504_v42 = vsel %vm8864_vm11, %v1487_v16, %v1345_v58  ;;  %vm8876_vm11 = vmmov %vm8866_vm3 }
 0x128   :  { %v1157_v17 = vpop.permute.xlu0 %1156  ;;  %4591 = vmatprep.mubr.msk.f32.mxu0 %vm8867_vm4, %v1504_v42  ;;  %v1387_v59 = vsel %vm8876_vm11, %v408_v31, %v6816_v1  ;;  %vm8877_vm3 = vmmov %vm8868_vm2  ;;  %v8882_v1 = vld [vmem:[#allocation9_spill] sm:$0xff] }
 0x129   :  { %v1404_v24 = vsel %vm8877_vm3, %v1387_v59, %v981_v33  ;;  %vm8878_vm4 = vmmov %vm8869_vm10 }
 0x12a   :  { %v1095_v56 = vpop.permute.xlu1 %1094  ;;  %v1421_v32 = vsel %vm8878_vm4, %v1404_v24, %v1045_v43  ;;  %vm8879_vm2 = vmmov %vm8870_vm15 }
 0x12b   :  { %v1438_v30 = vsel %vm8684_vm9, %v1421_v32, %v1093_v26  ;;  %vm8880_vm10 = vmmov %vm8871_vm14 }
 0x12c   :  { %v923_v8 = vpop.permute.xlu0 %922  ;;  %v1455_v23 = vsel %vm1444_vm0, %v1438_v30, %v1157_v17  ;;  %vm8881_vm15 = vmmov %vm8872_vm8 }
 0x12d   :  { %vm8883_vm14 = vmmov %vm8876_vm11 }
 0x12e   :  { %v1347_v50 = vpop.permute.xlu1 %1346  ;;  %v1388_v3 = vsel %vm8883_vm14, %v8882_v1, %v6836_v7  ;;  %vm8886_vm1 = vmmov %vm8878_vm4  ;;  %vm8892_vm14 = vcmp.ge.s32.totalorder %v6356_v38, 1 }
 0x12f   :  { %v1505_v40 = vsel %vm8872_vm8, %v1488_v60, %v1347_v50  ;;  %vm8884_vm8 = vmmov %vm8873_vm7 }
 0x130   :  { %v1159_v6 = vpop.permute.xlu0 %1158  ;;  %4592 = vmatmul.mubr.msk.f32.gmra.mrb[8].mxu0 %vm8873_vm7, %v1505_v40  ;;  %vm8885_vm7 = vmmov %vm8877_vm3 }
 0x131   :  { %v1405_v43 = vsel %vm8885_vm7, %v1388_v3, %v983_v62  ;;  %vm8887_vm11 = vmmov %vm8879_vm2 }
 0x132   :  { %v985_v36 = vpop.permute.xlu1 %984  ;;  %v1422_v26 = vsel %vm8886_vm1, %v1405_v43, %v1047_v37  ;;  %vm8888_vm3 = vmmov %vm8880_vm10 }
 0x133   :  { %v1439_v20 = vsel %vm8684_vm9, %v1422_v26, %v1095_v56  ;;  %vm8889_vm4 = vmmov %vm8881_vm15 }
 0x134   :  { %v987_v46 = vpop.permute.xlu0 %986  ;;  %v1456_v16 = vsel %vm1444_vm0, %v1439_v20, %v1159_v6 }
 0x136   :  { %v1221_v19 = vpop.permute.xlu1 %1220 }
 0x137   :  { %v1472_v11 = vsel %vm8879_vm2, %v1455_v23, %v1221_v19  ;;  %vm8890_vm2 = vmmov %vm8884_vm8 }
 0x138   :  { %v1223_v63 = vpop.permute.xlu0 %1222 }
 0x139   :  { %v1473_v42 = vsel %vm8887_vm11, %v1456_v16, %v1223_v63  ;;  %vm8896_vm11 = vcmp.ge.s32.totalorder %v6509_v35, 1 }
 0x13a   :  { %v1049_v61 = vpop.permute.xlu1 %1048 }
 0x13c   :  { %v1051_v9 = vpop.permute.xlu0 %1050 }
 0x13e   :  { %v1285_v48 = vpop.permute.xlu1 %1284 }
 0x13f   :  { %v1489_v34 = vsel %vm8880_vm10, %v1472_v11, %v1285_v48  ;;  %vm8891_vm10 = vcmp.ge.s32.totalorder %v6311_v15, 1 }
 0x140   :  { %v1287_v45 = vpop.permute.xlu0 %1286 }
 0x141   :  { %v1490_v14 = vsel %vm8888_vm3, %v1473_v42, %v1287_v45  ;;  %vm364_vm3 = vmand %vm8896_vm11, %vm6653_vm12 }
 0x142   :  { %v1097_v39 = vpop.permute.xlu1 %1096 }
 0x144   :  { %v925_v2 = vpop.permute.xlu0 %924 }
 0x146   :  { %v1349_v22 = vpop.permute.xlu1 %1348 }
 0x147   :  { %v1506_v10 = vsel %vm8881_vm15, %v1489_v34, %v1349_v22  ;;  %vm362_vm15 = vmand %vm8891_vm10, %vm6462_vm5  ;;  %vm8893_vm5 = vcmask 31744   ;;  %vm8899_vm10 = vcmask 195584  }
 0x148   :  { %v1161_v33 = vpop.permute.xlu0 %1160  ;;  %4594 = vmatprep.mubr.msk.f32.mxu0 %vm8884_vm8, %v1506_v10  ;;  %vm363_vm8 = vmand %vm8892_vm14, %vm6477_vm13  ;;  %v4007_v56 = vsel %vm362_vm15, 1.0, %v5218_v21  ;;  %vm8895_vm13 = vcmask 97280   ;;  %vm8900_vm15 = vcmask 228352   ;;  %vm8902_vm14 = vcmask 261120  }
 0x149   :  { %v4008_v0 = vsel %vm363_vm8, 1.0, %v5218_v21  ;;  %v410_v25 = vmul.f32 %v4007_v56, %v6300_v53  ;;  %vm8894_vm1 = vmmov %vm8893_vm5  ;;  %v102_v56 = vld [vmem:[%s8641_s1 + $0x2a8] sm:$0xff] }
 0x14a   :  { %v1099_v47 = vpop.permute.xlu1 %1098  ;;  %v411_v5 = vmul.f32 %v4008_v0, %v6469_v54  ;;  %vm8901_vm12 = vmmov %vm8899_vm10 }
 0x14b   :  { %v1389_v15 = vsel %vm8893_vm5, %v410_v25, %v6850_v13  ;;  %vm8903_vm8 = vmmov %vm8900_vm15  ;;  %vm8904_vm5 = vcmask 293888   ;;  %v5226_v25 = vmov 0.0|0.0  }
 0x14c   :  { %v927_v58 = vpop.permute.xlu0 %926  ;;  %v1406_v52 = vsel %vm8885_vm7, %v1389_v15, %v985_v36  ;;  %v1390_v38 = vsel %vm8894_vm1, %v411_v5, %v923_v8  ;;  %v4009_v36 = vsel %vm364_vm3, 1.0, %v5218_v21  ;;  %vm8906_vm1 = vcmp.ge.s32.totalorder %v6557_v18, 1  ;;  %vm8907_vm11 = vmmov %vm8904_vm5  ;;  %4819 = vmatprep.subr.bf16.mxu1 %v5226_v25  ;;  %v105_v5 = vld [vmem:[%s8641_s1 + $0x2c0] sm:$0xff]  ;;  %v106_v15 = vld [vmem:[%s8641_s1 + $0x2c8] sm:$0xff] }
 0x14d   :  { %v1423_v6 = vsel %vm8895_vm13, %v1406_v52, %v1049_v61  ;;  %vm8908_vm3 = vcmask 31744  }
 0x14e   :  { %v1351_v28 = vpop.permute.xlu1 %1350  ;;  %v1440_v54 = vsel %vm8684_vm9, %v1423_v6, %v1097_v39  ;;  %v108_v6 = vld [vmem:[%s8641_s1 + $0x2d8] sm:$0xff] }
 0x14f   :  { %v1507_v7 = vsel %vm8889_vm4, %v1490_v14, %v1351_v28  ;;  %vm8897_vm4 = vmmov %vm8885_vm7  ;;  %v1457_v13 = vsel %vm1444_vm0, %v1440_v54, %v1161_v33 }
 0x150   :  { %v1163_v17 = vpop.permute.xlu0 %1162  ;;  %4595 = vmatmul.mubr.msk.f32.gmra.mrb[10].mxu0 %vm8890_vm2, %v1507_v7  ;;  %v1407_v19 = vsel %vm8897_vm4, %v1390_v38, %v987_v46  ;;  %vm8898_vm2 = vmmov %vm8895_vm13 }
 0x151   :  { %v1424_v63 = vsel %vm8898_vm2, %v1407_v19, %v1051_v9  ;;  %v412_v9 = vmul.f32 %v4009_v36, %v6498_v49  ;;  %vm8905_vm7 = vmmov %vm8902_vm14 }
 0x152   :  { %v989_v57 = vpop.permute.xlu1 %988  ;;  %v1441_v8 = vsel %vm8684_vm9, %v1424_v63, %v1099_v47  ;;  %vm365_vm13 = vmand %vm8906_vm1, %vm6663_vm6 }
 0x153   :  { %v1458_v44 = vsel %vm1444_vm0, %v1441_v8, %v1163_v17  ;;  %v1391_v32 = vsel %vm8908_vm3, %v412_v9, %v925_v2  ;;  %v4010_v49 = vsel %vm365_vm13, 1.0, %v5218_v21  ;;  %vm8909_vm6 = vmmov %vm8899_vm10  ;;  %v6989_v8 = vld [vmem:[%s8641_s1 + $0x3a8] ss:$0 sm:$0xff] }
 0x154   :  { %v991_v62 = vpop.permute.xlu0 %990  ;;  %v1408_v30 = vsel %vm8897_vm4, %v1391_v32, %v989_v57  ;;  %v413_v27 = vmul.f32 %v4010_v49, %v5930_v41 }
 0x156   :  { %v1225_v37 = vpop.permute.xlu1 %1224 }
 0x157   :  { %v1474_v55 = vsel %vm8899_vm10, %v1457_v13, %v1225_v37  ;;  %vm8910_vm10 = vmmov %vm8908_vm3  ;;  %vm8680_vm3 = vcmask 523264  }
 0x158   :  { %v1227_v29 = vpop.permute.xlu0 %1226  ;;  %v1392_v2 = vsel %vm8910_vm10, %v413_v27, %v927_v58 }
 0x159   :  { %v1475_v46 = vsel %vm8901_vm12, %v1458_v44, %v1227_v29  ;;  %vm8912_vm12 = vmmov %vm8897_vm4  ;;  %vm8677_vm4 = vcmask 1041408  }
 0x15a   :  { %v1053_v12 = vpop.permute.xlu1 %1052  ;;  %v1409_v43 = vsel %vm8912_vm12, %v1392_v2, %v991_v62 }
 0x15b   :  { %v1425_v23 = vsel %vm8898_vm2, %v1408_v30, %v1053_v12  ;;  %v103_v12 = vld [vmem:[%s8641_s1 + $0x2b0] sm:$0xff] }
 0x15c   :  { %v1055_v60 = vpop.permute.xlu0 %1054  ;;  %v4820_v0 = vpack.c.bf16 %v103_v12, %v102_v56 }
 0x15e   :  { %v1289_v50 = vpop.permute.xlu1 %1288  ;;  %4821 = vmatpush3.bf16.msra.mxu1 %v4820_v0 }
 0x15f   :  { %v1491_v35 = vsel %vm8900_vm15, %v1474_v55, %v1289_v50  ;;  %vm8911_vm15 = vmmov %vm8903_vm8  ;;  %4822 = vmatprep.subr.bf16.mxu1 %v5226_v25 }
 0x160   :  { %v1291_v40 = vpop.permute.xlu0 %1290  ;;  %vm8916_vm1 = vmmov %vm8911_vm15 }
 0x161   :  { %v1492_v48 = vsel %vm8903_vm8, %v1475_v46, %v1291_v40  ;;  %vm8914_vm8 = vmmov %vm8898_vm2  ;;  %v107_v40 = vld [vmem:[%s8641_s1 + $0x2d0] sm:$0xff]  ;;  %vm8681_vm2 = vcmask 1042432  }
 0x162   :  { %v1101_v53 = vpop.permute.xlu1 %1100  ;;  %v1426_v47 = vsel %vm8914_vm8, %v1409_v43, %v1055_v60  ;;  %v104_v60 = vld [vmem:[%s8641_s1 + $0x2b8] sm:$0xff]  ;;  %v4826_v38 = vpack.c.bf16 %v107_v40, %v106_v15 }
 0x163   :  { %v1442_v34 = vsel %vm8684_vm9, %v1425_v23, %v1101_v53  ;;  %v4823_v50 = vpack.c.bf16 %v105_v5, %v104_v60  ;;  %v109_v53 = vld [vmem:[%s8641_s1 + $0x2e0] sm:$0xff] }
 0x164   :  { %v1103_v51 = vpop.permute.xlu0 %1102  ;;  %v4829_v54 = vpack.c.bf16 %v109_v53, %v108_v6 }
 0x165   :  { %v1443_v41 = vsel %vm8684_vm9, %v1426_v47, %v1103_v51  ;;  %4824 = vmatpush3.bf16.msra.mxu1 %v4823_v50 }
 0x166   :  { %v1353_v61 = vpop.permute.xlu1 %1352  ;;  %4825 = vmatprep.subr.bf16.mxu1 %v5226_v25 }
 0x167   :  { %v1508_v31 = vsel %vm8902_vm14, %v1491_v35, %v1353_v61  ;;  %vm8913_vm14 = vmmov %vm8905_vm7  ;;  %v6996_v35 = vld [vmem:[%s8641_s1 + $0x3a9] ss:$0 sm:$0xff] }
 0x168   :  { %v1355_v59 = vpop.permute.xlu0 %1354  ;;  %4597 = vmatprep.mubr.msk.f32.mxu0 %vm8904_vm5, %v1508_v31  ;;  %vm8917_vm13 = vmmov %vm8913_vm14 }
 0x169   :  { %v1509_v45 = vsel %vm8905_vm7, %v1492_v48, %v1355_v59  ;;  %vm8915_vm7 = vmmov %vm8909_vm6  ;;  %4827 = vmatpush3.bf16.msra.mxu1 %v4826_v38 }
 0x16a   :  { %v1165_v24 = vpop.permute.xlu1 %1164  ;;  %4598 = vmatmul.mubr.msk.f32.gmra.mrb[12].mxu0 %vm8907_vm11, %v1509_v45  ;;  %vm8918_vm11 = vmmov %vm8904_vm5  ;;  %4828 = vmatprep.subr.bf16.mxu1 %v5226_v25 }
 0x16b   :  { %v1459_v18 = vsel %vm1444_vm0, %v1442_v34, %v1165_v24 }
 0x16c   :  { %v1229_v39 = vpop.permute.xlu0 %1228 }
 0x16d   :  { %v1476_v1 = vsel %vm8909_vm6, %v1459_v18, %v1229_v39  ;;  %4830 = vmatpush3.bf16.msra.mxu1 %v4829_v54  ;;  %vm8919_vm6 = vcmask 1040384  }
 0x16e   :  { %v1167_v11 = vpop.permute.xlu1 %1166  ;;  %4831 = vmatprep.subr.bf16.mxu1 %v5226_v25 }
 0x16f   :  { %v1460_v16 = vsel %vm1444_vm0, %v1443_v41, %v1167_v11  ;;  %vm8678_vm0 = vmmov 0  }
 0x170   :  { %v1293_v22 = vpop.permute.xlu0 %1292  ;;  %4619 = vmatprep.mubr.msk.f32.mxu1 %vm8678_vm0, %v5218_v21 }
 0x171   :  { %v1493_v3 = vsel %vm8911_vm15, %v1476_v1, %v1293_v22 }
 0x172   :  { %v1231_v10 = vpop.permute.xlu1 %1230 }
 0x173   :  { %v1477_v42 = vsel %vm8915_vm7, %v1460_v16, %v1231_v10 }
 0x174   :  { %v1357_v33 = vpop.permute.xlu0 %1356 }
 0x175   :  { %v1510_v26 = vsel %vm8913_vm14, %v1493_v3, %v1357_v33 }
 0x176   :  { %v1295_v20 = vpop.permute.xlu1 %1294  ;;  %4600 = vmatprep.mubr.msk.f32.mxu0 %vm8904_vm5, %v1510_v26 }
 0x177   :  { %v1494_v58 = vsel %vm8916_vm1, %v1477_v42, %v1295_v20 }
 0x17a   :  { %v1359_v14 = vpop.permute.xlu1 %1358 }
 0x17b   :  { %v1511_v28 = vsel %vm8917_vm13, %v1494_v58, %v1359_v14 }
 0x17c   :  { %4601 = vmatmul.mubr.msk.f32.gmra.mrb[14].mxu0 %vm8918_vm11, %v1511_v28 }
 0x183   :  { %v4581_v7 = vpop.f32.mrb[0].mxu0 }
 0x184   :  { %v1631_v17 = vpop.f32.mrb[1].mxu0  ;;  %v1715_v55 = vmul.f32 %v4581_v7, %v6989_v8 }
 0x185   :  { %v1714_v44 = vmul.f32 %v6989_v8, %v1631_v17 }
 0x186   :  { %v1735_v46 = vadd.f32 %v6996_v35, %v1715_v55 }
 0x187   :  { %v1734_v31 = vadd.f32 %v6996_v35, %v1714_v44 }
 0x188   :  { %v7002_v48 = vmax.f32 %v1735_v46, 0.0 }
 0x189   :  { %v7004_v59 = vmax.f32 %v1734_v31, 0.0 }
 0x18a   :  { %v1768_v39 = vsel %vm8680_vm3, %v7002_v48, 0.0  ;;  %v1813_v31 = vsel %vm8680_vm3, %v7002_v48, -inf }
 0x18b   :  { %v1767_v49 = vsel %vm8680_vm3, %v7004_v59, 0.0 }
 0x18c   :  { %v1769_v22 = vadd.f32 %v1768_v39, %v1767_v49 }
 0x1a3   :  { %v4584_v57 = vpop.f32.mrb[2].mxu0 }
 0x1a4   :  { %v1641_v62 = vpop.f32.mrb[3].mxu0  ;;  %v1717_v45 = vmul.f32 %v4584_v57, %v6989_v8 }
 0x1a5   :  { %v1716_v61 = vmul.f32 %v6989_v8, %v1641_v62 }
 0x1a6   :  { %v1737_v30 = vadd.f32 %v6996_v35, %v1717_v45 }
 0x1a7   :  { %v1736_v9 = vadd.f32 %v6996_v35, %v1716_v61 }
 0x1a8   :  { %v7022_v1 = vmax.f32 %v1737_v30, 0.0 }
 0x1a9   :  { %v7008_v32 = vmax.f32 %v1736_v9, 0.0  ;;  %v1812_v9 = vsel %vm8680_vm3, %v7004_v59, -inf }
 0x1aa   :  { %v1772_v58 = vsel %vm8680_vm3, %v7022_v1, 0.0  ;;  %v1815_v5 = vsel %vm8680_vm3, %v7022_v1, -inf }
 0x1ab   :  { %v1770_v34 = vsel %vm8680_vm3, %v7008_v32, 0.0  ;;  %v1814_v50 = vsel %vm8680_vm3, %v7008_v32, -inf }
 0x1ac   :  { %v1771_v33 = vadd.f32 %v1770_v34, %v1769_v22 }
 0x1ae   :  { %v1773_v17 = vadd.f32 %v1772_v58, %v1771_v33 }
 0x1c3   :  { %v4587_v37 = vpop.f32.mrb[4].mxu0 }
 0x1c4   :  { %v1651_v29 = vpop.f32.mrb[5].mxu0  ;;  %v1719_v11 = vmul.f32 %v4587_v37, %v6989_v8 }
 0x1c5   :  { %v1718_v24 = vmul.f32 %v6989_v8, %v1651_v29 }
 0x1c6   :  { %v1739_v43 = vadd.f32 %v6996_v35, %v1719_v11 }
 0x1c7   :  { %v1738_v23 = vadd.f32 %v6996_v35, %v1718_v24 }
 0x1c8   :  { %v7037_v7 = vmax.f32 %v1739_v43, 0.0 }
 0x1c9   :  { %v7024_v2 = vmax.f32 %v1738_v23, 0.0 }
 0x1ca   :  { %v1776_v15 = vsel %vm8680_vm3, %v7037_v7, 0.0  ;;  %v1818_v53 = vsel %vm8680_vm3, %v7037_v7, -inf }
 0x1cb   :  { %v1774_v14 = vsel %vm8680_vm3, %v7024_v2, 0.0  ;;  %v1819_v24 = vmax.f32 %v1813_v31, %v1818_v53 }
 0x1cc   :  { %v1775_v29 = vadd.f32 %v1774_v14, %v1773_v17 }
 0x1ce   :  { %v1777_v54 = vadd.f32 %v1776_v15, %v1775_v29 }
 0x1e3   :  { %v4590_v52 = vpop.f32.mrb[6].mxu0 }
 0x1e4   :  { %v1661_v19 = vpop.f32.mrb[7].mxu0  ;;  %v1721_v27 = vmul.f32 %v4590_v52, %v6989_v8 }
 0x1e5   :  { %v1720_v18 = vmul.f32 %v6989_v8, %v1661_v19  ;;  %v1816_v19 = vsel %vm8680_vm3, %v7024_v2, -inf }
 0x1e6   :  { %v1741_v26 = vadd.f32 %v6996_v35, %v1721_v27  ;;  %v1817_v39 = vmax.f32 %v1812_v9, %v1816_v19 }
 0x1e7   :  { %v1740_v47 = vadd.f32 %v6996_v35, %v1720_v18 }
 0x1e8   :  { %v7039_v57 = vmax.f32 %v1741_v26, 0.0 }
 0x1e9   :  { %v7041_v62 = vmax.f32 %v1740_v47, 0.0 }
 0x1ea   :  { %v1822_v40 = vsel %vm8680_vm3, %v7039_v57, -inf  ;;  %v1780_v30 = vsel %vm8680_vm3, %v7039_v57, 0.0 }
 0x1eb   :  { %v1778_v52 = vsel %vm8680_vm3, %v7041_v62, 0.0  ;;  %v1820_v38 = vsel %vm8680_vm3, %v7041_v62, -inf  ;;  %v1823_v44 = vmax.f32 %v1815_v5, %v1822_v40 }
 0x1ec   :  { %v1779_v61 = vadd.f32 %v1778_v52, %v1777_v54  ;;  %v1821_v46 = vmax.f32 %v1814_v50, %v1820_v38 }
 0x1ee   :  { %v1781_v27 = vadd.f32 %v1780_v30, %v1779_v61  ;;  %v1825_v18 = vmax.f32 %v1821_v46, %v1823_v44 }
 0x1f0   :  { %v1782_v47 = vrot.slane %v1781_v27, 4 }
 0x203   :  { %v4593_v63 = vpop.f32.mrb[8].mxu0 }
 0x204   :  { %v1671_v13 = vpop.f32.mrb[9].mxu0  ;;  %v1723_v10 = vmul.f32 %v4593_v63, %v6989_v8 }
 0x205   :  { %v1722_v3 = vmul.f32 %v6989_v8, %v1671_v13 }
 0x206   :  { %v1743_v16 = vadd.f32 %v6996_v35, %v1723_v10  ;;  %v1824_v10 = vmax.f32 %v1817_v39, %v1819_v24 }
 0x207   :  { %v1742_v28 = vadd.f32 %v6996_v35, %v1722_v3 }
 0x208   :  { %v7044_v56 = vmax.f32 %v1743_v16, 0.0 }
 0x209   :  { %v7046_v12 = vmax.f32 %v1742_v28, 0.0 }
 0x20a   :  { %v1791_v63 = vsel %vm8680_vm3, %v7044_v56, 0.0  ;;  %v1834_v5 = vsel %vm8680_vm3, %v7044_v56, -inf }
 0x20b   :  { %v1790_v13 = vsel %vm8680_vm3, %v7046_v12, 0.0 }
 0x20c   :  { %v1792_v49 = vadd.f32 %v1791_v63, %v1790_v13 }
 0x223   :  { %v4596_v51 = vpop.f32.mrb[10].mxu0 }
 0x224   :  { %v1681_v36 = vpop.f32.mrb[11].mxu0  ;;  %v1725_v0 = vmul.f32 %v4596_v51, %v6989_v8 }
 0x225   :  { %v1724_v20 = vmul.f32 %v6989_v8, %v1681_v36 }
 0x226   :  { %v1745_v51 = vadd.f32 %v6996_v35, %v1725_v0  ;;  %v1783_v0 = vadd.f32 %v1782_v47, %v1781_v27 }
 0x227   :  { %v1744_v37 = vadd.f32 %v6996_v35, %v1724_v20  ;;  %v1826_v20 = vmax.f32 %v1824_v10, %v1825_v18 }
 0x228   :  { %v7083_v23 = vmax.f32 %v1745_v51, 0.0 }
 0x229   :  { %v7062_v6 = vmax.f32 %v1744_v37, 0.0 }
 0x22a   :  { %v1795_v3 = vsel %vm8680_vm3, %v7083_v23, 0.0  ;;  %v1836_v15 = vsel %vm8680_vm3, %v7083_v23, -inf }
 0x22b   :  { %v1793_v45 = vsel %vm8680_vm3, %v7062_v6, 0.0  ;;  %v1835_v54 = vsel %vm8680_vm3, %v7062_v6, -inf }
 0x22c   :  { %v1794_v22 = vadd.f32 %v1793_v45, %v1792_v49 }
 0x23d   :  { %v4599_v41 = vpop.f32.mrb[12].mxu0 }
 0x23e   :  { %v1691_v42 = vpop.f32.mrb[13].mxu0  ;;  %v1727_v36 = vmul.f32 %v4599_v41, %v6989_v8  ;;  %v1796_v41 = vadd.f32 %v1795_v3, %v1794_v22 }
 0x23f   :  { %v1726_v60 = vmul.f32 %v6989_v8, %v1691_v42 }
 0x240   :  { %v1747_v11 = vadd.f32 %v6996_v35, %v1727_v36  ;;  %v1784_v36 = vrot.slane %v1783_v0, 2 }
 0x241   :  { %v1746_v55 = vadd.f32 %v6996_v35, %v1726_v60  ;;  %v1827_v60 = vrot.slane %v1826_v20, 4 }
 0x242   :  { %v7090_v33 = vmax.f32 %v1747_v11, 0.0  ;;  %v1785_v24 = vadd.f32 %v1784_v36, %v1783_v0 }
 0x243   :  { %v7086_v34 = vmax.f32 %v1746_v55, 0.0  ;;  %v1828_v46 = vmax.f32 %v1826_v20, %v1827_v60 }
 0x244   :  { %v1839_v17 = vsel %vm8680_vm3, %v7090_v33, -inf  ;;  %v1799_v40 = vsel %vm8680_vm3, %v7090_v33, 0.0  ;;  %v1786_v22 = vrot.slane %v1785_v24, 1 }
 0x245   :  { %v1797_v43 = vsel %vm8680_vm3, %v7086_v34, 0.0  ;;  %v1837_v37 = vsel %vm8680_vm3, %v7086_v34, -inf  ;;  %v1840_v38 = vmax.f32 %v1834_v5, %v1839_v17  ;;  %v1829_v30 = vrot.slane %v1828_v46, 2 }
 0x246   :  { %v1798_v14 = vadd.f32 %v1797_v43, %v1796_v41  ;;  %v1787_v47 = vadd.f32 %v1786_v22, %v1785_v24  ;;  %v2022_v22 = vsub.s32 1, %v5275_v4 }
 0x247   :  { %v1830_v3 = vmax.f32 %v1828_v46, %v1829_v30 }
 0x248   :  { %v1800_v19 = vadd.f32 %v1799_v40, %v1798_v14  ;;  %v110_v14 = vld [vmem:[%s8641_s1 + $0x2e8] sm:$0xff]  ;;  %v1789_v17 = vmul.f32 0.015625, %v1787_v47  ;;  %v113_v40 = vld [vmem:[%s8641_s1 + $0x300] sm:$0xff] }
 0x24f   :  { %v4602_v26 = vpop.f32.mrb[14].mxu0 }
 0x250   :  { %v1729_v16 = vmul.f32 %v4602_v26, %v6989_v8  ;;  %v1701_v42 = vpop.f32.mrb[15].mxu0 }
 0x251   :  { %v1728_v58 = vmul.f32 %v6989_v8, %v1701_v42  ;;  %v1833_v8 = vsel %vm8680_vm3, %v7046_v12, -inf  ;;  %v1831_v42 = vrot.slane %v1830_v3, 1 }
 0x252   :  { %v1749_v28 = vadd.f32 %v6996_v35, %v1729_v16 }
 0x253   :  { %v1748_v29 = vadd.f32 %v6996_v35, %v1728_v58  ;;  %v1838_v35 = vmax.f32 %v1833_v8, %v1837_v37 }
 0x254   :  { %v7104_v50 = vmax.f32 %v1749_v28, 0.0  ;;  %v111_v28 = vld [vmem:[%s8641_s1 + $0x2f0] sm:$0xff] }
 0x255   :  { %v7112_v52 = vmax.f32 %v1748_v29, 0.0  ;;  %v1845_v31 = vmax.f32 %v1838_v35, %v1840_v38  ;;  %v1832_v29 = vmax.f32 %v1830_v3, %v1831_v42  ;;  %v4832_v5 = vpack.c.bf16 %v111_v28, %v110_v14 }
 0x256   :  { %v1843_v53 = vsel %vm8680_vm3, %v7104_v50, -inf  ;;  %v1803_v61 = vsel %vm8680_vm3, %v7104_v50, 0.0 }
 0x257   :  { %v1844_v63 = vmax.f32 %v1836_v15, %v1843_v53  ;;  %v1801_v13 = vsel %vm8680_vm3, %v7112_v52, 0.0  ;;  %v1841_v51 = vsel %vm8680_vm3, %v7112_v52, -inf  ;;  %v112_v15 = vld [vmem:[%s8641_s1 + $0x2f8] sm:$0xff]  ;;  %v114_v53 = vld [vmem:[%s8641_s1 + $0x308] sm:$0xff] }
 0x258   :  { %v1802_v55 = vadd.f32 %v1801_v13, %v1800_v19  ;;  %v1842_v44 = vmax.f32 %v1835_v54, %v1841_v51  ;;  %v4835_v35 = vpack.c.bf16 %v113_v40, %v112_v15  ;;  %v115_v19 = vld [vmem:[%s8641_s1 + $0x310] sm:$0xff]  ;;  %v117_v13 = vld [vmem:[%s8641_s1 + $0x320] sm:$0xff] }
 0x259   :  { %v4838_v54 = vpack.c.bf16 %v115_v19, %v114_v53 }
 0x25a   :  { %v1804_v9 = vadd.f32 %v1803_v61, %v1802_v55  ;;  %v1846_v45 = vmax.f32 %v1842_v44, %v1844_v63  ;;  %v116_v63 = vld [vmem:[%s8641_s1 + $0x318] sm:$0xff] }
 0x25b   :  { %v4841_v51 = vpack.c.bf16 %v117_v13, %v116_v63 }
 0x25c   :  { %v1805_v39 = vrot.slane %v1804_v9, 4  ;;  %v1847_v49 = vmax.f32 %v1845_v31, %v1846_v45 }
 0x25e   :  { %v1806_v11 = vadd.f32 %v1805_v39, %v1804_v9  ;;  %v1848_v27 = vrot.slane %v1847_v49, 4 }
 0x260   :  { %v1807_v18 = vrot.slane %v1806_v11, 2  ;;  %v1849_v10 = vmax.f32 %v1847_v49, %v1848_v27  ;;  %v2018_v49 = vsub.s32 0, %v5275_v4 }
 0x262   :  { %v1808_v43 = vadd.f32 %v1807_v18, %v1806_v11  ;;  %v1850_v26 = vrot.slane %v1849_v10, 2 }
 0x264   :  { %v1809_v41 = vrot.slane %v1808_v43, 1  ;;  %v1851_v16 = vmax.f32 %v1849_v10, %v1850_v26 }
 0x266   :  { %v1810_v20 = vadd.f32 %v1809_v41, %v1808_v43  ;;  %v1852_v58 = vrot.slane %v1851_v16, 1 }
 0x268   :  { %v1811_v37 = vmul.f32 0.015625, %v1810_v20  ;;  %v1853_v0 = vmax.f32 %v1851_v16, %v1852_v58 }
 0x26a   :  { %v1854_v60 = vsel %vm8919_vm6, %v1789_v17, %v1811_v37 }
 0x26b   :  { %v1856_v8 = vsel %vm8677_vm4, %v1854_v60, %v1832_v29 }
 0x26c   :  { %v1858_v38 = vsel %vm8681_vm2, %v1856_v8, %v1853_v0 }
 0x26d   :  { %4620 = vmatmul.mubr.msk.f32.vlgmr.msra.gmra.mrb[0].mxu1 %vm8680_vm3, %v1858_v38 }
 0x26e   :  { %4833 = vmatpush3.bf16.msra.mxu1 %v4832_v5  ;;  %4638 = vmatprep.mubr.msk.f32.mxu1 %vm8678_vm0, %v5218_v21 }
 0x26f   :  { %4834 = vmatprep.subr.bf16.mxu1 %v5226_v25 }
 0x272   :  { %4836 = vmatpush3.bf16.msra.mxu1 %v4835_v35 }
 0x273   :  { %4837 = vmatprep.subr.bf16.mxu1 %v5226_v25 }
 0x276   :  { %4839 = vmatpush3.bf16.msra.mxu1 %v4838_v54 }
 0x277   :  { %4840 = vmatprep.subr.bf16.mxu1 %v5226_v25 }
 0x27a   :  { %4842 = vmatpush3.bf16.msra.mxu1 %v4841_v51 }
 0x340   :  { %v1928_v36 = vpop.f32.mrb[0].mxu1 }
 0x341   :  { %v1932_v55 = vmax.f32 %v1928_v36, 0.0  ;;  %v4621_v44 = vpop.f32.mrb[1].mxu1 }
 0x343   :  { %4639 = vmatmul.mubr.msk.f32.vlgmr.msra.gmra.mrb[2].mxu1 %vm8680_vm3, %v1932_v55 }
 0x416   :  { %v2002_v61 = vpop.f32.mrb[2].mxu1 }
 0x417   :  { %v2007_v46 = vrot.slane %v2002_v61, 2  ;;  %v4640_v31 = vpop.f32.mrb[3].mxu1 }
 0x419   :  { %v2009_v9 = vadd.f32 %v2007_v46, %v2002_v61 }
 0x41b   :  { %v4144_v45 = vmul.f32 -1.442695, %v2009_v9 }
 0x41d   :  { %5207 = vpow2.f32 %v4144_v45 }
 0x427   :  { %v5208_v24 = vpop.eup %5207 }
 0x428   :  { %v2013_v39 = vadd.f32 1.0, %v5208_v24 }
 0x42a   :  { %5209 = vrcp.f32 %v2013_v39 }
 0x434   :  { %v5210_v30 = vpop.eup %5209 }
 0x435   :  { %v2019_v11 = vrot.slane %v5210_v30, %v2018_v49 }
 0x437   :  { %v7162_v27 = vmul.f32 %v2019_v11, %v7002_v48  ;;  %v7165_v18 = vmul.f32 %v2019_v11, %v7004_v59  ;;  %v7176_v48 = vmul.f32 %v2019_v11, %v7022_v1  ;;  %v7179_v59 = vmul.f32 %v2019_v11, %v7008_v32 }
 0x438   :  { %v7194_v32 = vmul.f32 %v2019_v11, %v7037_v7  ;;  %v7197_v1 = vmul.f32 %v2019_v11, %v7024_v2  ;;  %v7212_v2 = vmul.f32 %v2019_v11, %v7039_v57  ;;  %v7215_v7 = vmul.f32 %v2019_v11, %v7041_v62 }
 0x439   :  { %2058 = vrot.lane.b32.xlu1 %v7162_v27, %s5228_s11  ;;  %2056 = vrot.lane.b32.xlu0 %v7165_v18, %s5228_s11  ;;  %v2023_v57 = vrot.slane %v5210_v30, %v2022_v22 }
 0x43b   :  { %v7233_v62 = vmul.f32 %v2023_v57, %v7044_v56  ;;  %v7236_v10 = vmul.f32 %v2023_v57, %v7046_v12  ;;  %v7251_v56 = vmul.f32 %v2023_v57, %v7083_v23  ;;  %v7254_v12 = vmul.f32 %v2023_v57, %v7062_v6 }
 0x43c   :  { %v7269_v6 = vmul.f32 %v2023_v57, %v7090_v33  ;;  %v7272_v23 = vmul.f32 %v2023_v57, %v7086_v34  ;;  %v7287_v34 = vmul.f32 %v2023_v57, %v7104_v50  ;;  %v7290_v33 = vmul.f32 %v2023_v57, %v7112_v52  ;;  %v139_v50 = vld [vmem:[%s8642_s2] sm:$0xff] }
 0x43d   :  { %2122 = vrot.lane.b32.xlu1 %v7162_v27, %s5229_s12  ;;  %2120 = vrot.lane.b32.xlu0 %v7165_v18, %s5229_s12 }
 0x43e   :  { %4673 = vmatprep.mubr.f32.mxu0 %v139_v50 }
 0x441   :  { %2062 = vrot.lane.b32.xlu1 %v7176_v48, %s5228_s11  ;;  %2060 = vrot.lane.b32.xlu0 %v7179_v59, %s5228_s11 }
 0x445   :  { %2186 = vrot.lane.b32.xlu1 %v7162_v27, %s5230_s13  ;;  %2184 = vrot.lane.b32.xlu0 %v7165_v18, %s5230_s13 }
 0x449   :  { %2126 = vrot.lane.b32.xlu1 %v7176_v48, %s5229_s12  ;;  %2124 = vrot.lane.b32.xlu0 %v7179_v59, %s5229_s12 }
 0x44d   :  { %2066 = vrot.lane.b32.xlu1 %v7194_v32, %s5228_s11  ;;  %2064 = vrot.lane.b32.xlu0 %v7197_v1, %s5228_s11 }
 0x451   :  { %2190 = vrot.lane.b32.xlu1 %v7176_v48, %s5230_s13  ;;  %2188 = vrot.lane.b32.xlu0 %v7179_v59, %s5230_s13 }
 0x455   :  { %2130 = vrot.lane.b32.xlu1 %v7194_v32, %s5229_s12  ;;  %2128 = vrot.lane.b32.xlu0 %v7197_v1, %s5229_s12 }
 0x459   :  { %2070 = vrot.lane.b32.xlu1 %v7212_v2, %s5228_s11  ;;  %2068 = vrot.lane.b32.xlu0 %v7215_v7, %s5228_s11 }
 0x45d   :  { %2194 = vrot.lane.b32.xlu1 %v7194_v32, %s5230_s13  ;;  %2192 = vrot.lane.b32.xlu0 %v7197_v1, %s5230_s13 }
 0x461   :  { %2134 = vrot.lane.b32.xlu1 %v7212_v2, %s5229_s12  ;;  %2132 = vrot.lane.b32.xlu0 %v7215_v7, %s5229_s12 }
 0x465   :  { %2074 = vrot.lane.b32.xlu1 %v7233_v62, %s5228_s11  ;;  %2072 = vrot.lane.b32.xlu0 %v7236_v10, %s5228_s11 }
 0x469   :  { %2198 = vrot.lane.b32.xlu1 %v7212_v2, %s5230_s13  ;;  %2196 = vrot.lane.b32.xlu0 %v7215_v7, %s5230_s13 }
 0x46d   :  { %2138 = vrot.lane.b32.xlu1 %v7233_v62, %s5229_s12  ;;  %2136 = vrot.lane.b32.xlu0 %v7236_v10, %s5229_s12 }
 0x471   :  { %2078 = vrot.lane.b32.xlu1 %v7251_v56, %s5228_s11  ;;  %2076 = vrot.lane.b32.xlu0 %v7254_v12, %s5228_s11 }
 0x475   :  { %2202 = vrot.lane.b32.xlu1 %v7233_v62, %s5230_s13  ;;  %2200 = vrot.lane.b32.xlu0 %v7236_v10, %s5230_s13 }
 0x479   :  { %2142 = vrot.lane.b32.xlu1 %v7251_v56, %s5229_s12  ;;  %2140 = vrot.lane.b32.xlu0 %v7254_v12, %s5229_s12 }
 0x47d   :  { %2082 = vrot.lane.b32.xlu1 %v7269_v6, %s5228_s11  ;;  %2080 = vrot.lane.b32.xlu0 %v7272_v23, %s5228_s11 }
 0x481   :  { %2206 = vrot.lane.b32.xlu1 %v7251_v56, %s5230_s13  ;;  %2204 = vrot.lane.b32.xlu0 %v7254_v12, %s5230_s13 }
 0x485   :  { %2146 = vrot.lane.b32.xlu1 %v7269_v6, %s5229_s12  ;;  %2144 = vrot.lane.b32.xlu0 %v7272_v23, %s5229_s12 }
 0x489   :  { %2086 = vrot.lane.b32.xlu1 %v7287_v34, %s5228_s11  ;;  %2084 = vrot.lane.b32.xlu0 %v7290_v33, %s5228_s11 }
 0x48d   :  { %2210 = vrot.lane.b32.xlu1 %v7269_v6, %s5230_s13  ;;  %2208 = vrot.lane.b32.xlu0 %v7272_v23, %s5230_s13 }
 0x491   :  { %2150 = vrot.lane.b32.xlu1 %v7287_v34, %s5229_s12  ;;  %2148 = vrot.lane.b32.xlu0 %v7290_v33, %s5229_s12 }
 0x495   :  { %2214 = vrot.lane.b32.xlu1 %v7287_v34, %s5230_s13  ;;  %2212 = vrot.lane.b32.xlu0 %v7290_v33, %s5230_s13 }
 0x4ab   :  { %v2059_v52 = vpop.permute.xlu1 %2058  ;;  %v2057_v3 = vpop.permute.xlu0 %2056 }
 0x4ac   :  { %v2105_v16 = vadd.f32 %v2059_v52, %v7162_v27  ;;  %v2104_v42 = vadd.f32 %v2057_v3, %v7165_v18 }
 0x4af   :  { %v2123_v43 = vpop.permute.xlu1 %2122  ;;  %v2121_v26 = vpop.permute.xlu0 %2120 }
 0x4b0   :  { %v2169_v20 = vadd.f32 %v2123_v43, %v2105_v16  ;;  %v2168_v58 = vadd.f32 %v2121_v26, %v2104_v42 }
 0x4b3   :  { %v2063_v47 = vpop.permute.xlu1 %2062  ;;  %v2061_v41 = vpop.permute.xlu0 %2060 }
 0x4b4   :  { %v2107_v15 = vadd.f32 %v2063_v47, %v7176_v48  ;;  %v2106_v40 = vadd.f32 %v2061_v41, %v7179_v59 }
 0x4b7   :  { %v2187_v14 = vpop.permute.xlu1 %2186  ;;  %v2185_v28 = vpop.permute.xlu0 %2184 }
 0x4b8   :  { %v2233_v17 = vadd.f32 %v2187_v14, %v2169_v20  ;;  %v2232_v37 = vadd.f32 %v2185_v28, %v2168_v58 }
 0x4ba   :  { %v4843_v29 = vpack.c.bf16 %v2233_v17, %v2232_v37 }
 0x4bb   :  { %v2127_v0 = vpop.permute.xlu1 %2126  ;;  %v2125_v60 = vpop.permute.xlu0 %2124 }
 0x4bc   :  { %4844 = vmatprep.subr.bf16.mxu0 %v4843_v29  ;;  %v2171_v38 = vadd.f32 %v2127_v0, %v2107_v15  ;;  %v2170_v35 = vadd.f32 %v2125_v60, %v2106_v40 }
 0x4bd   :  { %4846 = vmatpush3.bf16.msra.mxu0 %v4843_v29 }
 0x4bf   :  { %v2067_v5 = vpop.permute.xlu1 %2066  ;;  %v2065_v8 = vpop.permute.xlu0 %2064 }
 0x4c0   :  { %v2109_v61 = vadd.f32 %v2067_v5, %v7194_v32  ;;  %v2108_v46 = vadd.f32 %v2065_v8, %v7197_v1 }
 0x4c3   :  { %v2191_v53 = vpop.permute.xlu1 %2190  ;;  %v2189_v19 = vpop.permute.xlu0 %2188 }
 0x4c4   :  { %v2235_v54 = vadd.f32 %v2191_v53, %v2171_v38  ;;  %v2234_v63 = vadd.f32 %v2189_v19, %v2170_v35 }
 0x4c6   :  { %v4847_v13 = vpack.c.bf16 %v2235_v54, %v2234_v63 }
 0x4c7   :  { %v2131_v51 = vpop.permute.xlu1 %2130  ;;  %v2129_v36 = vpop.permute.xlu0 %2128 }
 0x4c8   :  { %4848 = vmatprep.subr.bf16.mxu0 %v4847_v13  ;;  %v2173_v31 = vadd.f32 %v2131_v51, %v2109_v61  ;;  %v2172_v9 = vadd.f32 %v2129_v36, %v2108_v46 }
 0x4c9   :  { %4850 = vmatpush3.bf16.msra.mxu0 %v4847_v13 }
 0x4cb   :  { %v2071_v55 = vpop.permute.xlu1 %2070  ;;  %v2069_v44 = vpop.permute.xlu0 %2068 }
 0x4cc   :  { %v2111_v57 = vadd.f32 %v2071_v55, %v7212_v2  ;;  %v2110_v50 = vadd.f32 %v2069_v44, %v7215_v7 }
 0x4cf   :  { %v2195_v45 = vpop.permute.xlu1 %2194  ;;  %v2193_v24 = vpop.permute.xlu0 %2192 }
 0x4d0   :  { %v2237_v39 = vadd.f32 %v2195_v45, %v2173_v31  ;;  %v2236_v30 = vadd.f32 %v2193_v24, %v2172_v9 }
 0x4d2   :  { %v4851_v11 = vpack.c.bf16 %v2237_v39, %v2236_v30 }
 0x4d3   :  { %v2135_v27 = vpop.permute.xlu1 %2134  ;;  %v2133_v18 = vpop.permute.xlu0 %2132 }
 0x4d4   :  { %4852 = vmatprep.subr.bf16.mxu0 %v4851_v11  ;;  %v2175_v32 = vadd.f32 %v2135_v27, %v2111_v57  ;;  %v2174_v52 = vadd.f32 %v2133_v18, %v2110_v50 }
 0x4d5   :  { %4854 = vmatpush3.bf16.msra.mxu0 %v4851_v11 }
 0x4d7   :  { %v2075_v48 = vpop.permute.xlu1 %2074  ;;  %v2073_v59 = vpop.permute.xlu0 %2072 }
 0x4d8   :  { %v2113_v58 = vadd.f32 %v2075_v48, %v7233_v62  ;;  %v2112_v14 = vadd.f32 %v2073_v59, %v7236_v10 }
 0x4db   :  { %v2199_v1 = vpop.permute.xlu1 %2198  ;;  %v2197_v3 = vpop.permute.xlu0 %2196 }
 0x4dc   :  { %v2239_v43 = vadd.f32 %v2199_v1, %v2175_v32  ;;  %v2238_v26 = vadd.f32 %v2197_v3, %v2174_v52  ;;  %v140_v32 = vld [vmem:[%s8642_s2 + $0x10] sm:$0xff]  ;;  %v143_v52 = vld [vmem:[%s8642_s2 + $0x40] sm:$0xff] }
 0x4dd   :  { %v144_v1 = vld [vmem:[%s8642_s2 + $0x50] sm:$0xff]  ;;  %v145_v3 = vld [vmem:[%s8642_s2 + $0x60] sm:$0xff] }
 0x4de   :  { %v4855_v47 = vpack.c.bf16 %v2239_v43, %v2238_v26  ;;  %v146_v43 = vld [vmem:[%s8642_s2 + $0x70] sm:$0xff]  ;;  %v147_v26 = vld [vmem:[%s8642_s2 + $0x80] sm:$0xff] }
 0x4df   :  { %v2139_v41 = vpop.permute.xlu1 %2138  ;;  %v2137_v16 = vpop.permute.xlu0 %2136 }
 0x4e0   :  { %4856 = vmatprep.subr.bf16.mxu0 %v4855_v47  ;;  %v2177_v2 = vadd.f32 %v2139_v41, %v2113_v58  ;;  %v2176_v28 = vadd.f32 %v2137_v16, %v2112_v14  ;;  %v149_v41 = vld [vmem:[%s8642_s2 + $0xa0] sm:$0xff]  ;;  %v150_v16 = vld [vmem:[%s8642_s2 + $0xb0] sm:$0xff] }
 0x4e1   :  { %4858 = vmatpush3.bf16.msra.mxu0 %v4855_v47  ;;  %v148_v47 = vld [vmem:[%s8642_s2 + $0x90] sm:$0xff]  ;;  %v153_v58 = vld [vmem:[%s8642_s2 + $0xe0] sm:$0xff] }
 0x4e2   :  { %v154_v14 = vld [vmem:[%s8642_s2 + $0xf0] sm:$0xff] }
 0x4e3   :  { %v2079_v42 = vpop.permute.xlu1 %2078  ;;  %v2077_v20 = vpop.permute.xlu0 %2076 }
 0x4e4   :  { %v2115_v40 = vadd.f32 %v2079_v42, %v7251_v56  ;;  %v2114_v38 = vadd.f32 %v2077_v20, %v7254_v12  ;;  %v151_v42 = vld [vmem:[%s8642_s2 + $0xc0] sm:$0xff]  ;;  %v152_v20 = vld [vmem:[%s8642_s2 + $0xd0] sm:$0xff] }
 0x4e7   :  { %v2203_v7 = vpop.permute.xlu1 %2202  ;;  %v2201_v17 = vpop.permute.xlu0 %2200 }
 0x4e8   :  { %v2241_v37 = vadd.f32 %v2203_v7, %v2177_v2  ;;  %v2240_v29 = vadd.f32 %v2201_v17, %v2176_v28 }
 0x4ea   :  { %v4859_v0 = vpack.c.bf16 %v2241_v37, %v2240_v29 }
 0x4eb   :  { %v2143_v60 = vpop.permute.xlu1 %2142  ;;  %v2141_v5 = vpop.permute.xlu0 %2140 }
 0x4ec   :  { %4860 = vmatprep.subr.bf16.mxu0 %v4859_v0  ;;  %v2179_v62 = vadd.f32 %v2143_v60, %v2115_v40  ;;  %v2178_v35 = vadd.f32 %v2141_v5, %v2114_v38  ;;  %v2454_v40 = vand.u32 3, %v5275_v4 }
 0x4ed   :  { %4862 = vmatpush3.bf16.msra.mxu0 %v4859_v0 }
 0x4ee   :  { %vm7392_vm15 = vcmp.ge.s32.totalorder %v2454_v40, 1  ;;  %vm7396_vm12 = vcmp.le.s32.totalorder %v2454_v40, 2  ;;  %v72_v40 = vld [vmem:[%s8641_s1 + $0x1b8] sm:$0xff] }
 0x4ef   :  { %v2083_v8 = vpop.permute.xlu1 %2082  ;;  %v2081_v15 = vpop.permute.xlu0 %2080 }
 0x4f0   :  { %v2117_v44 = vadd.f32 %v2083_v8, %v7269_v6  ;;  %v2116_v61 = vadd.f32 %v2081_v15, %v7272_v23  ;;  %v2458_v15 = vshra.s32 %v5275_v4, 2  ;;  %v156_v4 = vld [vmem:[%s8642_s2 + $0x18] sm:$0xff] }
 0x4f2   :  { %v7387_v38 = vand.u32 3, %v2458_v15 }
 0x4f3   :  { %v2207_v10 = vpop.permute.xlu1 %2206  ;;  %v2205_v53 = vpop.permute.xlu0 %2204 }
 0x4f4   :  { %v2243_v19 = vadd.f32 %v2207_v10, %v2179_v62  ;;  %v2242_v54 = vadd.f32 %v2205_v53, %v2178_v35  ;;  %v8920_v35 = vld [vmem:[#allocation2_spill] sm:$0xff]  ;;  %vm8682_vm10 = vcmp.ge.s32.totalorder %v7387_v38, 1  ;;  %vm8685_vm5 = vcmp.le.s32.totalorder %v7387_v38, 2 }
 0x4f5   :  { %v2459_v10 = vshra.s32 %v8920_v35, 2  ;;  %vm7404_vm14 = vmand %vm8682_vm10, %vm7396_vm12 }
 0x4f6   :  { %v4863_v63 = vpack.c.bf16 %v2243_v19, %v2242_v54  ;;  %vm7413_vm8 = vmand %vm8682_vm10, %vm7392_vm15 }
 0x4f7   :  { %v2147_v13 = vpop.permute.xlu1 %2146  ;;  %v2145_v51 = vpop.permute.xlu0 %2144  ;;  %vm7438_vm11 = vmand %vm8685_vm5, %vm7392_vm15 }
 0x4f8   :  { %4864 = vmatprep.subr.bf16.mxu0 %v4863_v63  ;;  %v2181_v56 = vadd.f32 %v2147_v13, %v2117_v44  ;;  %v2180_v46 = vadd.f32 %v2145_v51, %v2116_v61  ;;  %v8927_v13 = vld [vmem:[#allocation4_spill] sm:$0xff]  ;;  %v2455_v44 = vand.u32 3, %v8920_v35  ;;  %v7418_v61 = vand.u32 3, %v2459_v10  ;;  %vm7475_vm10 = vmand %vm8685_vm5, %vm7396_vm12  ;;  %v42_v35 = vld [vmem:[%s8641_s1 + $0xc8] sm:$0xff] }
 0x4f9   :  { %4866 = vmatpush3.bf16.msra.mxu0 %v4863_v63  ;;  %v2461_v51 = vshra.s32 %v8927_v13, 2 }
 0x4fa   :  { %vm8683_vm7 = vcmp.ge.s32.totalorder %v7418_v61, 1  ;;  %vm7426_vm1 = vcmp.le.s32.totalorder %v2455_v44, 2  ;;  %vm7430_vm13 = vcmp.ge.s32.totalorder %v2455_v44, 1 }
 0x4fb   :  { %v2087_v36 = vpop.permute.xlu1 %2086  ;;  %v2085_v55 = vpop.permute.xlu0 %2084  ;;  %vm7454_vm0 = vmand %vm8683_vm7, %vm7426_vm1 }
 0x4fc   :  { %v2119_v11 = vadd.f32 %v2087_v36, %v7287_v34  ;;  %v2118_v27 = vadd.f32 %v2085_v55, %v7290_v33  ;;  %v141_v34 = vld [vmem:[%s8642_s2 + $0x20] sm:$0xff]  ;;  %v142_v33 = vld [vmem:[%s8642_s2 + $0x30] sm:$0xff]  ;;  %vm7466_vm2 = vmand %vm8683_vm7, %vm7430_vm13 }
 0x4ff   :  { %v2211_v12 = vpop.permute.xlu1 %2210  ;;  %v2209_v31 = vpop.permute.xlu0 %2208 }
 0x500   :  { %v2245_v9 = vadd.f32 %v2211_v12, %v2181_v56  ;;  %v2244_v45 = vadd.f32 %v2209_v31, %v2180_v46  ;;  %v8930_v46 = vld [vmem:[#allocation3_spill] sm:$0xff]  ;;  %v2457_v31 = vand.u32 3, %v8927_v13  ;;  %v56_v13 = vld [vmem:[%s8641_s1 + $0x138] sm:$0xff] }
 0x501   :  { %v2460_v12 = vshra.s32 %v8930_v46, 2 }
 0x502   :  { %v4867_v24 = vpack.c.bf16 %v2245_v9, %v2244_v45  ;;  %v7423_v9 = vand.u32 3, %v2461_v51  ;;  %vm7445_vm6 = vcmp.ge.s32.totalorder %v2457_v31, 1  ;;  %vm7458_vm3 = vcmp.le.s32.totalorder %v2457_v31, 2  ;;  %v57_v51 = vld [vmem:[%s8641_s1 + $0x140] sm:$0xff]  ;;  %v74_v31 = vld [vmem:[%s8641_s1 + $0x1c8] sm:$0xff] }
 0x503   :  { %v2151_v39 = vpop.permute.xlu1 %2150  ;;  %v2149_v30 = vpop.permute.xlu0 %2148  ;;  %v4913_v44 = vpack.c.bf16 %v57_v51, %v56_v13  ;;  %v48_v13 = vld [vmem:[%s8641_s1 + $0xf8] sm:$0xff]  ;;  %v49_v51 = vld [vmem:[%s8641_s1 + $0x100] sm:$0xff] }
 0x504   :  { %4868 = vmatprep.subr.bf16.mxu0 %v4867_v24  ;;  %v2183_v18 = vadd.f32 %v2151_v39, %v2119_v11  ;;  %v2182_v48 = vadd.f32 %v2149_v30, %v2118_v27  ;;  %v2456_v27 = vand.u32 3, %v8930_v46  ;;  %vm8686_vm4 = vcmp.le.s32.totalorder %v7423_v9, 2  ;;  %v32_v46 = vld [vmem:[%s8641_s1 + $0x78] sm:$0xff] }
 0x505   :  { %4870 = vmatpush3.bf16.msra.mxu0 %v4867_v24  ;;  %vm7484_vm7 = vmand %vm8686_vm4, %vm7445_vm6  ;;  %v68_v30 = vld [vmem:[%s8641_s1 + $0x198] sm:$0xff]  ;;  %v4160_v24 = vsel %vm7445_vm6, 1.0, %v5218_v21 }
 0x506   :  { %vm7499_vm5 = vmand %vm8686_vm4, %vm7458_vm3  ;;  %vm7648_vm4 = vcmp.ge.s32.totalorder %v2456_v27, 1 }
 0x507   :  { %v2215_v6 = vpop.permute.xlu1 %2214  ;;  %v2213_v59 = vpop.permute.xlu0 %2212  ;;  %v4159_v54 = vsel %vm7648_vm4, 1.0, %v5218_v21 }
 0x508   :  { %v2247_v23 = vadd.f32 %v2215_v6, %v2183_v18  ;;  %v2246_v57 = vadd.f32 %v2213_v59, %v2182_v48  ;;  %v7443_v18 = vand.u32 3, %v2460_v12  ;;  %v8939_v6 = vmov 0  ;;  %v27_v12 = vld [vmem:[%s8641_s1 + $0x50] sm:$0xff] }
 0x509   :  { %v8940_v6 = vsel %vm7454_vm0, 4294967295, %v8939_v6 }
 0x50a   :  { %v4871_v50 = vpack.c.bf16 %v2247_v23, %v2246_v57  ;;  %v8943_v23 = vmov 0  ;;  %v8945_v57 = vmov 0  ;;  %vm8687_vm9 = vcmp.ge.s32.totalorder %v7443_v18, 1 }
 0x50b   :  { %v8944_v23 = vsel %vm7466_vm2, 4294967295, %v8943_v23  ;;  %v8946_v57 = vsel %vm7475_vm10, 4294967295, %v8945_v57  ;;  %vm7491_vm2 = vcmp.le.s32.totalorder %v2456_v27, 2  ;;  %vm8688_vm10 = vcmp.le.s32.totalorder %v7418_v61, 2  ;;  %v33_v27 = vld [vmem:[%s8641_s1 + $0x80] sm:$0xff] }
 0x50c   :  { %4872 = vmatprep.subr.bf16.mxu0 %v4871_v50  ;;  %vm7516_vm0 = vmand %vm8688_vm10, %vm7426_vm1  ;;  %vm8962_vm10 = vcmp.ge.s32.totalorder %v7443_v18, 1 }
 0x50d   :  { %4874 = vmatpush3.bf16.msra.mxu0 %v4871_v50  ;;  %v8947_v50 = vmov 0 }
 0x50e   :  { %v8948_v50 = vsel %vm7484_vm7, 4294967295, %v8947_v50  ;;  %vm7508_vm7 = vmand %vm8687_vm9, %vm7491_vm2  ;;  %vm8959_vm9 = vcmp.le.s32.totalorder %v7418_v61, 2 }
 0x510   :  { %4674 = vmatmul.mubr.f32.vlgmr.msra.gmra.mrb[16].mxu0 %v140_v32 }
 0x511   :  { %4676 = vmatprep.mubr.f32.mxu0 %v141_v34  ;;  %v8951_v34 = vmov 0 }
 0x512   :  { %v8952_v34 = vsel %vm7499_vm5, 4294967295, %v8951_v34  ;;  %vm7676_vm5 = vmand %vm8959_vm9, %vm7430_vm13  ;;  %vm8965_vm9 = vcmp.ge.s32.totalorder %v7423_v9, 1 }
 0x514   :  { %4677 = vmatmul.mubr.f32.gmra.mrb[18].mxu0 %v142_v33  ;;  %v8953_v33 = vmov 0 }
 0x515   :  { %4679 = vmatprep.mubr.f32.mxu0 %v143_v52  ;;  %v8954_v33 = vsel %vm7508_vm7, 4294967295, %v8953_v33  ;;  %v8955_v52 = vmov 0 }
 0x516   :  { %v8956_v52 = vsel %vm7516_vm0, 4294967295, %v8955_v52  ;;  %vm7690_vm0 = vmand %vm8962_vm10, %vm7648_vm4  ;;  %vm8968_vm10 = vcmp.le.s32.totalorder %v7443_v18, 2 }
 0x517   :  { %vm8973_vm7 = vmmov %vm8968_vm10 }
 0x518   :  { %4680 = vmatmul.mubr.f32.gmra.mrb[20].mxu0 %v144_v1  ;;  %v38_v1 = vld [vmem:[%s8641_s1 + $0xa8] sm:$0xff] }
 0x519   :  { %4682 = vmatprep.mubr.f32.mxu0 %v145_v3  ;;  %v39_v3 = vld [vmem:[%s8641_s1 + $0xb0] sm:$0xff] }
 0x51c   :  { %4683 = vmatmul.mubr.f32.gmra.mrb[22].mxu0 %v146_v43  ;;  %v22_v43 = vld [vmem:[%s8641_s1 + $0x28] sm:$0xff] }
 0x51d   :  { %4685 = vmatprep.mubr.f32.mxu0 %v147_v26  ;;  %v4875_v26 = vpack.c.bf16 %v39_v3, %v38_v1  ;;  %v45_v1 = vld [vmem:[%s8641_s1 + $0xe0] sm:$0xff] }
 0x51f   :  { %4876 = vmatprep.subr.bf16.mxu1 %v4875_v26  ;;  %v58_v26 = vld [vmem:[%s8641_s1 + $0x148] sm:$0xff] }
 0x520   :  { %4686 = vmatmul.mubr.f32.gmra.mrb[24].mxu0 %v148_v47  ;;  %v23_v47 = vld [vmem:[%s8641_s1 + $0x30] sm:$0xff] }
 0x521   :  { %4688 = vmatprep.mubr.f32.mxu0 %v149_v41  ;;  %v70_v41 = vld [vmem:[%s8641_s1 + $0x1a8] sm:$0xff] }
 0x524   :  { %4689 = vmatmul.mubr.f32.gmra.mrb[26].mxu0 %v150_v16  ;;  %v71_v16 = vld [vmem:[%s8641_s1 + $0x1b0] sm:$0xff] }
 0x525   :  { %4691 = vmatprep.mubr.f32.mxu0 %v151_v42  ;;  %v4877_v42 = vpack.c.bf16 %v23_v47, %v22_v43  ;;  %v59_v47 = vld [vmem:[%s8641_s1 + $0x150] sm:$0xff] }
 0x527   :  { %4878 = vmatpush3.bf16.msra.mxu1 %v4877_v42  ;;  %v29_v42 = vld [vmem:[%s8641_s1 + $0x60] sm:$0xff] }
 0x528   :  { %4692 = vmatmul.mubr.f32.gmra.mrb[28].mxu0 %v152_v20  ;;  %v4907_v20 = vpack.c.bf16 %v71_v16, %v70_v41  ;;  %v28_v41 = vld [vmem:[%s8641_s1 + $0x58] sm:$0xff] }
 0x529   :  { %4694 = vmatprep.mubr.f32.mxu0 %v153_v58  ;;  %v40_v58 = vld [vmem:[%s8641_s1 + $0xb8] sm:$0xff] }
 0x52a   :  { %4908 = vmatprep.subr.bf16.mxu0 %v4907_v20  ;;  %v76_v20 = vld [vmem:[%s8641_s1 + $0x1d8] sm:$0xff] }
 0x52c   :  { %4695 = vmatmul.mubr.f32.gmra.mrb[30].mxu0 %v154_v14  ;;  %v41_v14 = vld [vmem:[%s8641_s1 + $0xc0] sm:$0xff] }
 0x5e3   :  { %v7372_v2 = vpop.f32.mrb[16].mxu0 }
 0x5e4   :  { %v7374_v28 = vpop.f32.mrb[17].mxu0 }
 0x5e7   :  { %v7376_v7 = vpop.f32.mrb[18].mxu0 }
 0x5e8   :  { %v7378_v17 = vpop.f32.mrb[19].mxu0 }
 0x5eb   :  { %v4681_v37 = vpop.f32.mrb[20].mxu0 }
 0x5ec   :  { %2399 = vrot.lane.b32.xlu0 %v4681_v37, %s5217_s21  ;;  %v2334_v29 = vpop.f32.mrb[21].mxu0  ;;  %v54_v37 = vld [vmem:[%s8641_s1 + $0x128] sm:$0xff] }
 0x5ef   :  { %v4684_v0 = vpop.f32.mrb[22].mxu0 }
 0x5f0   :  { %2397 = vrot.lane.b32.xlu0 %v2334_v29, %s5217_s21  ;;  %2403 = vrot.lane.b32.xlu1 %v4684_v0, %s5217_s21  ;;  %v2344_v60 = vpop.f32.mrb[23].mxu0  ;;  %v4879_v29 = vpack.c.bf16 %v41_v14, %v40_v58  ;;  %v55_v0 = vld [vmem:[%s8641_s1 + $0x130] sm:$0xff]  ;;  %v77_v58 = vld [vmem:[%s8641_s1 + $0x1e0] sm:$0xff]  ;;  %v4917_v14 = vpack.c.bf16 %v59_v47, %v58_v26  ;;  %v8960_v47 = vmov 0 }
 0x5f1   :  { %v51_v26 = vld [vmem:[%s8641_s1 + $0x110] sm:$0xff]  ;;  %v8961_v47 = vsel %vm7676_vm5, 4294967295, %v8960_v47  ;;  %vm7704_vm5 = vmand %vm8965_vm9, %vm7458_vm3 }
 0x5f2   :  { %4880 = vmatprep.subr.bf16.mxu1 %v4879_v29  ;;  %v47_v29 = vld [vmem:[%s8641_s1 + $0xf0] sm:$0xff] }
 0x5f3   :  { %v4687_v5 = vpop.f32.mrb[24].mxu0 }
 0x5f4   :  { %2415 = vrot.lane.b32.xlu1 %v4687_v5, %s5225_s8  ;;  %v2354_v8 = vpop.f32.mrb[25].mxu0  ;;  %v25_v5 = vld [vmem:[%s8641_s1 + $0x40] sm:$0xff] }
 0x5f5   :  { %2413 = vrot.lane.b32.xlu0 %v2354_v8, %s5225_s8  ;;  %v4909_v8 = vpack.c.bf16 %v55_v0, %v54_v37  ;;  %v46_v37 = vld [vmem:[%s8641_s1 + $0xe8] sm:$0xff]  ;;  %v4919_v0 = vpack.c.bf16 %v77_v58, %v76_v20  ;;  %v8963_v20 = vmov 0  ;;  %v4897_v58 = vpack.c.bf16 %v33_v27, %v32_v46 }
 0x5f6   :  { %v8964_v20 = vsel %vm7690_vm0, 4294967295, %v8963_v20  ;;  %vm7718_vm0 = vmand %vm8968_vm10, %vm7648_vm4  ;;  %vm8996_vm4 = vcmask 392192  }
 0x5f7   :  { %v4690_v62 = vpop.f32.mrb[26].mxu0  ;;  %4910 = vmatpush3.bf16.msra.mxu0 %v4909_v8  ;;  %v4889_v8 = vpack.c.bf16 %v29_v42, %v28_v41  ;;  %v65_v42 = vld [vmem:[%s8641_s1 + $0x180] sm:$0xff]  ;;  %vm7734_vm10 = vmand %vm8973_vm7, %vm7491_vm2  ;;  %vm8977_vm7 = vcmask 261120  }
 0x5f8   :  { %2419 = vrot.lane.b32.xlu1 %v4690_v62, %s5225_s8  ;;  %v2364_v53 = vpop.f32.mrb[27].mxu0  ;;  %v73_v62 = vld [vmem:[%s8641_s1 + $0x1c0] sm:$0xff] }
 0x5f9   :  { %v4911_v10 = vpack.c.bf16 %v73_v62, %v72_v40  ;;  %v79_v40 = vld [vmem:[%s8641_s1 + $0x1f0] sm:$0xff]  ;;  %v4891_v62 = vpack.c.bf16 %v47_v29, %v46_v37  ;;  %v8966_v29 = vmov 0 }
 0x5fa   :  { %v83_v37 = vld [vmem:[%s8641_s1 + $0x210] sm:$0xff]  ;;  %v8967_v29 = vsel %vm7704_vm5, 4294967295, %v8966_v29  ;;  %vm7726_vm5 = vmand %vm8965_vm9, %vm7445_vm6  ;;  %vm8689_vm9 = vcmask 392192   ;;  %vm8999_vm6 = vcmask 1043456  }
 0x5fb   :  { %v4693_v55 = vpop.f32.mrb[28].mxu0  ;;  %4912 = vmatprep.subr.bf16.mxu0 %v4911_v10  ;;  %v31_v10 = vld [vmem:[%s8641_s1 + $0x70] sm:$0xff] }
 0x5fc   :  { %v2374_v56 = vpop.f32.mrb[29].mxu0  ;;  %4914 = vmatpush3.bf16.msra.mxu0 %v4913_v44  ;;  %v62_v44 = vld [vmem:[%s8641_s1 + $0x168] sm:$0xff] }
 0x5fd   :  { %2429 = vrot.lane.b32.xlu0 %v2374_v56, %s5231_s22  ;;  %v26_v56 = vld [vmem:[%s8641_s1 + $0x48] sm:$0xff] }
 0x5fe   :  { %v4885_v3 = vpack.c.bf16 %v27_v12, %v26_v56  ;;  %v63_v56 = vld [vmem:[%s8641_s1 + $0x170] sm:$0xff]  ;;  %v4162_v12 = vsel %vm7426_vm1, 1.0, %v5218_v21  ;;  %vm8997_vm1 = vcmp.le.s32.totalorder %v7443_v18, 2 }
 0x5ff   :  { %v4696_v45 = vpop.f32.mrb[30].mxu0 }
 0x600   :  { %2435 = vrot.lane.b32.xlu1 %v4696_v45, %s5231_s22  ;;  %v2384_v39 = vpop.f32.mrb[31].mxu0  ;;  %v75_v45 = vld [vmem:[%s8641_s1 + $0x1d0] sm:$0xff] }
 0x601   :  { %2431 = vrot.lane.b32.xlu0 %v4693_v55, %s5231_s22  ;;  %v4915_v43 = vpack.c.bf16 %v75_v45, %v74_v31  ;;  %v80_v45 = vld [vmem:[%s8641_s1 + $0x1f8] sm:$0xff] }
 0x603   :  { %4916 = vmatprep.subr.bf16.mxu0 %v4915_v43  ;;  %v50_v43 = vld [vmem:[%s8641_s1 + $0x108] sm:$0xff] }
 0x604   :  { %2401 = vrot.lane.b32.xlu1 %v2344_v60, %s5217_s21  ;;  %v24_v60 = vld [vmem:[%s8641_s1 + $0x38] sm:$0xff]  ;;  %4918 = vmatpush3.bf16.msra.mxu0 %v4917_v14  ;;  %v82_v14 = vld [vmem:[%s8641_s1 + $0x208] sm:$0xff] }
 0x605   :  { %2417 = vrot.lane.b32.xlu0 %v2364_v53, %s5225_s8  ;;  %v4881_v15 = vpack.c.bf16 %v25_v5, %v24_v60  ;;  %v43_v53 = vld [vmem:[%s8641_s1 + $0xd0] sm:$0xff]  ;;  %v60_v60 = vld [vmem:[%s8641_s1 + $0x158] sm:$0xff]  ;;  %v61_v5 = vld [vmem:[%s8641_s1 + $0x160] sm:$0xff]  ;;  %4920 = vmatprep.subr.bf16.mxu0 %v4919_v0  ;;  %v4899_v0 = vpack.c.bf16 %v51_v26, %v50_v43 }
 0x606   :  { %v4883_v55 = vpack.c.bf16 %v43_v53, %v42_v35  ;;  %v30_v35 = vld [vmem:[%s8641_s1 + $0x68] sm:$0xff]  ;;  %v4921_v53 = vpack.c.bf16 %v61_v5, %v60_v60  ;;  %v35_v5 = vld [vmem:[%s8641_s1 + $0x90] sm:$0xff] }
 0x607   :  { %4882 = vmatpush3.bf16.msra.mxu1 %v4881_v15  ;;  %v78_v15 = vld [vmem:[%s8641_s1 + $0x1e8] sm:$0xff]  ;;  %v4893_v31 = vpack.c.bf16 %v31_v10, %v30_v35 }
 0x608   :  { %2433 = vrot.lane.b32.xlu1 %v2384_v39, %s5231_s22  ;;  %v44_v39 = vld [vmem:[%s8641_s1 + $0xd8] sm:$0xff]  ;;  %4884 = vmatprep.subr.bf16.mxu1 %v4883_v55  ;;  %v4923_v55 = vpack.c.bf16 %v79_v40, %v78_v15  ;;  %v34_v60 = vld [vmem:[%s8641_s1 + $0x88] sm:$0xff]  ;;  %v8971_v40 = vmov 0 }
 0x609   :  { %v4887_v16 = vpack.c.bf16 %v45_v1, %v44_v39  ;;  %v81_v39 = vld [vmem:[%s8641_s1 + $0x200] sm:$0xff]  ;;  %v4895_v1 = vpack.c.bf16 %v49_v51, %v48_v13  ;;  %4922 = vmatpush3.bf16.msra.mxu0 %v4921_v53  ;;  %v8972_v40 = vsel %vm7726_vm5, 4294967295, %v8971_v40  ;;  %v4901_v10 = vpack.c.bf16 %v35_v5, %v34_v60 }
 0x60a   :  { %4924 = vmatprep.subr.bf16.mxu0 %v4923_v55  ;;  %v4927_v41 = vpack.c.bf16 %v81_v39, %v80_v45  ;;  %vm8976_vm5 = vcmask 130048   ;;  %v52_v45 = vld [vmem:[%s8641_s1 + $0x118] sm:$0xff]  ;;  %v53_v39 = vld [vmem:[%s8641_s1 + $0x120] sm:$0xff] }
 0x60b   :  { %4886 = vmatpush3.bf16.msra.mxu1 %v4885_v3  ;;  %v4925_v3 = vpack.c.bf16 %v63_v56, %v62_v44  ;;  %v85_v5 = vld [vmem:[%s8641_s1 + $0x220] sm:$0xff] }
 0x60c   :  { %4888 = vmatprep.subr.bf16.mxu1 %v4887_v16  ;;  %v64_v16 = vld [vmem:[%s8641_s1 + $0x178] sm:$0xff] }
 0x60d   :  { %4926 = vmatpush3.bf16.msra.mxu0 %v4925_v3  ;;  %v4929_v15 = vpack.c.bf16 %v65_v42, %v64_v16  ;;  %v4903_v3 = vpack.c.bf16 %v53_v39, %v52_v45  ;;  %v36_v16 = vld [vmem:[%s8641_s1 + $0x98] sm:$0xff]  ;;  %v37_v42 = vld [vmem:[%s8641_s1 + $0xa0] sm:$0xff] }
 0x60e   :  { %4928 = vmatprep.subr.bf16.mxu0 %v4927_v41  ;;  %v4905_v60 = vpack.c.bf16 %v37_v42, %v36_v16  ;;  %v4161_v42 = vsel %vm7396_vm12, 1.0, %v5218_v21  ;;  %vm8992_vm12 = vcmp.le.s32.totalorder %v7418_v61, 2 }
 0x60f   :  { %4890 = vmatpush3.bf16.msra.mxu1 %v4889_v8 }
 0x610   :  { %4892 = vmatprep.subr.bf16.mxu1 %v4891_v62  ;;  %v4931_v62 = vpack.c.bf16 %v83_v37, %v82_v14  ;;  %v4157_v37 = vsel %vm7392_vm15, 1.0, %v5218_v21 }
 0x611   :  { %4930 = vmatpush3.bf16.msra.mxu0 %v4929_v15 }
 0x612   :  { %4932 = vmatprep.subr.bf16.mxu0 %v4931_v62 }
 0x613   :  { %4894 = vmatpush3.bf16.msra.mxu1 %v4893_v31 }
 0x614   :  { %4896 = vmatprep.subr.bf16.mxu1 %v4895_v1  ;;  %v66_v1 = vld [vmem:[%s8641_s1 + $0x188] sm:$0xff] }
 0x617   :  { %4898 = vmatpush3.bf16.msra.mxu1 %v4897_v58  ;;  %v84_v58 = vld [vmem:[%s8641_s1 + $0x218] sm:$0xff] }
 0x618   :  { %4900 = vmatprep.subr.bf16.mxu1 %v4899_v0  ;;  %v4158_v0 = vsel %vm7430_vm13, 1.0, %v5218_v21  ;;  %vm8984_vm13 = vcmask 392192  }
 0x61b   :  { %4902 = vmatpush3.bf16.msra.mxu1 %v4901_v10  ;;  %v4935_v10 = vpack.c.bf16 %v85_v5, %v84_v58 }
 0x61c   :  { %4904 = vmatprep.subr.bf16.mxu1 %v4903_v3 }
 0x61f   :  { %4906 = vmatpush3.bf16.msra.mxu1 %v4905_v60 }
 0x65e   :  { %v2400_v53 = vpop.permute.xlu0 %2399 }
 0x662   :  { %v2404_v13 = vpop.permute.xlu1 %2403  ;;  %v2398_v51 = vpop.permute.xlu0 %2397 }
 0x663   :  { %v2441_v56 = vsel %vm8976_vm5, %v7374_v28, %v2398_v51  ;;  %v67_v28 = vld [vmem:[%s8641_s1 + $0x190] sm:$0xff]  ;;  %vm8978_vm5 = vcmp.ge.s32.totalorder %v7387_v38, 1 }
 0x664   :  { %v4149_v26 = vsel %vm8978_vm5, 1.0, %v5218_v21  ;;  %v4933_v41 = vpack.c.bf16 %v67_v28, %v66_v1 }
 0x666   :  { %v2416_v55 = vpop.permute.xlu1 %2415  ;;  %4934 = vmatpush3.bf16.msra.mxu0 %v4933_v41 }
 0x667   :  { %v2414_v44 = vpop.permute.xlu0 %2413  ;;  %4936 = vmatprep.subr.bf16.mxu0 %v4935_v10  ;;  %v4170_v10 = vsel %vm8992_vm12, 1.0, %v5218_v21 }
 0x668   :  { %v2445_v46 = vsel %vm8977_vm7, %v2441_v56, %v2414_v44  ;;  %vm8979_vm7 = vcmask 130048  }
 0x669   :  { %v2444_v14 = vsel %vm8979_vm7, %v7376_v7, %v2404_v13  ;;  %vm8980_vm5 = vmmov %vm8979_vm7  ;;  %vm8982_vm7 = vcmp.le.s32.totalorder %v7387_v38, 2  ;;  %v69_v13 = vld [vmem:[%s8641_s1 + $0x1a0] sm:$0xff] }
 0x66a   :  { %v2420_v31 = vpop.permute.xlu1 %2419  ;;  %v2442_v15 = vsel %vm8980_vm5, %v7372_v2, %v2400_v53  ;;  %v4169_v19 = vsel %vm8982_vm7, 1.0, %v5218_v21  ;;  %v4937_v38 = vpack.c.bf16 %v69_v13, %v68_v30  ;;  %vm8986_vm5 = vcmp.ge.s32.totalorder %v7418_v61, 1  ;;  %v86_v61 = vld [vmem:[%s8641_s1 + $0x228] sm:$0xff] }
 0x66b   :  { %vm8987_vm7 = vcmask 1043456  }
 0x66c   :  { %4938 = vmatpush3.bf16.msra.mxu0 %v4937_v38 }
 0x66d   :  { %4955 = vmatprep.subr.bf16.mxu0 %v5226_v25 }
 0x66f   :  { %v2430_v27 = vpop.permute.xlu0 %2429 }
 0x670   :  { %v7754_v43 = vsel %vm8689_vm9, %v2445_v46, %v2430_v27  ;;  %vm8981_vm9 = vcmask 261120   ;;  %v4150_v27 = vsel %vm8986_vm5, 1.0, %v5218_v21 }
 0x671   :  { %v2448_v62 = vsel %vm8981_vm9, %v2444_v14, %v2420_v31  ;;  %vm8983_vm15 = vmmov %vm8981_vm9  ;;  %v2510_v2 = vrot.slane %v7754_v43, 4  ;;  %v2568_v56 = vrot.slane %v7754_v43, 7  ;;  %v2591_v3 = vrot.slane %v7754_v43, 1 }
 0x672   :  { %v2436_v7 = vpop.permute.xlu1 %2435  ;;  %v2446_v51 = vsel %vm8983_vm15, %v2442_v15, %v2416_v55  ;;  %vm8985_vm9 = vmmov %vm8984_vm13  ;;  %vm8988_vm15 = vcmask 1040384  }
 0x673   :  { %v7794_v53 = vsel %vm8984_vm13, %v2448_v62, %v2436_v7  ;;  %v2432_v44 = vpop.permute.xlu0 %2431  ;;  %vm8989_vm13 = vcmask 130048   ;;  %vm8991_vm5 = vmmov %vm8988_vm15 }
 0x674   :  { %v2508_v31 = vrot.slane %v7794_v53, 4  ;;  %v2566_v45 = vrot.slane %v7794_v53, 7  ;;  %v7800_v39 = vsel %vm8985_vm9, %v2446_v51, %v2432_v44  ;;  %vm8990_vm9 = vmmov %vm8987_vm7  ;;  %v2533_v59 = vrot.slane %v7794_v53, 5 }
 0x675   :  { %v2511_v55 = vrot.slane %v7800_v39, 4  ;;  %v2569_v1 = vrot.slane %v7800_v39, 7  ;;  %v2592_v46 = vrot.slane %v7800_v39, 1 }
 0x676   :  { %v2402_v28 = vpop.permute.xlu1 %2401  ;;  %v7810_v41 = vsel %vm8987_vm7, %v2508_v31, %v2510_v2  ;;  %v2578_v16 = vsel %vm8988_vm15, %v2566_v45, %v2568_v56  ;;  %vm8993_vm7 = vcmask 1046528   ;;  %vm8994_vm15 = vcmask 261120  }
 0x677   :  { %v2443_v58 = vsel %vm8989_vm13, %v7378_v17, %v2402_v28  ;;  %v2418_v14 = vpop.permute.xlu0 %2417  ;;  %v2529_v60 = vmul.f32 %v4149_v26, %v7810_v41  ;;  %v2587_v5 = vmul.f32 %v4157_v37, %v2578_v16  ;;  %v2512_v15 = vsel %vm8990_vm9, %v2510_v2, %v2511_v55  ;;  %vm9000_vm12 = vmmov %vm8993_vm7 }
 0x678   :  { %v2570_v62 = vsel %vm8991_vm5, %v2568_v56, %v2569_v1  ;;  %v2644_v7 = vmul.f32 %v4169_v19, %v2512_v15  ;;  %v2530_v13 = vmul.f32 %v4150_v27, %v2512_v15  ;;  %v2593_v26 = vsel %vm8993_vm7, %v2591_v3, %v2592_v46  ;;  %vm9001_vm7 = vmmov %vm8999_vm6 }
 0x679   :  { %v5147_v17 = vpack.i.bf16 %v2529_v60, %v2587_v5  ;;  %v2588_v30 = vmul.f32 %v4158_v0, %v2570_v62  ;;  %v2447_v37 = vsel %vm8994_vm15, %v2443_v58, %v2418_v14  ;;  %v2612_v2 = vmul.f32 %v4161_v42, %v2593_v26  ;;  %v87_v0 = vld [vmem:[%s8641_s1 + $0x230] sm:$0xff]  ;;  %vm9002_vm15 = vmmov %vm8991_vm5 }
 0x67a   :  { %v2434_v51 = vpop.permute.xlu1 %2433  ;;  %vm8995_vm13 = vcmp.ge.s32.totalorder %v7443_v18, 1  ;;  %v4171_v56 = vsel %vm8997_vm1, 1.0, %v5218_v21  ;;  %vm8998_vm9 = vcmp.ge.s32.totalorder %v7423_v9, 1  ;;  %v2596_v58 = vrot.slane %v7794_v53, 1 }
 0x67b   :  { %v4151_v19 = vsel %vm8995_vm13, 1.0, %v5218_v21  ;;  %v7843_v44 = vsel %vm8996_vm4, %v2447_v37, %v2434_v51  ;;  %5148 = vrot.lane.b32.xlu0 %v5147_v17, %s5232_s19  ;;  %v5152_v38 = vpack.i.bf16 %v2644_v7, %v2588_v30  ;;  %v4152_v42 = vsel %vm8998_vm9, 1.0, %v5218_v21 }
 0x67c   :  { %v2513_v27 = vrot.slane %v7843_v44, 4  ;;  %v2571_v28 = vrot.slane %v7843_v44, 7  ;;  %v2594_v16 = vrot.slane %v7843_v44, 1  ;;  %v5157_v48 = vpack.i.bf16 %v2612_v2, %v2530_v13 }
 0x67d   :  { %5153 = vrot.lane.b32.xlu1 %v5152_v38, %s5232_s19  ;;  %v4163_v18 = vsel %vm7491_vm2, 1.0, %v5218_v21  ;;  %v7863_v14 = vpack.c.bf16 %v87_v0, %v86_v61  ;;  %vm9003_vm2 = vmmov %vm9000_vm12  ;;  %vm9005_vm4 = vcmp.le.s32.totalorder %v7423_v9, 2  ;;  %v2467_v9 = vrot.slane %v7794_v53, 3 }
 0x67e   :  { %v2514_v60 = vsel %vm8999_vm6, %v2511_v55, %v2513_v27  ;;  %v2572_v5 = vsel %vm8991_vm5, %v2569_v1, %v2571_v28  ;;  %v2595_v15 = vsel %vm9000_vm12, %v2592_v46, %v2594_v16  ;;  %v2515_v62 = vsel %vm9001_vm7, %v2513_v27, %v2508_v31  ;;  %vm9004_vm13 = vmmov %vm9003_vm2 }
 0x67f   :  { %5158 = vrot.lane.b32.xlu0 %v5157_v48, %s5232_s19  ;;  %v2589_v7 = vmul.f32 %v4159_v54, %v2572_v5  ;;  %v2645_v17 = vmul.f32 %v4170_v10, %v2514_v60  ;;  %v2531_v30 = vmul.f32 %v4151_v19, %v2514_v60  ;;  %v2613_v13 = vmul.f32 %v4162_v12, %v2595_v15 }
 0x680   :  { %v2573_v26 = vsel %vm9002_vm15, %v2571_v28, %v2566_v45  ;;  %v2646_v32 = vmul.f32 %v4171_v56, %v2515_v62  ;;  %v2532_v37 = vmul.f32 %v4152_v42, %v2515_v62  ;;  %v2597_v51 = vsel %vm9003_vm2, %v2594_v16, %v2596_v58  ;;  %4940 = vmatprep.subr.bf16.mxu1 %v7863_v14 }
 0x681   :  { %v5162_v55 = vpack.i.bf16 %v2645_v17, %v2589_v7  ;;  %v5167_v1 = vpack.i.bf16 %v2613_v13, %v2531_v30  ;;  %v2590_v2 = vmul.f32 %v4160_v24, %v2573_v26  ;;  %v2614_v46 = vmul.f32 %v4163_v18, %v2597_v51  ;;  %v88_v17 = vld [vmem:[%s8641_s1 + $0x238] sm:$0xff] }
 0x682   :  { %v2603_v31 = vsel %vm9004_vm13, %v2596_v58, %v2591_v3  ;;  %v4164_v54 = vsel %vm7458_vm3, 1.0, %v5218_v21  ;;  %v4172_v45 = vsel %vm9005_vm4, 1.0, %v5218_v21  ;;  %vm2472_vm3 = vcmask 1044480  }
 0x683   :  { %5163 = vrot.lane.b32.xlu1 %v5162_v55, %s5232_s19  ;;  %5168 = vrot.lane.b32.xlu0 %v5167_v1, %s5232_s19  ;;  %v5172_v10 = vpack.i.bf16 %v2646_v32, %v2590_v2  ;;  %v5177_v19 = vpack.i.bf16 %v2614_v46, %v2532_v37  ;;  %v2615_v12 = vmul.f32 %v4164_v54, %v2603_v31  ;;  %v2474_v0 = vrot.slane %v7800_v39, 3 }
 0x684   :  { %v2647_v61 = vmul.f32 %v4172_v45, %v7810_v41  ;;  %v2536_v38 = vrot.slane %v7800_v39, 5  ;;  %v2535_v24 = vrot.slane %v7754_v43, 5  ;;  %v2473_v41 = vrot.slane %v7754_v43, 3 }
 0x685   :  { %vm9006_vm1 = vcmask 1042432   ;;  %v4153_v27 = vsel %vm7404_vm14, 1.0, %v5218_v21  ;;  %v4145_v16 = vsel %vm7413_vm8, 1.0, %v5218_v21  ;;  %v4165_v58 = vsel %vm7438_vm11, 1.0, %v5218_v21 }
 0x686   :  { %v5182_v3 = vpack.i.bf16 %v2615_v12, %v2647_v61  ;;  %v7893_v56 = vsel %vm9006_vm1, %v2533_v59, %v2535_v24  ;;  %v7901_v28 = vsel %vm2472_vm3, %v2467_v9, %v2473_v41  ;;  %v2475_v42 = vsel %vm2472_vm3, %v2473_v41, %v2474_v0  ;;  %vm9007_vm9 = vmmov %vm9006_vm1 }
 0x687   :  { %5173 = vrot.lane.b32.xlu1 %v5172_v10, %s5232_s19  ;;  %5178 = vrot.lane.b32.xlu0 %v5177_v19, %s5232_s19  ;;  %v7911_v48 = vsel %vm9007_vm9, %v2535_v24, %v2536_v38  ;;  %vm9008_vm14 = vnez %v8940_v6  ;;  %vm9009_vm6 = vnez %v8944_v23  ;;  %v2538_v36 = vrot.slane %v7843_v44, 5  ;;  %v89_v23 = vld [vmem:[%s8641_s1 + $0x240] sm:$0xff]  ;;  %vm9015_vm15 = vmmov %vm9006_vm1  ;;  %v90_v24 = vld [vmem:[%s8641_s1 + $0x248] sm:$0xff] }
 0x688   :  { %v4154_v63 = vsel %vm9008_vm14, 1.0, %v5218_v21  ;;  %v4146_v60 = vsel %vm9009_vm6, 1.0, %v5218_v21  ;;  %vm9010_vm8 = vnez %v8954_v33  ;;  %v2476_v11 = vrot.slane %v7843_v44, 3  ;;  %vm9021_vm14 = vmmov %vm9015_vm15 }
 0x689   :  { %v4155_v5 = vsel %vm9010_vm8, 1.0, %v5218_v21  ;;  %v2562_v7 = vmul.f32 %v4153_v27, %v7893_v56  ;;  %v2504_v6 = vmul.f32 %v4145_v16, %v7901_v28  ;;  %v2632_v13 = vmul.f32 %v4165_v58, %v2475_v42 }
 0x68a   :  { %v2563_v33 = vmul.f32 %v4154_v63, %v7911_v48  ;;  %vm9011_vm11 = vnez %v8961_v47  ;;  %vm9012_vm5 = vnez %v8964_v20  ;;  %vm9013_vm12 = vcmask 523264  }
 0x68b   :  { %5183 = vrot.lane.b32.xlu1 %v5182_v3, %s5232_s19  ;;  %v4166_v26 = vsel %vm9011_vm11, 1.0, %v5218_v21  ;;  %v4147_v32 = vsel %vm9012_vm5, 1.0, %v5218_v21  ;;  %vm9014_vm7 = vmmov %vm9013_vm12  ;;  %v2505_v46 = vmul.f32 %v4146_v60, %v2475_v42  ;;  %v4943_v31 = vpack.c.bf16 %v89_v23, %v88_v17 }
 0x68c   :  { %v7942_v54 = vsel %vm9015_vm15, %v2536_v38, %v2538_v36  ;;  %v2477_v47 = vsel %vm2472_vm3, %v2474_v0, %v2476_v11  ;;  %vm9016_vm2 = vmmov %vm9014_vm7  ;;  %vm9018_vm4 = vnez %v8967_v29  ;;  %v4167_v61 = vsel %vm7718_vm0, 1.0, %v5218_v21  ;;  %v91_v29 = vld [vmem:[%s8641_s1 + $0x250] sm:$0xff] }
 0x68d   :  { %vm9017_vm13 = vmmov %vm9016_vm2  ;;  %v4156_v12 = vsel %vm9018_vm4, 1.0, %v5218_v21  ;;  %v2564_v38 = vmul.f32 %v4155_v5, %v7942_v54  ;;  %v7965_v8 = vsel %vm9021_vm14, %v2538_v36, %v2533_v59  ;;  %v2633_v27 = vmul.f32 %v4166_v26, %v2477_v47 }
 0x68e   :  { %vm9019_vm1 = vmmov %vm9016_vm2  ;;  %v2506_v16 = vmul.f32 %v4147_v32, %v2477_v47  ;;  %v2478_v42 = vsel %vm2472_vm3, %v2476_v11, %v2467_v9  ;;  %vm9022_vm0 = vnez %v8972_v40  ;;  %v4947_v59 = vpack.c.bf16 %v91_v29, %v90_v24  ;;  %v92_v40 = vld [vmem:[%s8641_s1 + $0x258] sm:$0xff]  ;;  %v93_v11 = vld [vmem:[%s8641_s1 + $0x260] sm:$0xff] }
 0x68f   :  { %vm9020_vm9 = vmmov %vm9019_vm1  ;;  %v4148_v58 = vsel %vm9022_vm0, 1.0, %v5218_v21  ;;  %v2565_v17 = vmul.f32 %v4156_v12, %v7965_v8  ;;  %v2634_v23 = vmul.f32 %v4167_v61, %v2478_v42  ;;  %vm9027_vm3 = vnez %v8946_v57  ;;  %v123_v24 = vld [vmem:[%s8641_s1 + $0x350] sm:$0xff] }
 0x690   :  { %vm9023_vm6 = vmmov %vm9019_vm1  ;;  %vm9033_vm4 = vnez %v8956_v52  ;;  %vm9036_vm0 = vnez %v8952_v34  ;;  %v119_v34 = vld [vmem:[%s8641_s1 + $0x330] sm:$0xff] }
 0x691   :  { %vm9024_vm8 = vmmov %vm9019_vm1  ;;  %v4176_v61 = vsel %vm9036_vm0, 1.0, %v5218_v21 }
 0x692   :  { %vm9025_vm11 = vmmov %vm9019_vm1  ;;  %v2663_v35 = vmul.f32 %v4176_v61, %v7893_v56  ;;  %v121_v56 = vld [vmem:[%s8641_s1 + $0x340] sm:$0xff]  ;;  %v4182_v61 = vld [vmem:[%s8641_s1 + $0x3ab] ss:$0 sm:$0xff] }
 0x693   :  { %vm9026_vm5 = vmmov %vm9019_vm1 }
 0x694   :  { %vm9030_vm15 = vmmov %vm9019_vm1 }
 0x695   :  { %vm9035_vm14 = vmmov %vm9019_vm1 }
 0x6ed   :  { %v5149_v18 = vpop.permute.xlu0 %5148 }
 0x6ee   :  { %v5151_v15 = vunpack.i.h.bf16 %v5149_v18  ;;  %v5150_v62 = vunpack.i.l.bf16 %v5149_v18 }
 0x6ef   :  { %v5154_v30 = vpop.permute.xlu1 %5153 }
 0x6f0   :  { %v5156_v37 = vunpack.i.h.bf16 %v5154_v30  ;;  %v5155_v51 = vunpack.i.l.bf16 %v5154_v30  ;;  %v2732_v55 = vsel %vm9013_vm12, %v2562_v7, %v5150_v62  ;;  %v2728_v1 = vsel %vm9014_vm7, %v2504_v6, %v5151_v15  ;;  %vm9029_vm7 = vmmov %vm9019_vm1 }
 0x6f1   :  { %v5159_v2 = vpop.permute.xlu0 %5158  ;;  %2820 = vmatprep.mubr.f32.mxu1 %v2732_v55  ;;  %v2507_v30 = vmul.f32 %v4148_v58, %v2478_v42  ;;  %vm9028_vm12 = vnez %v8948_v50  ;;  %v4174_v50 = vsel %vm9033_vm4, 1.0, %v5218_v21  ;;  %v126_v58 = vld [vmem:[%s8641_s1 + $0x368] sm:$0xff]  ;;  %vm9048_vm4 = vmmov %vm9019_vm1 }
 0x6f2   :  { %v5161_v45 = vunpack.i.h.bf16 %v5159_v2  ;;  %v5160_v10 = vunpack.i.l.bf16 %v5159_v2  ;;  %2821 = vmatmul.mubr.f32.vlgmr.msra.gmra.mrb[4].mxu1 %v2728_v1  ;;  %v2740_v20 = vsel %vm9016_vm2, %v2632_v13, %v5156_v37  ;;  %v2733_v19 = vsel %vm9017_vm13, %v2563_v33, %v5155_v51  ;;  %vm9031_vm2 = vmmov %vm9019_vm1 }
 0x6f3   :  { %2905 = vmatprep.mubr.f32.mxu0 %v2740_v20  ;;  %2825 = vmatprep.mubr.f32.mxu1 %v2733_v19  ;;  %v4173_v13 = vsel %vm9027_vm3, 1.0, %v5218_v21  ;;  %v4951_v51 = vpack.c.bf16 %v93_v11, %v92_v40  ;;  %v4168_v55 = vsel %vm9028_vm12, 1.0, %v5218_v21  ;;  %vm9032_vm13 = vmmov %vm9019_vm1  ;;  %v4175_v19 = vsel %vm7734_vm10, 1.0, %v5218_v21 }
 0x6f4   :  { %4942 = vmatpush3.bf16.msra.mxu1 %v7863_v14  ;;  %v2736_v3 = vsel %vm9019_vm1, %v7754_v43, %v5161_v45  ;;  %v2729_v0 = vsel %vm9020_vm9, %v2505_v46, %v5160_v10  ;;  %v2660_v47 = vmul.f32 %v4173_v13, %v7911_v48  ;;  %v2635_v20 = vmul.f32 %v4168_v55, %v7901_v28  ;;  %vm9034_vm9 = vmmov %vm9019_vm1 }
 0x6f5   :  { %v5169_v41 = vpop.permute.xlu0 %5168  ;;  %v5164_v14 = vpop.permute.xlu1 %5163  ;;  %2906 = vmatmul.mubr.f32.vlgmr.msra.gmra.mrb[32].mxu0 %v2736_v3  ;;  %4944 = vmatprep.subr.bf16.mxu1 %v4943_v31  ;;  %v2661_v12 = vmul.f32 %v4174_v50, %v7942_v54  ;;  %v2662_v28 = vmul.f32 %v4175_v19, %v7965_v8  ;;  %vm9038_vm10 = vmmov 0   ;;  %v118_v54 = vld [vmem:[%s8641_s1 + $0x328] sm:$0xff]  ;;  %v120_v3 = vld [vmem:[%s8641_s1 + $0x338] sm:$0xff]  ;;  %vm9042_vm3 = vmmov %vm9019_vm1 }
 0x6f6   :  { %v5171_v63 = vunpack.i.h.bf16 %v5169_v41  ;;  %v5170_v18 = vunpack.i.l.bf16 %v5169_v41  ;;  %v5166_v60 = vunpack.i.h.bf16 %v5164_v14  ;;  %v5165_v5 = vunpack.i.l.bf16 %v5164_v14  ;;  %2826 = vmatmul.mubr.f32.gmra.mrb[6].mxu1 %v2729_v0  ;;  %v124_v8 = vld [vmem:[%s8641_s1 + $0x358] sm:$0xff]  ;;  %v125_v41 = vld [vmem:[%s8641_s1 + $0x360] sm:$0xff]  ;;  %v94_v14 = vld [vmem:[%s8641_s1 + $0x268] sm:$0xff] }
 0x6f7   :  { %v4956_v0 = vpack.c.bf16 %v119_v34, %v118_v54  ;;  %vm9043_vm12 = vmmov %vm9019_vm1 }
 0x6f8   :  { %4946 = vmatpush3.bf16.msra.mxu1 %v4943_v31  ;;  %v2734_v36 = vsel %vm9023_vm6, %v2564_v38, %v5165_v5  ;;  %v2741_v15 = vsel %vm9024_vm8, %v2633_v27, %v5166_v60  ;;  %v2730_v62 = vsel %vm9025_vm11, %v2506_v16, %v5170_v18  ;;  %v2737_v9 = vsel %vm9026_vm5, %v7800_v39, %v5171_v63  ;;  %vm9037_vm6 = vmmov %vm9019_vm1  ;;  %v95_v27 = vld [vmem:[%s8641_s1 + $0x270] sm:$0xff]  ;;  %v128_v18 = vld [vmem:[%s8641_s1 + $0x378] sm:$0xff] }
 0x6f9   :  { %v5179_v7 = vpop.permute.xlu0 %5178  ;;  %v5174_v6 = vpop.permute.xlu1 %5173  ;;  %2830 = vmatprep.mubr.f32.mxu1 %v2734_v36  ;;  %2910 = vmatprep.mubr.f32.mxu0 %v2741_v15  ;;  %vm9039_vm8 = vmmov %vm9019_vm1  ;;  %v4959_v38 = vpack.c.bf16 %v121_v56, %v120_v3  ;;  %v4965_v16 = vpack.c.bf16 %v125_v41, %v124_v8  ;;  %v8055_v42 = vpack.c.bf16 %v95_v27, %v94_v14  ;;  %v127_v63 = vld [vmem:[%s8641_s1 + $0x370] sm:$0xff]  ;;  %v129_v5 = vld [vmem:[%s8641_s1 + $0x380] sm:$0xff] }
 0x6fa   :  { %v5181_v33 = vunpack.i.h.bf16 %v5179_v7  ;;  %v5180_v26 = vunpack.i.l.bf16 %v5179_v7  ;;  %v5176_v32 = vunpack.i.h.bf16 %v5174_v6  ;;  %v5175_v37 = vunpack.i.l.bf16 %v5174_v6  ;;  %2831 = vmatmul.mubr.f32.gmra.mrb[8].mxu1 %v2730_v62  ;;  %2911 = vmatmul.mubr.f32.gmra.mrb[34].mxu0 %v2737_v9  ;;  %vm9040_vm11 = vmmov %vm9019_vm1  ;;  %v130_v36 = vld [vmem:[%s8641_s1 + $0x388] sm:$0xff]  ;;  %v131_v15 = vld [vmem:[%s8641_s1 + $0x390] sm:$0xff] }
 0x6fb   :  { %4948 = vmatprep.subr.bf16.mxu1 %v4947_v59  ;;  %4957 = vmatpush3.bf16.msra.mxu0 %v4956_v0  ;;  %v4968_v60 = vpack.c.bf16 %v127_v63, %v126_v58  ;;  %v4974_v62 = vpack.c.bf16 %v131_v15, %v130_v36  ;;  %vm9041_vm5 = vmmov %vm9019_vm1 }
 0x6fc   :  { %4950 = vmatpush3.bf16.msra.mxu1 %v4947_v59  ;;  %v2735_v1 = vsel %vm9029_vm7, %v2565_v17, %v5175_v37  ;;  %v2742_v2 = vsel %vm9030_vm15, %v2634_v23, %v5176_v32  ;;  %v2731_v57 = vsel %vm9031_vm2, %v2507_v30, %v5180_v26  ;;  %v2738_v46 = vsel %vm9032_vm13, %v7843_v44, %v5181_v33  ;;  %vm9044_vm7 = vmmov %vm9019_vm1 }
 0x6fd   :  { %v5184_v31 = vpop.permute.xlu1 %5183  ;;  %2835 = vmatprep.mubr.f32.mxu1 %v2735_v1  ;;  %2915 = vmatprep.mubr.f32.mxu0 %v2742_v2  ;;  %v4971_v59 = vpack.c.bf16 %v129_v5, %v128_v18  ;;  %vm9045_vm15 = vmmov %vm9019_vm1 }
 0x6fe   :  { %v5186_v45 = vunpack.i.h.bf16 %v5184_v31  ;;  %v5185_v10 = vunpack.i.l.bf16 %v5184_v31  ;;  %2836 = vmatmul.mubr.f32.gmra.mrb[10].mxu1 %v2731_v57  ;;  %2916 = vmatmul.mubr.f32.gmra.mrb[36].mxu0 %v2738_v46  ;;  %vm9046_vm2 = vmmov %vm9019_vm1 }
 0x6ff   :  { %4952 = vmatprep.subr.bf16.mxu1 %v4951_v51  ;;  %4713 = vmatprep.mubr.msk.f32.mxu1 %vm9019_vm1, %v2660_v47  ;;  %vm9047_vm13 = vmmov %vm9019_vm1  ;;  %vm9049_vm1 = vcmask 1040384  }
 0x700   :  { %4954 = vmatpush3.bf16.msra.mxu1 %v4951_v51  ;;  %v2743_v48 = vsel %vm9034_vm9, %v2635_v20, %v5185_v10  ;;  %v2739_v52 = vsel %vm9035_vm14, %v7794_v53, %v5186_v45  ;;  %4958 = vmatprep.subr.bf16.mxu0 %v5226_v25  ;;  %v4181_v20 = vld [vmem:[%s8641_s1 + $0x3aa] ss:$0 sm:$0xff]  ;;  %vm9050_vm9 = vcmask 1041408   ;;  %vm9051_vm14 = vcmask 1042432   ;;  %vm9052_vm0 = vmmov %vm9046_vm2 }
 0x701   :  { %2920 = vmatprep.mubr.f32.mxu0 %v2743_v48  ;;  %4967 = vmatprep.subr.bf16.mxu1 %v5226_v25 }
 0x702   :  { %2921 = vmatmul.mubr.f32.gmra.mrb[38].mxu0 %v2739_v52 }
 0x703   :  { %4714 = vmatmul.mubr.msk.f32.vlgmr.msra.gmra.mrb[12].mxu1 %vm9037_vm6, %v2661_v12  ;;  %4735 = vmatprep.mubr.msk.f32.mxu0 %vm9038_vm10, %v5218_v21  ;;  %vm9053_vm6 = vmmov %vm9052_vm0 }
 0x704   :  { %4716 = vmatprep.mubr.msk.f32.mxu1 %vm9039_vm8, %v2662_v28  ;;  %4960 = vmatpush3.bf16.msra.mxu0 %v4959_v38  ;;  %vm9055_vm8 = vmmov %vm9052_vm0 }
 0x705   :  { %4961 = vmatprep.subr.bf16.mxu0 %v5226_v25  ;;  %4969 = vmatpush3.bf16.msra.mxu1 %v4968_v60 }
 0x706   :  { %4970 = vmatprep.subr.bf16.mxu1 %v5226_v25 }
 0x707   :  { %4717 = vmatmul.mubr.msk.f32.gmra.mrb[14].mxu1 %vm9040_vm11, %v2663_v35  ;;  %vm9056_vm11 = vmmov %vm9052_vm0 }
 0x708   :  { %4754 = vmatprep.mubr.msk.f32.mxu1 %vm9038_vm10, %v5218_v21  ;;  %v122_v21 = vld [vmem:[%s8641_s1 + $0x348] sm:$0xff]  ;;  %vm9054_vm10 = vmmov %vm9052_vm0 }
 0x709   :  { %v4962_v29 = vpack.c.bf16 %v123_v24, %v122_v21  ;;  %4972 = vmatpush3.bf16.msra.mxu1 %v4971_v59 }
 0x70a   :  { %4973 = vmatprep.subr.bf16.mxu1 %v5226_v25 }
 0x70b   :  { %4963 = vmatpush3.bf16.msra.mxu0 %v4962_v29 }
 0x70c   :  { %4964 = vmatprep.subr.bf16.mxu0 %v5226_v25 }
 0x70d   :  { %4975 = vmatpush3.bf16.msra.mxu1 %v4974_v62 }
 0x70e   :  { %4976 = vmatprep.subr.bf16.mxu1 %v5226_v25 }
 0x70f   :  { %4966 = vmatpush3.bf16.msra.mxu0 %v4965_v16 }
 0x710   :  { %4980 = vmatprep.subr.bf16.mxu0 %v8055_v42 }
 0x7c5   :  { %v4311_v9 = vpop.f32.mrb[4].mxu1 }
 0x7c6   :  { %v4312_v40 = vpop.f32.mrb[5].mxu1 }
 0x7c7   :  { %v4313_v11 = vadd.f32 %v4312_v40, %v4311_v9 }
 0x7c8   :  { %v4355_v7 = vpop.f32.mrb[32].mxu0 }
 0x7c9   :  { %v4314_v6 = vpop.f32.mrb[6].mxu1  ;;  %v4356_v17 = vpop.f32.mrb[33].mxu0 }
 0x7ca   :  { %v4357_v23 = vadd.f32 %v4356_v17, %v4355_v7  ;;  %v4315_v30 = vpop.f32.mrb[7].mxu1 }
 0x7cb   :  { %v4316_v13 = vadd.f32 %v4315_v30, %v4314_v6 }
 0x7cc   :  { %v2908_v33 = vadd.f32 %v4357_v23, %v4313_v11 }
 0x7cd   :  { %v4317_v26 = vpop.f32.mrb[8].mxu1  ;;  %v4358_v32 = vpop.f32.mrb[34].mxu0 }
 0x7ce   :  { %v4318_v37 = vpop.f32.mrb[9].mxu1  ;;  %v4359_v51 = vpop.f32.mrb[35].mxu0 }
 0x7cf   :  { %v4319_v55 = vadd.f32 %v4318_v37, %v4317_v26  ;;  %v4360_v1 = vadd.f32 %v4359_v51, %v4358_v32 }
 0x7d1   :  { %v4320_v2 = vpop.f32.mrb[10].mxu1  ;;  %v4361_v57 = vpop.f32.mrb[36].mxu0  ;;  %v2913_v46 = vadd.f32 %v4360_v1, %v4316_v13 }
 0x7d2   :  { %v4321_v25 = vpop.f32.mrb[11].mxu1  ;;  %v4362_v31 = vpop.f32.mrb[37].mxu0 }
 0x7d3   :  { %v4322_v47 = vadd.f32 %v4321_v25, %v4320_v2  ;;  %v4363_v50 = vadd.f32 %v4362_v31, %v4361_v57 }
 0x7d5   :  { %v4364_v45 = vpop.f32.mrb[38].mxu0  ;;  %v2918_v10 = vadd.f32 %v4363_v50, %v4319_v55 }
 0x7d6   :  { %v4715_v19 = vpop.f32.mrb[12].mxu1  ;;  %v4365_v48 = vpop.f32.mrb[39].mxu0 }
 0x7d7   :  { %v2998_v52 = vadd.f32 %v4715_v19, %v2913_v46  ;;  %v4366_v12 = vadd.f32 %v4365_v48, %v4364_v45  ;;  %v2992_v28 = vpop.f32.mrb[13].mxu1 }
 0x7d8   :  { %v2993_v35 = vadd.f32 %v2992_v28, %v2908_v33  ;;  %v96_v28 = vld [vmem:[%s8641_s1 + $0x278] sm:$0xff] }
 0x7d9   :  { %v3016_v54 = vmul.f32 %v4181_v20, %v2998_v52  ;;  %v2923_v34 = vadd.f32 %v4366_v12, %v4322_v47 }
 0x7da   :  { %v3015_v3 = vmul.f32 %v4181_v20, %v2993_v35  ;;  %v4718_v0 = vpop.f32.mrb[14].mxu1 }
 0x7db   :  { %v3024_v56 = vadd.f32 %v4182_v61, %v3016_v54  ;;  %v3008_v38 = vadd.f32 %v4718_v0, %v2923_v34  ;;  %v3002_v21 = vpop.f32.mrb[15].mxu1 }
 0x7dc   :  { %v3023_v24 = vadd.f32 %v4182_v61, %v3015_v3  ;;  %v3003_v29 = vadd.f32 %v3002_v21, %v2918_v10  ;;  %v99_v21 = vld [vmem:[%s8641_s1 + $0x290] sm:$0xff] }
 0x7dd   :  { %v8085_v8 = vmax.f32 %v3024_v56, 0.0  ;;  %v3018_v41 = vmul.f32 %v4181_v20, %v3008_v38  ;;  %v98_v38 = vld [vmem:[%s8641_s1 + $0x288] sm:$0xff] }
 0x7de   :  { %v8087_v14 = vmax.f32 %v3023_v24, 0.0  ;;  %v3017_v27 = vmul.f32 %v4181_v20, %v3003_v29  ;;  %v4987_v24 = vpack.c.bf16 %v99_v21, %v98_v38  ;;  %v100_v29 = vld [vmem:[%s8641_s1 + $0x298] sm:$0xff] }
 0x7df   :  { %v3032_v16 = vsel %vm9041_vm5, %v8085_v8, 0.0  ;;  %v3053_v58 = vsel %vm9042_vm3, %v8085_v8, -inf  ;;  %v3026_v63 = vadd.f32 %v4182_v61, %v3018_v41  ;;  %v101_v41 = vld [vmem:[%s8641_s1 + $0x2a0] sm:$0xff]  ;;  %vm9057_vm5 = vmmov %vm9052_vm0  ;;  %vm9058_vm3 = vcmask 261120  }
 0x7e0   :  { %v3031_v18 = vsel %vm9043_vm12, %v8087_v14, 0.0  ;;  %v3052_v60 = vsel %vm9044_vm7, %v8087_v14, -inf  ;;  %v3025_v5 = vadd.f32 %v4182_v61, %v3017_v27  ;;  %v97_v61 = vld [vmem:[%s8641_s1 + $0x280] sm:$0xff]  ;;  %v4991_v27 = vpack.c.bf16 %v101_v41, %v100_v29  ;;  %vm9059_vm12 = vmmov %vm9058_vm3  ;;  %v3579_v29 = vld [vmem:[%s8643_s3 + $0x18] sm:$0xff] }
 0x7e1   :  { %v3033_v59 = vadd.f32 %v3032_v16, %v3031_v18  ;;  %v3054_v36 = vmax.f32 %v3052_v60, %v3053_v58  ;;  %v8097_v15 = vmax.f32 %v3026_v63, 0.0  ;;  %v4983_v0 = vpack.c.bf16 %v97_v61, %v96_v28  ;;  %vm9060_vm7 = vmmov %vm9058_vm3  ;;  %v170_v28 = vld [vmem:[%s8642_s2 + $0xf8] sm:$0xff]  ;;  %v3592_v61 = vld [vmem:[%s8643_s3 + $0x80] sm:$0xff] }
 0x7e2   :  { %v8099_v62 = vmax.f32 %v3025_v5, 0.0  ;;  %v3596_v41 = vld [vmem:[%s8643_s3 + $0xa0] sm:$0xff] }
 0x7e3   :  { %v3034_v9 = vrot.slane %v3033_v59, 4  ;;  %v3055_v40 = vrot.slane %v3054_v36, 4  ;;  %v3043_v11 = vsel %vm9045_vm15, %v8097_v15, 0.0  ;;  %v3062_v7 = vsel %vm9046_vm2, %v8097_v15, -inf  ;;  %vm9061_vm15 = vmmov %vm9058_vm3 }
 0x7e4   :  { %v3042_v6 = vsel %vm9047_vm13, %v8099_v62, 0.0  ;;  %v3061_v17 = vsel %vm9048_vm4, %v8099_v62, -inf  ;;  %vm9062_vm2 = vmmov %vm9058_vm3 }
 0x7e5   :  { %v3035_v23 = vadd.f32 %v3034_v9, %v3033_v59  ;;  %v3056_v30 = vmax.f32 %v3054_v36, %v3055_v40  ;;  %v3044_v13 = vadd.f32 %v3043_v11, %v3042_v6  ;;  %v3063_v33 = vmax.f32 %v3061_v17, %v3062_v7  ;;  %v4186_v17 = vld [vmem:[%s8641_s1 + $0x3ac] ss:$0 sm:$0xff]  ;;  %vm9063_vm13 = vmmov %vm9062_vm2 }
 0x7e6   :  { %vm9064_vm4 = vmmov %vm9062_vm2 }
 0x7e7   :  { %v3036_v26 = vrot.slane %v3035_v23, 2  ;;  %v3045_v32 = vrot.slane %v3044_v13, 4  ;;  %v3064_v37 = vrot.slane %v3063_v33, 4  ;;  %v3057_v51 = vrot.slane %v3056_v30, 2 }
 0x7e9   :  { %v3037_v55 = vadd.f32 %v3036_v26, %v3035_v23  ;;  %v3046_v1 = vadd.f32 %v3045_v32, %v3044_v13  ;;  %v3065_v2 = vmax.f32 %v3063_v33, %v3064_v37  ;;  %v3058_v31 = vmax.f32 %v3056_v30, %v3057_v51 }
 0x7eb   :  { %v3038_v57 = vrot.slane %v3037_v55, 1  ;;  %v3047_v46 = vrot.slane %v3046_v1, 2  ;;  %v3066_v25 = vrot.slane %v3065_v2, 2  ;;  %v3059_v20 = vrot.slane %v3058_v31, 1 }
 0x7ed   :  { %v3048_v47 = vadd.f32 %v3047_v46, %v3046_v1  ;;  %v3067_v50 = vmax.f32 %v3065_v2, %v3066_v25  ;;  %v3039_v45 = vadd.f32 %v3038_v57, %v3037_v55  ;;  %v3060_v35 = vmax.f32 %v3058_v31, %v3059_v20  ;;  %v165_v20 = vld [vmem:[%s8642_s2 + $0xa8] sm:$0xff] }
 0x7ef   :  { %v3049_v10 = vrot.slane %v3048_v47, 1  ;;  %v3068_v48 = vrot.slane %v3067_v50, 1  ;;  %v3041_v52 = vmul.f32 0.0625, %v3039_v45  ;;  %v163_v45 = vld [vmem:[%s8642_s2 + $0x88] sm:$0xff] }
 0x7f1   :  { %v3050_v19 = vadd.f32 %v3049_v10, %v3048_v47  ;;  %v3069_v54 = vmax.f32 %v3067_v50, %v3068_v48  ;;  %v162_v50 = vld [vmem:[%s8642_s2 + $0x78] sm:$0xff]  ;;  %v167_v48 = vld [vmem:[%s8642_s2 + $0xc8] sm:$0xff] }
 0x7f2   :  { %v164_v10 = vld [vmem:[%s8642_s2 + $0x98] sm:$0xff] }
 0x7f3   :  { %v3051_v12 = vmul.f32 0.0625, %v3050_v19  ;;  %v166_v19 = vld [vmem:[%s8642_s2 + $0xb8] sm:$0xff] }
 0x7f5   :  { %v3070_v34 = vsel %vm9049_vm1, %v3041_v52, %v3051_v12  ;;  %vm9065_vm1 = vmmov %vm9062_vm2  ;;  %v168_v52 = vld [vmem:[%s8642_s2 + $0xd8] sm:$0xff]  ;;  %v169_v12 = vld [vmem:[%s8642_s2 + $0xe8] sm:$0xff] }
 0x7f6   :  { %v3071_v3 = vsel %vm9050_vm9, %v3070_v34, %v3060_v35  ;;  %vm9066_vm9 = vmmov %vm9065_vm1  ;;  %v3593_v35 = vld [vmem:[%s8643_s3 + $0x88] sm:$0xff] }
 0x7f7   :  { %v3072_v56 = vsel %vm9051_vm14, %v3071_v3, %v3069_v54  ;;  %vm9067_vm14 = vmmov %vm9065_vm1  ;;  %v3576_v54 = vld [vmem:[%s8643_s3] sm:$0xff]  ;;  %v5003_v34 = vpack.c.bf16 %v3593_v35, %v3592_v61  ;;  %v3577_v3 = vld [vmem:[%s8643_s3 + $0x8] sm:$0xff] }
 0x7f8   :  { %4736 = vmatmul.mubr.msk.f32.vlgmr.msra.gmra.mrb[40].mxu0 %vm9052_vm0, %v3072_v56  ;;  %vm9068_vm0 = vmmov %vm9065_vm1  ;;  %v3595_v56 = vld [vmem:[%s8643_s3 + $0x98] sm:$0xff]  ;;  %v5005_v38 = vpack.c.bf16 %v3577_v3, %v3576_v54  ;;  %v3617_v61 = vld [vmem:[%s8643_s3 + $0x148] sm:$0xff] }
 0x7f9   :  { %4982 = vmatpush3.bf16.msra.mxu0 %v8055_v42  ;;  %4773 = vmatprep.mubr.msk.f32.mxu0 %vm9053_vm6, %v7754_v43  ;;  %v132_v43 = vld [vmem:[%s8641_s1 + $0x398] sm:$0xff]  ;;  %v133_v42 = vld [vmem:[%s8641_s1 + $0x3a0] sm:$0xff]  ;;  %vm9069_vm6 = vmmov %vm9068_vm0 }
 0x7fa   :  { %4984 = vmatprep.subr.bf16.mxu0 %v4983_v0  ;;  %v4977_v16 = vpack.c.bf16 %v133_v42, %v132_v43  ;;  %v3624_v43 = vld [vmem:[%s8643_s3 + $0x180] sm:$0xff]  ;;  %v3625_v42 = vld [vmem:[%s8643_s3 + $0x188] sm:$0xff]  ;;  %v3634_v54 = vld [vmem:[%s8643_s3 + $0x1d0] sm:$0xff] }
 0x7fb   :  { %v3605_v35 = vld [vmem:[%s8643_s3 + $0xe8] sm:$0xff] }
 0x7fc   :  { %4978 = vmatpush3.bf16.msra.mxu1 %v4977_v16 }
 0x7fd   :  { %4986 = vmatpush3.bf16.msra.mxu0 %v4983_v0  ;;  %v3594_v0 = vld [vmem:[%s8643_s3 + $0x90] sm:$0xff] }
 0x7fe   :  { %4988 = vmatprep.subr.bf16.mxu0 %v4987_v24  ;;  %v5007_v21 = vpack.c.bf16 %v3595_v56, %v3594_v0 }
 0x801   :  { %4990 = vmatpush3.bf16.msra.mxu0 %v4987_v24  ;;  %v3578_v24 = vld [vmem:[%s8643_s3 + $0x10] sm:$0xff] }
 0x802   :  { %4992 = vmatprep.subr.bf16.mxu0 %v4991_v27  ;;  %v5009_v16 = vpack.c.bf16 %v3579_v29, %v3578_v24  ;;  %v3606_v29 = vld [vmem:[%s8643_s3 + $0xf0] sm:$0xff] }
 0x805   :  { %4994 = vmatpush3.bf16.msra.mxu0 %v4991_v27  ;;  %v3597_v27 = vld [vmem:[%s8643_s3 + $0xa8] sm:$0xff] }
 0x808   :  { %4774 = vmatmul.mubr.msk.f32.vlgmr.msra.gmra.mrb[42].mxu0 %vm9054_vm10, %v7800_v39  ;;  %vm9070_vm10 = vmmov %vm9068_vm0 }
 0x809   :  { %4776 = vmatprep.mubr.msk.f32.mxu0 %vm9055_vm8, %v7843_v44  ;;  %vm9071_vm8 = vmmov %vm9068_vm0 }
 0x80c   :  { %4777 = vmatmul.mubr.msk.f32.gmra.mrb[44].mxu0 %vm9056_vm11, %v7794_v53  ;;  %v155_v53 = vld [vmem:[%s8642_s2 + $0x8] sm:$0xff]  ;;  %vm9072_vm11 = vmmov %vm9068_vm0 }
 0x8cb   :  { %v3142_v58 = vpop.f32.mrb[40].mxu0 }
 0x8cc   :  { %v3146_v63 = vmax.f32 %v3142_v58, 0.0  ;;  %v4737_v18 = vpop.f32.mrb[41].mxu0  ;;  %v5035_v58 = vpack.c.bf16 %v3625_v42, %v3624_v43  ;;  %v3590_v42 = vld [vmem:[%s8643_s3 + $0x70] sm:$0xff] }
 0x8cd   :  { %v3608_v18 = vld [vmem:[%s8643_s3 + $0x100] sm:$0xff] }
 0x8ce   :  { %4755 = vmatmul.mubr.msk.f32.vlgmr.msra.gmra.mrb[16].mxu1 %vm9057_vm5, %v3146_v63  ;;  %vm9073_vm5 = vmmov %vm9068_vm0  ;;  %v3580_v63 = vld [vmem:[%s8643_s3 + $0x20] sm:$0xff]  ;;  %5036 = vmatprep.subr.bf16.mxu0 %v5035_v58  ;;  %v3618_v58 = vld [vmem:[%s8643_s3 + $0x150] sm:$0xff] }
 0x8cf   :  { %4787 = vmatprep.mubr.msk.f32.mxu1 %vm9058_vm3, %v155_v53  ;;  %vm9074_vm3 = vcmask 523264  }
 0x8db   :  { %v4775_v39 = vpop.f32.mrb[42].mxu0 }
 0x8dc   :  { %v3320_v44 = vpop.f32.mrb[43].mxu0  ;;  %v3326_v33 = vadd.f32 %v4775_v39, %v4186_v17  ;;  %v5011_v39 = vpack.c.bf16 %v3597_v27, %v3596_v41  ;;  %v3607_v41 = vld [vmem:[%s8643_s3 + $0xf8] sm:$0xff] }
 0x8dd   :  { %v3321_v26 = vadd.f32 %v4186_v17, %v3320_v44  ;;  %v3581_v44 = vld [vmem:[%s8643_s3 + $0x28] sm:$0xff]  ;;  %v5031_v43 = vpack.c.bf16 %v3607_v41, %v3606_v29  ;;  %v3644_v29 = vld [vmem:[%s8643_s3 + $0x220] sm:$0xff] }
 0x8de   :  { %v3645_v41 = vld [vmem:[%s8643_s3 + $0x228] sm:$0xff] }
 0x8df   :  { %v4778_v60 = vpop.f32.mrb[44].mxu0 }
 0x8e0   :  { %v3330_v5 = vpop.f32.mrb[45].mxu0  ;;  %v3336_v32 = vadd.f32 %v4778_v60, %v4186_v17  ;;  %v3609_v60 = vld [vmem:[%s8643_s3 + $0x108] sm:$0xff] }
 0x8e1   :  { %v3331_v37 = vadd.f32 %v4186_v17, %v3330_v5  ;;  %v3598_v5 = vld [vmem:[%s8643_s3 + $0xb0] sm:$0xff]  ;;  %v5037_v53 = vpack.c.bf16 %v3609_v60, %v3608_v18  ;;  %v3619_v18 = vld [vmem:[%s8643_s3 + $0x158] sm:$0xff]  ;;  %v3637_v60 = vld [vmem:[%s8643_s3 + $0x1e8] sm:$0xff] }
 0x8e2   :  { %v3582_v17 = vld [vmem:[%s8643_s3 + $0x30] sm:$0xff] }
 0x8e3   :  { %5038 = vmatpush3.bf16.msra.mxu0 %v5037_v53 }
 0x9a1   :  { %v3216_v59 = vpop.f32.mrb[16].mxu1 }
 0x9a2   :  { %v3221_v36 = vrot.slane %v3216_v59, 2  ;;  %v4756_v9 = vpop.f32.mrb[17].mxu1 }
 0x9a3   :  { %v3627_v9 = vld [vmem:[%s8643_s3 + $0x198] sm:$0xff] }
 0x9a4   :  { %v3223_v40 = vadd.f32 %v3221_v36, %v3216_v59  ;;  %v3599_v59 = vld [vmem:[%s8643_s3 + $0xb8] sm:$0xff]  ;;  %v3626_v36 = vld [vmem:[%s8643_s3 + $0x190] sm:$0xff] }
 0x9a6   :  { %v4185_v11 = vmul.f32 -1.442695, %v3223_v40  ;;  %v5039_v40 = vpack.c.bf16 %v3627_v9, %v3626_v36  ;;  %v3620_v36 = vld [vmem:[%s8643_s3 + $0x160] sm:$0xff]  ;;  %v3621_v9 = vld [vmem:[%s8643_s3 + $0x168] sm:$0xff] }
 0x9a8   :  { %5211 = vpow2.f32 %v4185_v11  ;;  %v3610_v11 = vld [vmem:[%s8643_s3 + $0x110] sm:$0xff]  ;;  %5040 = vmatprep.subr.bf16.mxu0 %v5039_v40 }
 0x9b2   :  { %v5212_v7 = vpop.eup %5211 }
 0x9b3   :  { %v3227_v6 = vadd.f32 1.0, %v5212_v7  ;;  %v3611_v7 = vld [vmem:[%s8643_s3 + $0x118] sm:$0xff] }
 0x9b5   :  { %5213 = vrcp.f32 %v3227_v6  ;;  %v5013_v6 = vpack.c.bf16 %v3581_v44, %v3580_v63  ;;  %v3636_v44 = vld [vmem:[%s8643_s3 + $0x1e0] sm:$0xff] }
 0x9b6   :  { %v5059_v53 = vpack.c.bf16 %v3637_v60, %v3636_v44 }
 0x9bf   :  { %v5214_v23 = vpop.eup %5213 }
 0x9c0   :  { %v3233_v30 = vrot.slane %v5214_v23, %v2018_v49  ;;  %v3237_v13 = vrot.slane %v5214_v23, %v2022_v22  ;;  %v157_v22 = vld [vmem:[%s8642_s2 + $0x28] sm:$0xff]  ;;  %v5041_v23 = vpack.c.bf16 %v3611_v7, %v3610_v11  ;;  %v5061_v11 = vpack.c.bf16 %v3621_v9, %v3620_v36  ;;  %v3638_v7 = vld [vmem:[%s8643_s3 + $0x1f0] sm:$0xff]  ;;  %v3647_v36 = vld [vmem:[%s8643_s3 + $0x238] sm:$0xff] }
 0x9c2   :  { %v3238_v51 = vmul.f32 %v3233_v30, %v8087_v14  ;;  %v3239_v55 = vmul.f32 %v3233_v30, %v8085_v8  ;;  %v3240_v1 = vmul.f32 %v3237_v13, %v8099_v62  ;;  %v3241_v2 = vmul.f32 %v3237_v13, %v8097_v15  ;;  %v158_v8 = vld [vmem:[%s8642_s2 + $0x38] sm:$0xff]  ;;  %v159_v14 = vld [vmem:[%s8642_s2 + $0x48] sm:$0xff]  ;;  %v3628_v30 = vld [vmem:[%s8643_s3 + $0x1a0] sm:$0xff]  ;;  %5042 = vmatpush3.bf16.msra.mxu0 %v5041_v23 }
 0x9c3   :  { %v160_v15 = vld [vmem:[%s8642_s2 + $0x58] sm:$0xff]  ;;  %v161_v62 = vld [vmem:[%s8642_s2 + $0x68] sm:$0xff]  ;;  %v5015_v13 = vpack.c.bf16 %v3599_v59, %v3598_v5  ;;  %v3656_v5 = vld [vmem:[%s8643_s3 + $0x280] sm:$0xff] }
 0x9c4   :  { %v3339_v57 = vadd.f32 %v3321_v26, %v3238_v51  ;;  %v3340_v46 = vadd.f32 %v3326_v33, %v3239_v55  ;;  %v3341_v25 = vadd.f32 %v3331_v37, %v3240_v1  ;;  %v3342_v31 = vadd.f32 %v3336_v32, %v3241_v2  ;;  %v3583_v33 = vld [vmem:[%s8643_s3 + $0x38] sm:$0xff]  ;;  %v3600_v26 = vld [vmem:[%s8643_s3 + $0xc0] sm:$0xff]  ;;  %v3629_v32 = vld [vmem:[%s8643_s3 + $0x1a8] sm:$0xff] }
 0x9c5   :  { %v3601_v37 = vld [vmem:[%s8643_s3 + $0xc8] sm:$0xff]  ;;  %v5043_v51 = vpack.c.bf16 %v3629_v32, %v3628_v30  ;;  %v3612_v55 = vld [vmem:[%s8643_s3 + $0x120] sm:$0xff]  ;;  %v3630_v2 = vld [vmem:[%s8643_s3 + $0x1b0] sm:$0xff] }
 0x9c6   :  { %v4995_v49 = vpack.c.bf16 %v3340_v46, %v3339_v57  ;;  %v4999_v47 = vpack.c.bf16 %v3342_v31, %v3341_v25  ;;  %v3613_v1 = vld [vmem:[%s8643_s3 + $0x128] sm:$0xff]  ;;  %v3631_v57 = vld [vmem:[%s8643_s3 + $0x1b8] sm:$0xff]  ;;  %v5017_v46 = vpack.c.bf16 %v3583_v33, %v3582_v17  ;;  %v3584_v25 = vld [vmem:[%s8643_s3 + $0x40] sm:$0xff] }
 0x9c7   :  { %v3585_v31 = vld [vmem:[%s8643_s3 + $0x48] sm:$0xff]  ;;  %5044 = vmatprep.subr.bf16.mxu0 %v5043_v51  ;;  %v3639_v17 = vld [vmem:[%s8643_s3 + $0x1f8] sm:$0xff] }
 0x9c8   :  { %4996 = vmatprep.subr.bf16.mxu1 %v4995_v49  ;;  %v3657_v59 = vld [vmem:[%s8643_s3 + $0x288] sm:$0xff]  ;;  %v5063_v30 = vpack.c.bf16 %v3639_v17, %v3638_v7  ;;  %v3623_v33 = vld [vmem:[%s8643_s3 + $0x178] sm:$0xff] }
 0x9c9   :  { %4998 = vmatpush3.bf16.msra.mxu1 %v4995_v49  ;;  %v5045_v49 = vpack.c.bf16 %v3613_v1, %v3612_v55  ;;  %v5067_v40 = vpack.c.bf16 %v3657_v59, %v3656_v5  ;;  %v3688_v55 = vld [vmem:[%s8643_s3 + $0x380] sm:$0xff]  ;;  %v3689_v1 = vld [vmem:[%s8643_s3 + $0x388] sm:$0xff]  ;;  %v5077_v5 = vpack.c.bf16 %v3645_v41, %v3644_v29  ;;  %v3646_v59 = vld [vmem:[%s8643_s3 + $0x230] sm:$0xff] }
 0x9ca   :  { %5000 = vmatprep.subr.bf16.mxu1 %v4999_v47  ;;  %v3675_v17 = vld [vmem:[%s8643_s3 + $0x318] sm:$0xff]  ;;  %v3670_v29 = vld [vmem:[%s8643_s3 + $0x2f0] sm:$0xff] }
 0x9cb   :  { %5046 = vmatpush3.bf16.msra.mxu0 %v5045_v49 }
 0x9cd   :  { %5002 = vmatpush3.bf16.msra.mxu1 %v4999_v47  ;;  %v5019_v47 = vpack.c.bf16 %v3601_v37, %v3600_v26 }
 0x9ce   :  { %5004 = vmatprep.subr.bf16.mxu1 %v5003_v34  ;;  %v3635_v34 = vld [vmem:[%s8643_s3 + $0x1d8] sm:$0xff] }
 0x9cf   :  { %v5055_v24 = vpack.c.bf16 %v3635_v34, %v3634_v54 }
 0x9d0   :  { %4788 = vmatmul.mubr.msk.f32.vlgmr.msra.gmra.mrb[18].mxu1 %vm9059_vm12, %v156_v4  ;;  %v3602_v4 = vld [vmem:[%s8643_s3 + $0xd0] sm:$0xff]  ;;  %vm9075_vm12 = vmmov %vm9074_vm3 }
 0x9d1   :  { %4790 = vmatprep.mubr.msk.f32.mxu1 %vm9060_vm7, %v157_v22  ;;  %5006 = vmatpush3.bf16.msra.mxu1 %v5005_v38  ;;  %v5047_v22 = vpack.c.bf16 %v3631_v57, %v3630_v2  ;;  %v3588_v38 = vld [vmem:[%s8643_s3 + $0x60] sm:$0xff]  ;;  %v5099_v2 = vpack.c.bf16 %v3689_v1, %v3688_v55  ;;  %vm9076_vm7 = vmmov %vm9074_vm3 }
 0x9d2   :  { %5008 = vmatprep.subr.bf16.mxu1 %v5007_v21  ;;  %v3589_v21 = vld [vmem:[%s8643_s3 + $0x68] sm:$0xff] }
 0x9d3   :  { %5048 = vmatprep.subr.bf16.mxu0 %v5047_v22  ;;  %v5029_v27 = vpack.c.bf16 %v3589_v21, %v3588_v38  ;;  %v3660_v38 = vld [vmem:[%s8643_s3 + $0x2a0] sm:$0xff]  ;;  %v3661_v21 = vld [vmem:[%s8643_s3 + $0x2a8] sm:$0xff] }
 0x9d4   :  { %4791 = vmatmul.mubr.msk.f32.gmra.mrb[20].mxu1 %vm9061_vm15, %v158_v8  ;;  %v3614_v8 = vld [vmem:[%s8643_s3 + $0x130] sm:$0xff]  ;;  %vm9077_vm15 = vmmov %vm9074_vm3 }
 0x9d5   :  { %4793 = vmatprep.mubr.msk.f32.mxu1 %vm9062_vm2, %v159_v14  ;;  %5010 = vmatpush3.bf16.msra.mxu1 %v5009_v16  ;;  %v3615_v14 = vld [vmem:[%s8643_s3 + $0x138] sm:$0xff]  ;;  %vm9078_vm2 = vmmov %vm9074_vm3 }
 0x9d6   :  { %5012 = vmatprep.subr.bf16.mxu1 %v5011_v39  ;;  %v3591_v16 = vld [vmem:[%s8643_s3 + $0x78] sm:$0xff]  ;;  %v5057_v39 = vpack.c.bf16 %v3619_v18, %v3618_v58  ;;  %v3690_v18 = vld [vmem:[%s8643_s3 + $0x390] sm:$0xff] }
 0x9d7   :  { %v5033_v63 = vpack.c.bf16 %v3591_v16, %v3590_v42  ;;  %v3673_v42 = vld [vmem:[%s8643_s3 + $0x308] sm:$0xff]  ;;  %v3662_v16 = vld [vmem:[%s8643_s3 + $0x2b0] sm:$0xff] }
 0x9d8   :  { %4794 = vmatmul.mubr.msk.f32.gmra.mrb[22].mxu1 %vm9063_vm13, %v160_v15  ;;  %v3603_v15 = vld [vmem:[%s8643_s3 + $0xd8] sm:$0xff]  ;;  %vm9079_vm13 = vmmov %vm9078_vm2 }
 0x9d9   :  { %4796 = vmatprep.mubr.msk.f32.mxu1 %vm9064_vm4, %v161_v62  ;;  %5014 = vmatpush3.bf16.msra.mxu1 %v5013_v6  ;;  %v3632_v62 = vld [vmem:[%s8643_s3 + $0x1c0] sm:$0xff]  ;;  %vm9080_vm4 = vmmov %vm9078_vm2 }
 0x9da   :  { %5016 = vmatprep.subr.bf16.mxu1 %v5015_v13  ;;  %v3622_v13 = vld [vmem:[%s8643_s3 + $0x170] sm:$0xff] }
 0x9db   :  { %v5065_v26 = vpack.c.bf16 %v3623_v33, %v3622_v13  ;;  %v3692_v13 = vld [vmem:[%s8643_s3 + $0x3a0] sm:$0xff]  ;;  %v3693_v33 = vld [vmem:[%s8643_s3 + $0x3a8] sm:$0xff] }
 0x9dc   :  { %4797 = vmatmul.mubr.msk.f32.gmra.mrb[24].mxu1 %vm9065_vm1, %v162_v50  ;;  %v3633_v50 = vld [vmem:[%s8643_s3 + $0x1c8] sm:$0xff]  ;;  %v5107_v1 = vpack.c.bf16 %v3693_v33, %v3692_v13  ;;  %vm9081_vm1 = vmmov %vm9078_vm2 }
 0x9dd   :  { %4799 = vmatprep.mubr.msk.f32.mxu1 %vm9066_vm9, %v163_v45  ;;  %5018 = vmatpush3.bf16.msra.mxu1 %v5017_v46  ;;  %v5021_v45 = vpack.c.bf16 %v3585_v31, %v3584_v25  ;;  %vm3989_vm9 = vcmask 80896  }
 0x9de   :  { %5020 = vmatprep.subr.bf16.mxu1 %v5019_v47 }
 0x9e0   :  { %4800 = vmatmul.mubr.msk.f32.gmra.mrb[26].mxu1 %vm9067_vm14, %v164_v10  ;;  %v3586_v10 = vld [vmem:[%s8643_s3 + $0x50] sm:$0xff] }
 0x9e1   :  { %4802 = vmatprep.mubr.msk.f32.mxu1 %vm9068_vm0, %v165_v20  ;;  %v3587_v20 = vld [vmem:[%s8643_s3 + $0x58] sm:$0xff]  ;;  %5022 = vmatpush3.bf16.msra.mxu1 %v5021_v45 }
 0x9e2   :  { %v5025_v3 = vpack.c.bf16 %v3587_v20, %v3586_v10  ;;  %v3640_v20 = vld [vmem:[%s8643_s3 + $0x200] sm:$0xff] }
 0x9e4   :  { %4803 = vmatmul.mubr.msk.f32.gmra.mrb[28].mxu1 %vm9069_vm6, %v166_v19  ;;  %v5049_v19 = vpack.c.bf16 %v3615_v14, %v3614_v8 }
 0x9e5   :  { %4805 = vmatprep.mubr.msk.f32.mxu1 %vm9070_vm10, %v167_v48  ;;  %v5023_v48 = vpack.c.bf16 %v3603_v15, %v3602_v4 }
 0x9e6   :  { %5050 = vmatpush3.bf16.msra.mxu0 %v5049_v19  ;;  %v3641_v19 = vld [vmem:[%s8643_s3 + $0x208] sm:$0xff] }
 0x9e7   :  { %5024 = vmatprep.subr.bf16.mxu1 %v5023_v48 }
 0x9e8   :  { %4806 = vmatmul.mubr.msk.f32.gmra.mrb[30].mxu1 %vm9071_vm8, %v168_v52  ;;  %v3604_v52 = vld [vmem:[%s8643_s3 + $0xe0] sm:$0xff] }
 0x9e9   :  { %4808 = vmatprep.mubr.msk.f32.mxu1 %vm9072_vm11, %v169_v12  ;;  %v5051_v12 = vpack.c.bf16 %v3633_v50, %v3632_v62  ;;  %v5027_v56 = vpack.c.bf16 %v3605_v35, %v3604_v52  ;;  %5026 = vmatpush3.bf16.msra.mxu1 %v5025_v3  ;;  %v3658_v52 = vld [vmem:[%s8643_s3 + $0x290] sm:$0xff]  ;;  %v5069_v35 = vpack.c.bf16 %v3641_v19, %v3640_v20 }
 0x9eb   :  { %5052 = vmatprep.subr.bf16.mxu0 %v5051_v12  ;;  %5028 = vmatprep.subr.bf16.mxu1 %v5027_v56  ;;  %v3659_v12 = vld [vmem:[%s8643_s3 + $0x298] sm:$0xff] }
 0x9ec   :  { %4809 = vmatmul.mubr.msk.f32.gmra.mrb[32].mxu1 %vm9073_vm5, %v170_v28  ;;  %v3616_v28 = vld [vmem:[%s8643_s3 + $0x140] sm:$0xff]  ;;  %v5071_v3 = vpack.c.bf16 %v3659_v12, %v3658_v52  ;;  %v3643_v56 = vld [vmem:[%s8643_s3 + $0x218] sm:$0xff]  ;;  %v3678_v52 = vld [vmem:[%s8643_s3 + $0x330] sm:$0xff] }
 0x9ed   :  { %v5053_v0 = vpack.c.bf16 %v3617_v61, %v3616_v28  ;;  %5030 = vmatpush3.bf16.msra.mxu1 %v5029_v27  ;;  %v5075_v27 = vpack.c.bf16 %v3661_v21, %v3660_v38  ;;  %v3679_v12 = vld [vmem:[%s8643_s3 + $0x338] sm:$0xff]  ;;  %v3680_v21 = vld [vmem:[%s8643_s3 + $0x340] sm:$0xff] }
 0x9ee   :  { %5032 = vmatprep.subr.bf16.mxu1 %v5031_v43  ;;  %v3672_v43 = vld [vmem:[%s8643_s3 + $0x300] sm:$0xff] }
 0x9ef   :  { %5054 = vmatpush3.bf16.msra.mxu0 %v5053_v0  ;;  %v3642_v0 = vld [vmem:[%s8643_s3 + $0x210] sm:$0xff] }
 0x9f0   :  { %5056 = vmatprep.subr.bf16.mxu0 %v5055_v24  ;;  %v5073_v24 = vpack.c.bf16 %v3643_v56, %v3642_v0  ;;  %v3653_v0 = vld [vmem:[%s8643_s3 + $0x268] sm:$0xff] }
 0x9f1   :  { %5034 = vmatpush3.bf16.msra.mxu1 %v5033_v63  ;;  %v3663_v63 = vld [vmem:[%s8643_s3 + $0x2b8] sm:$0xff] }
 0x9f2   :  { %5068 = vmatprep.subr.bf16.mxu1 %v5067_v40 }
 0x9f3   :  { %5058 = vmatpush3.bf16.msra.mxu0 %v5057_v39  ;;  %v3691_v39 = vld [vmem:[%s8643_s3 + $0x398] sm:$0xff] }
 0x9f4   :  { %5060 = vmatprep.subr.bf16.mxu0 %v5059_v53  ;;  %v5101_v53 = vpack.c.bf16 %v3673_v42, %v3672_v43  ;;  %v5103_v7 = vpack.c.bf16 %v3691_v39, %v3690_v18  ;;  %v3698_v43 = vld [vmem:[%s8643_s3 + $0x3d0] sm:$0xff]  ;;  %v3699_v42 = vld [vmem:[%s8643_s3 + $0x3d8] sm:$0xff] }
 0x9f5   :  { %v3654_v18 = vld [vmem:[%s8643_s3 + $0x270] sm:$0xff] }
 0x9f7   :  { %5062 = vmatpush3.bf16.msra.mxu0 %v5061_v11  ;;  %v5079_v11 = vpack.c.bf16 %v3663_v63, %v3662_v16 }
 0x9f8   :  { %5064 = vmatprep.subr.bf16.mxu0 %v5063_v30  ;;  %v3665_v30 = vld [vmem:[%s8643_s3 + $0x2c8] sm:$0xff] }
 0x9fb   :  { %5066 = vmatpush3.bf16.msra.mxu0 %v5065_v26  ;;  %v5081_v26 = vpack.c.bf16 %v3647_v36, %v3646_v59  ;;  %v3683_v59 = vld [vmem:[%s8643_s3 + $0x358] sm:$0xff]  ;;  %v3700_v36 = vld [vmem:[%s8643_s3 + $0x3e0] sm:$0xff] }
 0x9fc   :  { %5100 = vmatprep.subr.bf16.mxu0 %v5099_v2  ;;  %v3676_v2 = vld [vmem:[%s8643_s3 + $0x320] sm:$0xff] }
 0xaa3   :  { %v4789_v6 = vpop.f32.mrb[18].mxu1 }
 0xaa4   :  { %v3457_v23 = vpop.f32.mrb[19].mxu1 }
 0xaa7   :  { %v4792_v32 = vpop.f32.mrb[20].mxu1 }
 0xaa8   :  { %v5187_v37 = vpack.i.bf16 %v4789_v6, %v4792_v32  ;;  %v3467_v51 = vpop.f32.mrb[21].mxu1  ;;  %v3674_v6 = vld [vmem:[%s8643_s3 + $0x310] sm:$0xff] }
 0xaa9   :  { %v5105_v32 = vpack.c.bf16 %v3675_v17, %v3674_v6  ;;  %v3685_v6 = vld [vmem:[%s8643_s3 + $0x368] sm:$0xff] }
 0xaaa   :  { %5188 = vrot.lane.b32.xlu0 %v5187_v37, %s5232_s19  ;;  %v3648_v37 = vld [vmem:[%s8643_s3 + $0x240] sm:$0xff] }
 0xaab   :  { %v4795_v57 = vpop.f32.mrb[22].mxu1 }
 0xaac   :  { %v3477_v46 = vpop.f32.mrb[23].mxu1 }
 0xaaf   :  { %v4798_v25 = vpop.f32.mrb[24].mxu1 }
 0xab0   :  { %v5192_v31 = vpack.i.bf16 %v4795_v57, %v4798_v25  ;;  %v3487_v49 = vpop.f32.mrb[25].mxu1  ;;  %v3677_v57 = vld [vmem:[%s8643_s3 + $0x328] sm:$0xff] }
 0xab2   :  { %5193 = vrot.lane.b32.xlu1 %v5192_v31, %s5232_s19  ;;  %v3667_v31 = vld [vmem:[%s8643_s3 + $0x2d8] sm:$0xff] }
 0xab3   :  { %v4801_v47 = vpop.f32.mrb[26].mxu1 }
 0xab4   :  { %v8428_v4 = vpop.f32.mrb[27].mxu1 }
 0xab7   :  { %v4804_v22 = vpop.f32.mrb[28].mxu1 }
 0xab8   :  { %v5197_v8 = vpack.i.bf16 %v4801_v47, %v4804_v22  ;;  %v8430_v14 = vpop.f32.mrb[29].mxu1  ;;  %v3695_v47 = vld [vmem:[%s8643_s3 + $0x3b8] sm:$0xff] }
 0xaba   :  { %5198 = vrot.lane.b32.xlu0 %v5197_v8, %s5232_s19 }
 0xabb   :  { %v4807_v15 = vpop.f32.mrb[30].mxu1 }
 0xabc   :  { %v8433_v62 = vpop.f32.mrb[31].mxu1 }
 0xabf   :  { %v4810_v50 = vpop.f32.mrb[32].mxu1 }
 0xac0   :  { %v5202_v45 = vpack.i.bf16 %v4807_v15, %v4810_v50  ;;  %v8435_v10 = vpop.f32.mrb[33].mxu1  ;;  %v5109_v15 = vpack.c.bf16 %v3677_v57, %v3676_v2  ;;  %v3650_v50 = vld [vmem:[%s8643_s3 + $0x250] sm:$0xff] }
 0xac2   :  { %5203 = vrot.lane.b32.xlu1 %v5202_v45, %s5232_s19  ;;  %v3651_v45 = vld [vmem:[%s8643_s3 + $0x258] sm:$0xff] }
 0xb1c   :  { %v5189_v48 = vpop.permute.xlu0 %5188 }
 0xb1d   :  { %v5191_v28 = vunpack.i.h.bf16 %v5189_v48  ;;  %v5190_v61 = vunpack.i.l.bf16 %v5189_v48 }
 0xb1f   :  { %v3569_v54 = vsel %vm9074_vm3, %v3467_v51, %v5190_v61  ;;  %v3568_v34 = vsel %vm9075_vm12, %v3457_v23, %v5191_v28  ;;  %v3664_v23 = vld [vmem:[%s8643_s3 + $0x2c0] sm:$0xff]  ;;  %v3649_v51 = vld [vmem:[%s8643_s3 + $0x248] sm:$0xff] }
 0xb20   :  { %3773 = vmatprep.mubr.f32.mxu1 %v3569_v54  ;;  %v5083_v55 = vpack.c.bf16 %v3665_v30, %v3664_v23  ;;  %v5085_v8 = vpack.c.bf16 %v3649_v51, %v3648_v37  ;;  %v3668_v28 = vld [vmem:[%s8643_s3 + $0x2e0] sm:$0xff]  ;;  %v5089_v54 = vpack.c.bf16 %v3651_v45, %v3650_v50  ;;  %v3702_v23 = vld [vmem:[%s8643_s3 + $0x3f0] sm:$0xff]  ;;  %v3703_v30 = vld [vmem:[%s8643_s3 + $0x3f8] sm:$0xff] }
 0xb21   :  { %3774 = vmatmul.mubr.f32.vlgmr.msra.gmra.mrb[34].mxu1 %v3568_v34  ;;  %v3696_v61 = vld [vmem:[%s8643_s3 + $0x3c0] sm:$0xff]  ;;  %v5113_v34 = vpack.c.bf16 %v3679_v12, %v3678_v52  ;;  %v5127_v33 = vpack.c.bf16 %v3703_v30, %v3702_v23 }
 0xb22   :  { %5070 = vmatpush3.bf16.msra.mxu1 %v5069_v35  ;;  %v3697_v35 = vld [vmem:[%s8643_s3 + $0x3c8] sm:$0xff] }
 0xb23   :  { %5072 = vmatprep.subr.bf16.mxu1 %v5071_v3  ;;  %v3652_v3 = vld [vmem:[%s8643_s3 + $0x260] sm:$0xff]  ;;  %v5115_v38 = vpack.c.bf16 %v3697_v35, %v3696_v61 }
 0xb24   :  { %v5194_v58 = vpop.permute.xlu1 %5193 }
 0xb25   :  { %v5196_v44 = vunpack.i.h.bf16 %v5194_v58  ;;  %v5195_v60 = vunpack.i.l.bf16 %v5194_v58  ;;  %v5093_v58 = vpack.c.bf16 %v3653_v0, %v3652_v3 }
 0xb26   :  { %5074 = vmatpush3.bf16.msra.mxu1 %v5073_v24  ;;  %v3681_v24 = vld [vmem:[%s8643_s3 + $0x348] sm:$0xff] }
 0xb27   :  { %v3571_v9 = vsel %vm9076_vm7, %v3487_v49, %v5195_v60  ;;  %5076 = vmatprep.subr.bf16.mxu1 %v5075_v27  ;;  %v3570_v40 = vsel %vm9077_vm15, %v3477_v46, %v5196_v44  ;;  %v3666_v46 = vld [vmem:[%s8643_s3 + $0x2d0] sm:$0xff]  ;;  %v3671_v27 = vld [vmem:[%s8643_s3 + $0x2f8] sm:$0xff]  ;;  %v5117_v63 = vpack.c.bf16 %v3681_v24, %v3680_v21  ;;  %v5119_v60 = vpack.c.bf16 %v3699_v42, %v3698_v43 }
 0xb28   :  { %3843 = vmatprep.mubr.f32.mxu0 %v3571_v9  ;;  %v3694_v49 = vld [vmem:[%s8643_s3 + $0x3b0] sm:$0xff]  ;;  %v5087_v19 = vpack.c.bf16 %v3667_v31, %v3666_v46  ;;  %v5095_v44 = vpack.c.bf16 %v3671_v27, %v3670_v29 }
 0xb29   :  { %3844 = vmatmul.mubr.f32.vlgmr.msra.gmra.mrb[46].mxu0 %v3570_v40  ;;  %v5111_v48 = vpack.c.bf16 %v3695_v47, %v3694_v49 }
 0xb2a   :  { %5078 = vmatpush3.bf16.msra.mxu1 %v5077_v5  ;;  %5102 = vmatpush3.bf16.msra.mxu0 %v5101_v53  ;;  %v3655_v5 = vld [vmem:[%s8643_s3 + $0x278] sm:$0xff]  ;;  %v3682_v53 = vld [vmem:[%s8643_s3 + $0x350] sm:$0xff] }
 0xb2b   :  { %5080 = vmatprep.subr.bf16.mxu1 %v5079_v11  ;;  %5104 = vmatprep.subr.bf16.mxu0 %v5103_v7  ;;  %v5097_v9 = vpack.c.bf16 %v3655_v5, %v3654_v18  ;;  %v5121_v40 = vpack.c.bf16 %v3683_v59, %v3682_v53  ;;  %v3684_v7 = vld [vmem:[%s8643_s3 + $0x360] sm:$0xff] }
 0xb2c   :  { %v8529_v25 = vpop.permute.xlu0 %5198  ;;  %v5125_v13 = vpack.c.bf16 %v3685_v6, %v3684_v7 }
 0xb2d   :  { %v5200_v22 = vunpack.i.l.bf16 %v8529_v25  ;;  %v5201_v17 = vunpack.i.h.bf16 %v8529_v25  ;;  %v4207_v25 = vld [vmem:[%s8643_s3 + $0x400] ss:$0 sm:$0xff] }
 0xb2e   :  { %5082 = vmatpush3.bf16.msra.mxu1 %v5081_v26  ;;  %5106 = vmatpush3.bf16.msra.mxu0 %v5105_v32  ;;  %v3686_v26 = vld [vmem:[%s8643_s3 + $0x370] sm:$0xff]  ;;  %v3687_v32 = vld [vmem:[%s8643_s3 + $0x378] sm:$0xff] }
 0xb2f   :  { %5084 = vmatprep.subr.bf16.mxu1 %v5083_v55  ;;  %v3573_v20 = vsel %vm9078_vm2, %v8430_v14, %v5200_v22  ;;  %5108 = vmatprep.subr.bf16.mxu0 %v5107_v1  ;;  %v3669_v14 = vld [vmem:[%s8643_s3 + $0x2e8] sm:$0xff]  ;;  %v3572_v37 = vsel %vm9080_vm4, %v8428_v4, %v5201_v17  ;;  %v5129_v51 = vpack.c.bf16 %v3687_v32, %v3686_v26 }
 0xb30   :  { %3913 = vmatprep.mubr.f32.mxu1 %v3573_v20  ;;  %v5091_v56 = vpack.c.bf16 %v3669_v14, %v3668_v28 }
 0xb32   :  { %5086 = vmatpush3.bf16.msra.mxu1 %v5085_v8  ;;  %5110 = vmatpush3.bf16.msra.mxu0 %v5109_v15 }
 0xb33   :  { %5088 = vmatprep.subr.bf16.mxu1 %v5087_v19  ;;  %5112 = vmatprep.subr.bf16.mxu0 %v5111_v48 }
 0xb34   :  { %v5204_v41 = vpop.permute.xlu1 %5203 }
 0xb35   :  { %v5205_v16 = vunpack.i.l.bf16 %v5204_v41  ;;  %v5206_v55 = vunpack.i.h.bf16 %v5204_v41 }
 0xb36   :  { %5090 = vmatpush3.bf16.msra.mxu1 %v5089_v54  ;;  %5114 = vmatpush3.bf16.msra.mxu0 %v5113_v34 }
 0xb37   :  { %5092 = vmatprep.subr.bf16.mxu1 %v5091_v56  ;;  %5116 = vmatprep.subr.bf16.mxu0 %v5115_v38  ;;  %v3575_v39 = vsel %vm9079_vm13, %v8435_v10, %v5205_v16  ;;  %v3701_v10 = vld [vmem:[%s8643_s3 + $0x3e8] sm:$0xff]  ;;  %v3574_v1 = vsel %vm9081_vm1, %v8433_v62, %v5206_v55 }
 0xb38   :  { %3983 = vmatprep.mubr.f32.mxu0 %v3575_v39  ;;  %v5123_v11 = vpack.c.bf16 %v3701_v10, %v3700_v36 }
 0xb3a   :  { %5094 = vmatpush3.bf16.msra.mxu1 %v5093_v58  ;;  %5118 = vmatpush3.bf16.msra.mxu0 %v5117_v63 }
 0xb3b   :  { %5096 = vmatprep.subr.bf16.mxu1 %v5095_v44  ;;  %5120 = vmatprep.subr.bf16.mxu0 %v5119_v60 }
 0xb3e   :  { %5098 = vmatpush3.bf16.msra.mxu1 %v5097_v9  ;;  %5122 = vmatpush3.bf16.msra.mxu0 %v5121_v40 }
 0xb3f   :  { %5124 = vmatprep.subr.bf16.mxu0 %v5123_v11 }
 0xb41   :  { %3914 = vmatmul.mubr.f32.vlgmr.msra.gmra.mrb[36].mxu1 %v3572_v37 }
 0xb42   :  { %5126 = vmatpush3.bf16.msra.mxu0 %v5125_v13 }
 0xb43   :  { %5128 = vmatprep.subr.bf16.mxu0 %v5127_v33 }
 0xb46   :  { %5130 = vmatpush3.bf16.msra.mxu0 %v5129_v51 }
 0xb49   :  { %3984 = vmatmul.mubr.f32.vlgmr.msra.gmra.mrb[48].mxu0 %v3574_v1 }
 0xbf4   :  { %v4461_v2 = vpop.f32.mrb[34].mxu1 }
 0xbf5   :  { %v4462_v57 = vpop.f32.mrb[35].mxu1 }
 0xbf6   :  { %v4463_v46 = vadd.f32 %v4462_v57, %v4461_v2 }
 0xbf8   :  { %v3776_v4 = vadd.f32 %v4463_v46, %v4207_v25 }
 0xbfc   :  { %v4496_v31 = vpop.f32.mrb[46].mxu0 }
 0xbfd   :  { %v4497_v49 = vpop.f32.mrb[47].mxu0 }
 0xbfe   :  { %v4498_v47 = vadd.f32 %v4497_v49, %v4496_v31 }
 0xc00   :  { %v3846_v22 = vadd.f32 %v4498_v47, %v3776_v4 }
 0xc14   :  { %v4531_v8 = vpop.f32.mrb[36].mxu1 }
 0xc15   :  { %v4532_v15 = vpop.f32.mrb[37].mxu1 }
 0xc16   :  { %v4533_v50 = vadd.f32 %v4532_v15, %v4531_v8 }
 0xc18   :  { %v3916_v45 = vadd.f32 %v4533_v50, %v3846_v22 }
 0xc1c   :  { %v4566_v20 = vpop.f32.mrb[48].mxu0 }
 0xc1d   :  { %v4567_v19 = vpop.f32.mrb[49].mxu0 }
 0xc1e   :  { %v4568_v62 = vadd.f32 %v4567_v19, %v4566_v20 }
 0xc20   :  { %v3986_v48 = vadd.f32 %v4568_v62, %v3916_v45 }
 0xc22   :  { %3990 = vst.msk [vmem:[%s8644_s4] sm:$0xff] %vm3989_vm9, %v3986_v48 }

</bundles_post_ra>
